<compile_context>
chip_gen: v5e
topology: v5e:2x2
jax: 0.10.0
libtpu: 0.0.40
codegen_flags: <defaults>
</compile_context>

<pallas_src>
import functools

import jax
import jax.numpy as jnp
from jax import lax
from jax.experimental import pallas as pl
from jax.experimental.pallas import tpu as pltpu


# ----------------------------------------------------------------------------
# Generation-aware VMEM budgeting.
# ----------------------------------------------------------------------------
@functools.lru_cache(maxsize=None)
def _vmem_capacity_bytes():
    try:
        cap = int(getattr(pltpu.get_tpu_info(), "vmem_capacity_bytes", 0))
        if cap > 0:
            return cap
    except Exception:
        pass
    return 64 * 1024 * 1024  # conservative default (v7x per-core VMEM)


def _vmem_limit_bytes():
    # scoped limit: ~3/4 of physical VMEM (96 MiB on v5e/v6e, 48 MiB on v7x)
    return min(int(0.75 * _vmem_capacity_bytes()), 100 * 1024 * 1024)


def _tile_budget_bytes():
    # working-set budget used when deriving batch tiles for recurrent kernels
    return int(0.5 * _vmem_capacity_bytes())


def _round_up(x, m):
    return (x + m - 1) // m * m


def _pick_batch_tile(batch, per_elem_bytes, budget_bytes, prefer_split=True):
    """Largest batch tile (multiple of 16, or the full batch) fitting the budget."""
    cands = [d for d in range(16, batch, 16) if batch % d == 0] + [batch]
    fits = [d for d in cands if d * max(per_elem_bytes, 1) <= budget_bytes]
    if not fits:
        return min(cands)
    if prefer_split and batch >= 32:
        sub = [d for d in fits if d <= batch // 2]
        if sub:                       # >=2 grid steps so both v7x TCs get work
            return max(sub)
    return max(fits)


# ----------------------------------------------------------------------------
# Generic tiled matmul:  sum_p x_p @ w_p  (+ bias) (+ tanh), bf16 in / f32 acc.
# Non-divisible M/N/K are padded up (no full-dimension fallback tiles).
# ----------------------------------------------------------------------------
def _make_mm_kernel(n_pairs, has_bias, activation):
    def kernel(*args):
        refs = args[:-2]
        o_ref, acc_ref = args[-2], args[-1]

        @pl.when(pl.program_id(2) == 0)
        def _init():
            acc_ref[...] = jnp.zeros_like(acc_ref)

        total = jnp.dot(refs[0][...], refs[1][...],
                        preferred_element_type=jnp.float32)
        for p in range(1, n_pairs):
            total += jnp.dot(refs[2 * p][...], refs[2 * p + 1][...],
                             preferred_element_type=jnp.float32)
        acc_ref[...] += total

        @pl.when(pl.program_id(2) == pl.num_programs(2) - 1)
        def _fin():
            r = acc_ref[...]
            if has_bias:
                r = r + refs[-1][...]            # (1, tn) f32 bias, epilogue add
            if activation == "tanh":
                r = jnp.tanh(r)
            o_ref[...] = r.astype(o_ref.dtype)

    return kernel


def _pallas_matmul_impl(pairs, bias=None, tanh=False, out_dtype=jnp.float32,
                        tm=256, tn=512, tk=512):
    M, K = pairs[0][0].shape
    N = pairs[0][1].shape[1]
    for x, w in pairs:
        assert x.shape == (M, K) and w.shape == (K, N)

    tm = tm if M >= tm else _round_up(M, 16)
    tn = tn if N >= tn else _round_up(N, 128)
    tk = tk if K >= tk else _round_up(K, 128)
    Mp, Np, Kp = _round_up(M, tm), _round_up(N, tn), _round_up(K, tk)

    args, in_specs = [], []
    for x, w in pairs:
        if (Mp, Kp) != (M, K):
            x = jnp.pad(x, ((0, Mp - M), (0, Kp - K)))
        if (Kp, Np) != (K, N):
            w = jnp.pad(w, ((0, Kp - K), (0, Np - N)))
        args += [x, w]
        in_specs += [pl.BlockSpec((tm, tk), lambda i, j, k: (i, k)),
                     pl.BlockSpec((tk, tn), lambda i, j, k: (k, j))]
    has_bias = bias is not None
    if has_bias:
        if bias.shape[1] != Np:
            bias = jnp.pad(bias, ((0, 0), (0, Np - N)))
        args.append(bias)
        in_specs.append(pl.BlockSpec((1, tn), lambda i, j, k: (0, j)))

    kernel = _make_mm_kernel(len(pairs), has_bias, "tanh" if tanh else None)
    out = pl.pallas_call(
        kernel,
        out_shape=jax.ShapeDtypeStruct((Mp, Np), out_dtype),
        grid_spec=pltpu.PrefetchScalarGridSpec(
            num_scalar_prefetch=0,
            grid=(Mp // tm, Np // tn, Kp // tk),
            in_specs=in_specs,
            out_specs=pl.BlockSpec((tm, tn), lambda i, j, k: (i, j)),
            scratch_shapes=[pltpu.VMEM((tm, tn), jnp.float32)]),
        compiler_params=pltpu.CompilerParams(
            dimension_semantics=("parallel", "parallel", "arbitrary"),
            vmem_limit_bytes=_vmem_limit_bytes()),
    )(*args)
    if (Mp, Np) != (M, N):
        out = out[:M, :N]
    return out


def pallas_matmul(x, w, *, bias=None, tanh=False, out_dtype=jnp.float32,
                  tm=256, tn=512, tk=512):
    return _pallas_matmul_impl([(x, w)], bias=bias, tanh=tanh,
                               out_dtype=out_dtype, tm=tm, tn=tn, tk=tk)


def pallas_matmul2(x1, w1, x2, w2, *, bias=None, tanh=False,
                   out_dtype=jnp.float32, tm=256, tn=512, tk=512):
    """x1 @ w1 + x2 @ w2 — replaces lane-axis concats for the 2H-input Linears."""
    return _pallas_matmul_impl([(x1, w1), (x2, w2)], bias=bias, tanh=tanh,
                               out_dtype=out_dtype, tm=tm, tn=tn, tk=tk)


# ----------------------------------------------------------------------------
# LSTM cell helper: gate layout [i | f | o | g] (single sigmoid over 3H).
# ----------------------------------------------------------------------------
def _lstm_cell(gates_f32, h_prev, c_prev, H):
    sig = jax.nn.sigmoid(gates_f32[:, :3 * H])
    i = sig[:, 0 * H:1 * H]
    f = sig[:, 1 * H:2 * H]
    o = sig[:, 2 * H:3 * H]
    g = jnp.tanh(gates_f32[:, 3 * H:4 * H])
    c_new = f * c_prev + i * g
    h_new = o * jnp.tanh(c_new)
    return h_new, c_new


# ----------------------------------------------------------------------------
# Bidirectional LSTM encoder (recurrence only; x@Wih + b hoisted outside).
#   gx   : (Ts, B, 8H)  bf16, fwd gates in [:4H], bwd gates in [4H:]
#   lens : (B, 1) int32 source lengths (packed-seq masking)
#   out  : (Ts, B, H) bf16 fwd / bwd hidden states (zero at padding)
# ----------------------------------------------------------------------------
def _encoder_bilstm_kernel(gx_ref, len_ref, whh_f_ref, whh_b_ref,
                           out_f_ref, out_b_ref):
    T, Bt, _ = gx_ref.shape
    H = whh_f_ref.shape[0]
    H4 = 4 * H

    lens = len_ref[...]                              # (Bt, 1)
    whh_f = whh_f_ref[...]                           # (H, 4H) bf16
    whh_b = whh_b_ref[...]

    def cell(gx_bf16, h, c, whh):
        gates = gx_bf16.astype(jnp.float32) + jnp.dot(
            h.astype(jnp.bfloat16), whh, preferred_element_type=jnp.float32)
        return _lstm_cell(gates, h, c, H)

    def body(t, carry):
        h_f, c_f, h_b, c_b = carry

        # forward direction
        hf_new, cf_new = cell(gx_ref[t][:, :H4], h_f, c_f, whh_f)
        mask_f = t < lens
        h_f = jnp.where(mask_f, hf_new, h_f)
        c_f = jnp.where(mask_f, cf_new, c_f)
        out_f_ref[t] = jnp.where(mask_f, hf_new, 0.0).astype(out_f_ref.dtype)

        # backward direction (packed semantics: state stays zero past each length)
        tb = T - 1 - t
        hb_new, cb_new = cell(gx_ref[tb][:, H4:], h_b, c_b, whh_b)
        mask_b = tb < lens
        h_b = jnp.where(mask_b, hb_new, h_b)
        c_b = jnp.where(mask_b, cb_new, c_b)
        out_b_ref[tb] = jnp.where(mask_b, hb_new, 0.0).astype(out_b_ref.dtype)

        return h_f, c_f, h_b, c_b

    zeros = jnp.zeros((Bt, H), jnp.float32)
    lax.fori_loop(0, T, body, (zeros, zeros, zeros, zeros))


def encoder_bilstm(gx, lens_b1, whh_f, whh_b):
    Ts, B, G8 = gx.shape
    H = whh_f.shape[0]
    # VMEM-aware batch tile (double-buffered gx + two bf16 outputs per element)
    per_elem = 2 * (Ts * G8 * 2) + 2 * (2 * Ts * H * 2) + 512
    fixed = 2 * 2 * (H * 4 * H * 2) + 65536
    Bt = _pick_batch_tile(B, per_elem, max(_tile_budget_bytes() - fixed, 0))
    return pl.pallas_call(
        _encoder_bilstm_kernel,
        out_shape=(jax.ShapeDtypeStruct((Ts, B, H), jnp.bfloat16),
                   jax.ShapeDtypeStruct((Ts, B, H), jnp.bfloat16)),
        grid_spec=pltpu.PrefetchScalarGridSpec(
            num_scalar_prefetch=0,
            grid=(B // Bt,),
            in_specs=[
                pl.BlockSpec((Ts, Bt, G8), lambda b: (0, b, 0)),
                pl.BlockSpec((Bt, 1), lambda b: (b, 0)),
                pl.BlockSpec((H, 4 * H), lambda b: (0, 0)),
                pl.BlockSpec((H, 4 * H), lambda b: (0, 0)),
            ],
            out_specs=(pl.BlockSpec((Ts, Bt, H), lambda b: (0, b, 0)),
                       pl.BlockSpec((Ts, Bt, H), lambda b: (0, b, 0))),
        ),
        compiler_params=pltpu.CompilerParams(
            dimension_semantics=("parallel",),
            vmem_limit_bytes=_vmem_limit_bytes()),
    )(gx, lens_b1, whh_f, whh_b)


# ----------------------------------------------------------------------------
# Decoder LSTM recurrence only (attention hoisted out of the time loop).
#   gx  : (Tt, B, 4Dt) bf16 precomputed input-to-gate activations (bias folded)
#   out : (Tt, B, Dt)  bf16 hidden states h_t
# ----------------------------------------------------------------------------
def _decoder_lstm_kernel(gx_ref, h0_ref, c0_ref, whh_ref, out_ref):
    Tt, Bt, _ = gx_ref.shape
    Dt = h0_ref.shape[1]
    whh = whh_ref[...]                               # (Dt, 4Dt) bf16

    def body(t, carry):
        h, c = carry
        gates = gx_ref[t].astype(jnp.float32) + jnp.dot(
            h.astype(jnp.bfloat16), whh, preferred_element_type=jnp.float32)
        h_new, c_new = _lstm_cell(gates, h, c, Dt)
        out_ref[t] = h_new.astype(out_ref.dtype)
        return h_new, c_new

    lax.fori_loop(0, Tt, body, (h0_ref[...], c0_ref[...]))


def decoder_lstm(gx, h0, c0, whh):
    Tt, B, G4 = gx.shape
    Dt = h0.shape[1]
    per_elem = 2 * (Tt * G4 * 2) + 2 * (Tt * Dt * 2) + 2 * (2 * Dt * 4) + 512
    fixed = 2 * (Dt * 4 * Dt * 2) + 65536
    Bt = _pick_batch_tile(B, per_elem, max(_tile_budget_bytes() - fixed, 0))
    return pl.pallas_call(
        _decoder_lstm_kernel,
        out_shape=jax.ShapeDtypeStruct((Tt, B, Dt), jnp.bfloat16),
        grid_spec=pltpu.PrefetchScalarGridSpec(
            num_scalar_prefetch=0,
            grid=(B // Bt,),
            in_specs=[
                pl.BlockSpec((Tt, Bt, G4), lambda b: (0, b, 0)),
                pl.BlockSpec((Bt, Dt), lambda b: (b, 0)),
                pl.BlockSpec((Bt, Dt), lambda b: (b, 0)),
                pl.BlockSpec((Dt, 4 * Dt), lambda b: (0, 0)),
            ],
            out_specs=pl.BlockSpec((Tt, Bt, Dt), lambda b: (0, b, 0)),
        ),
        compiler_params=pltpu.CompilerParams(
            dimension_semantics=("parallel",),
            vmem_limit_bytes=_vmem_limit_bytes()),
    )(gx, h0, c0, whh)


# ----------------------------------------------------------------------------
# Hoisted Luong dot attention: all Tt queries at once per batch tile (MXU).
#   h   : (B, Tt, Dt) bf16     ctx : (B, Ts, Dt) bf16     lens : (B, 1) int32
#   out : (B, Tt, Dt) bf16 attention context vectors
# ----------------------------------------------------------------------------
def _attention_kernel(h_ref, ctx_ref, len_ref, out_ref):
    Bt, Tt, Dt = h_ref.shape
    Ts = ctx_ref.shape[1]

    h = h_ref[...]
    ctx = ctx_ref[...]
    lens = len_ref[...]                                          # (Bt, 1)

    s = jnp.einsum('bqd,bsd->bqs', h, ctx,
                   preferred_element_type=jnp.float32)           # (Bt, Tt, Ts)
    pos = lax.broadcasted_iota(jnp.int32, (Bt, 1, Ts), 2)
    mask = pos < lens[:, :, None]                                # (Bt, 1, Ts)
    s = jnp.where(mask, s, -1e30)
    s = s - jnp.max(s, axis=-1, keepdims=True)
    e = jnp.exp(s)
    attn = e * pl.reciprocal(jnp.sum(e, axis=-1, keepdims=True), approx=True)
    ctx_vec = jnp.einsum('bqs,bsd->bqd', attn.astype(ctx.dtype), ctx,
                         preferred_element_type=jnp.float32)     # (Bt, Tt, Dt)
    out_ref[...] = ctx_vec.astype(out_ref.dtype)


def attention(h_b, ctx_b, lens_b1):
    B, Tt, Dt = h_b.shape
    Ts = ctx_b.shape[1]
    per_elem = 2 * 2 * (Tt * Dt + Ts * Dt + Tt * Dt) + 12 * Tt * Ts + 1024
    Bt = _pick_batch_tile(B, per_elem, _tile_budget_bytes())
    return pl.pallas_call(
        _attention_kernel,
        out_shape=jax.ShapeDtypeStruct((B, Tt, Dt), jnp.bfloat16),
        grid_spec=pltpu.PrefetchScalarGridSpec(
            num_scalar_prefetch=0,
            grid=(B // Bt,),
            in_specs=[
                pl.BlockSpec((Bt, Tt, Dt), lambda b: (b, 0, 0)),
                pl.BlockSpec((Bt, Ts, Dt), lambda b: (b, 0, 0)),
                pl.BlockSpec((Bt, 1), lambda b: (b, 0)),
            ],
            out_specs=pl.BlockSpec((Bt, Tt, Dt), lambda b: (b, 0, 0)),
        ),
        compiler_params=pltpu.CompilerParams(
            dimension_semantics=("parallel",),
            vmem_limit_bytes=_vmem_limit_bytes()),
    )(h_b, ctx_b, lens_b1)


# ----------------------------------------------------------------------------
# Full forward pass (glue in plain JAX, hot path in Pallas kernels).
# ----------------------------------------------------------------------------
@jax.jit
def seq2seq_forward(params, input_src, input_src_len, input_trg):
    B, Ts = input_src.shape
    _, Tt = input_trg.shape
    emb = params["embedding"].astype(jnp.bfloat16)               # (V, E)
    E = emb.shape[1]
    H = params["enc_whh_f"].shape[0]
    Dt = params["dec_whh"].shape[0]
    bf = lambda name: params[name].astype(jnp.bfloat16)

    # shared embedding lookups, gathered directly into time-major layout
    src_emb_t = emb[input_src.T]                                 # (Ts, B, E)
    trg_emb_t = emb[input_trg.T]                                 # (Tt, B, E)
    lens_b1 = input_src_len.reshape(B, 1).astype(jnp.int32)

    # hoisted input->gate projections: one fused (E, 8H) matmul for both encoder
    # directions (src embeddings read from HBM once), bias folded into epilogue.
    gx_src = pallas_matmul(src_emb_t.reshape(Ts * B, E), bf("enc_wih"),
                           bias=params["enc_b"],
                           out_dtype=jnp.bfloat16).reshape(Ts, B, 8 * H)
    gx_dec = pallas_matmul(trg_emb_t.reshape(Tt * B, E), bf("dec_wih"),
                           bias=params["dec_b"],
                           out_dtype=jnp.bfloat16).reshape(Tt, B, 4 * Dt)

    # bidirectional encoder recurrence
    out_f, out_b = encoder_bilstm(gx_src, lens_b1,
                                  bf("enc_whh_f"), bf("enc_whh_b"))  # (Ts,B,H)

    # bridge: src_h[b, len-1] (exactly the reference's src_h[idx][one_len-1]),
    # split into fwd/bwd halves so no 2H concat is materialized.
    last = input_src_len.astype(jnp.int32) - 1
    bidx = jnp.arange(B)
    hm_f = out_f[last, bidx, :]                                   # (B, H)
    hm_b = out_b[last, bidx, :]                                   # (B, H)
    decoder_h_0 = pallas_matmul2(hm_f, bf("w_hm_f"), hm_b, bf("w_hm_b"),
                                 tanh=True, out_dtype=jnp.float32)  # (B, Dt)
    decoder_c_0 = jnp.zeros((B, Dt), jnp.float32)

    # ctx = encoder2decoder_ctx(src_h), 2H input split into fwd/bwd halves
    ctx2d = pallas_matmul2(out_f.reshape(Ts * B, H), bf("w_ctx_f"),
                           out_b.reshape(Ts * B, H), bf("w_ctx_b"),
                           out_dtype=jnp.bfloat16)                # (Ts*B, Dt)
    ctx_b = jnp.transpose(ctx2d.reshape(Ts, B, Dt), (1, 0, 2))    # (B, Ts, Dt)

    # decoder recurrence (LSTM only), then hoisted batched attention
    h_all_t = decoder_lstm(gx_dec, decoder_h_0, decoder_c_0,
                           bf("dec_whh"))                         # (Tt, B, Dt)
    h_all_b = jnp.transpose(h_all_t, (1, 0, 2))                   # (B, Tt, Dt)
    ctx_vec_b = attention(h_all_b, ctx_b, lens_b1)                # (B, Tt, Dt)

    # h_tilde = tanh(Wc [ctx_vec; h]) as one tiled matmul over all Tt*B rows
    h_tilde = pallas_matmul2(ctx_vec_b.reshape(B * Tt, Dt), bf("dec_wc_ctx"),
                             h_all_b.reshape(B * Tt, Dt), bf("dec_wc_h"),
                             tanh=True, out_dtype=jnp.bfloat16)   # (B*Tt, Dt)

    # decoder2vocab (batch-major rows so logits reshape directly to (B, Tt, V))
    V = params["w_dec2vocab"].shape[-1]
    logits = pallas_matmul(h_tilde, bf("w_dec2vocab"),
                           out_dtype=jnp.float32, tn=1024, tk=512)
    return logits.reshape(B, Tt, V)


# ----------------------------------------------------------------------------
# Deterministic parameter construction.
#   * weights stored (in, out); bias-free projections as in the reference
#   * Linear(2H, Dt) weights pre-split into fwd/bwd halves (no concat needed)
#   * encoder input-gate weights for both directions fused along N -> (E, 8H)
#   * LSTM gate layout [i | f | o | g]; b = b_ih + b_hh folded into one bias
# ----------------------------------------------------------------------------
def make_params(key, *, vocab_size, emb_dim, src_hidden_dim, trg_hidden_dim):
    keys = jax.random.split(key, 16)

    def uni(k, shape, bound):
        return jax.random.uniform(k, shape, jnp.float32, -bound, bound)

    H, Dt, E, V = src_hidden_dim, trg_hidden_dim, emb_dim, vocab_size
    ks = H ** -0.5
    kd = Dt ** -0.5
    k2h = (2 * H) ** -0.5
    k2d = (2 * Dt) ** -0.5

    return {
        "embedding":   uni(keys[0], (V, E), 0.1),
        # encoder BiLSTM: fused fwd|bwd input-gate weights, per-direction Whh
        "enc_wih":     uni(keys[1], (E, 8 * H), ks),
        "enc_b":       uni(keys[2], (1, 8 * H), ks),
        "enc_whh_f":   uni(keys[3], (H, 4 * H), ks),
        "enc_whh_b":   uni(keys[4], (H, 4 * H), ks),
        # bridge / projection linears, split along the concatenated 2H input
        "w_hm_f":      uni(keys[5], (H, Dt), k2h),
        "w_hm_b":      uni(keys[6], (H, Dt), k2h),
        "w_ctx_f":     uni(keys[7], (H, Dt), k2h),
        "w_ctx_b":     uni(keys[8], (H, Dt), k2h),
        "w_dec2vocab": uni(keys[9], (Dt, V), kd),
        # attention decoder LSTM cell + output combiner Wc split into [ctx | h]
        "dec_wih":     uni(keys[10], (E, 4 * Dt), kd),
        "dec_whh":     uni(keys[11], (Dt, 4 * Dt), kd),
        "dec_b":       uni(keys[12], (1, 4 * Dt), kd),
        "dec_wc_ctx":  uni(keys[13], (Dt, Dt), k2d),
        "dec_wc_h":    uni(keys[14], (Dt, Dt), k2d),
    }


if __name__ == "__main__":
    # small deterministic config; hidden dims chosen lane-aligned (4H = 512)
    VOCAB = 1024
    EMB = 128
    SRC_HID = 128    # per-direction -> src_h last dim = 256
    TRG_HID = 128
    B, TS, TT = 2, 8, 8

    key = jax.random.PRNGKey(0)
    kp, k1, k2 = jax.random.split(key, 3)

    params = make_params(kp, vocab_size=VOCAB, emb_dim=EMB,
                         src_hidden_dim=SRC_HID, trg_hidden_dim=TRG_HID)

    input_src = jax.random.randint(k1, (B, TS), 0, VOCAB, dtype=jnp.int32)
    input_trg = jax.random.randint(k2, (B, TT), 0, VOCAB, dtype=jnp.int32)
    input_src_len = jnp.array([TS, 5], dtype=jnp.int32)

    logits = seq2seq_forward(params, input_src, input_src_len, input_trg)
    logits = jax.block_until_ready(logits)

    assert logits.shape == (B, TT, VOCAB), logits.shape
    assert bool(jnp.all(jnp.isfinite(logits)))
    print("KERNEL_OK")
</pallas_src>

<mosaic_0001>
module attributes {stable_mosaic.version = 11 : i64} {
  func.func @kernel(%arg0: i32, %arg1: i32, %arg2: i32, %arg3: memref<16x128xbf16, #tpu.memory_space<vmem>>, %arg4: memref<128x512xbf16, #tpu.memory_space<vmem>>, %arg5: memref<1x512xf32, #tpu.memory_space<vmem>>, %arg6: memref<16x512xbf16, #tpu.memory_space<vmem>>, %arg7: memref<16x512xf32, #tpu.memory_space<vmem>>) attributes {dimension_semantics = [#tpu.dimension_semantics<parallel>, #tpu.dimension_semantics<parallel>, #tpu.dimension_semantics<arbitrary>], iteration_bounds = array<i64: 1, 1, 1>, scalar_prefetch = 0 : i64, scratch_operands = 1 : i64, tpu.core_type = #tpu.core_type<tc>, window_params = [{transform_indices = @transform_0, window_bounds = array<i64: 16, 128>}, {transform_indices = @transform_1, window_bounds = array<i64: 128, 512>}, {transform_indices = @transform_2, window_bounds = array<i64: 1, 512>}, {transform_indices = @transform_3, window_bounds = array<i64: 16, 512>}]} {
    %c0_i32 = arith.constant 0 : i32
    %0 = arith.cmpi eq, %arg2, %c0_i32 : i32
    %1 = arith.extui %0 : i1 to i32
    %c0_i32_0 = arith.constant 0 : i32
    %2 = arith.cmpi ne, %1, %c0_i32_0 : i32
    scf.if %2 {
      %cst_10 = arith.constant 0.000000e+00 : f32
      %12 = vector.broadcast %cst_10 : f32 to vector<16x512xf32>
      %c0_11 = arith.constant 0 : index
      %c0_12 = arith.constant 0 : index
      %13 = vector.load %arg7[%c0_11, %c0_12] : memref<16x512xf32, #tpu.memory_space<vmem>>, vector<16x512xf32>
      tpu.vector_store %arg7[%c0_11, %c0_12], %12 {strides = array<i32>} : memref<16x512xf32, #tpu.memory_space<vmem>>, vector<16x512xf32>,
    } else {
    }
    %c0 = arith.constant 0 : index
    %c0_1 = arith.constant 0 : index
    %3 = vector.load %arg3[%c0, %c0_1] : memref<16x128xbf16, #tpu.memory_space<vmem>>, vector<16x128xbf16>
    %c0_2 = arith.constant 0 : index
    %c0_3 = arith.constant 0 : index
    %4 = vector.load %arg4[%c0_2, %c0_3] : memref<128x512xbf16, #tpu.memory_space<vmem>>, vector<128x512xbf16>
    %cst = arith.constant dense<0.000000e+00> : vector<16x512xf32>
    %5 = tpu.matmul %3, %4, %cst {dimension_numbers = #tpu.dot_dimension_numbers<[1], [0], [0], [1], [0, 0, 1, 1], [], []>} : vector<16x128xbf16>, vector<128x512xbf16>, vector<16x512xf32> -> vector<16x512xf32>
    %c0_4 = arith.constant 0 : index
    %c0_5 = arith.constant 0 : index
    %6 = vector.load %arg7[%c0_4, %c0_5] : memref<16x512xf32, #tpu.memory_space<vmem>>, vector<16x512xf32>
    %7 = arith.addf %6, %5 : vector<16x512xf32>
    %c0_6 = arith.constant 0 : index
    %c0_7 = arith.constant 0 : index
    %8 = vector.load %arg7[%c0_6, %c0_7] : memref<16x512xf32, #tpu.memory_space<vmem>>, vector<16x512xf32>
    tpu.vector_store %arg7[%c0_6, %c0_7], %7 {strides = array<i32>} : memref<16x512xf32, #tpu.memory_space<vmem>>, vector<16x512xf32>,
    %c0_i32_8 = arith.constant 0 : i32
    %9 = arith.cmpi eq, %arg2, %c0_i32_8 : i32
    %10 = arith.extui %9 : i1 to i32
    %c0_i32_9 = arith.constant 0 : i32
    %11 = arith.cmpi ne, %10, %c0_i32_9 : i32
    scf.if %11 {
      %c0_10 = arith.constant 0 : index
      %c0_11 = arith.constant 0 : index
      %12 = vector.load %arg7[%c0_10, %c0_11] : memref<16x512xf32, #tpu.memory_space<vmem>>, vector<16x512xf32>
      %c0_12 = arith.constant 0 : index
      %c0_13 = arith.constant 0 : index
      %13 = vector.load %arg5[%c0_12, %c0_13] : memref<1x512xf32, #tpu.memory_space<vmem>>, vector<1x512xf32>
      %14 = vector.broadcast %13 : vector<1x512xf32> to vector<16x512xf32>
      %15 = arith.addf %12, %14 : vector<16x512xf32>
      %16 = arith.truncf %15 : vector<16x512xf32> to vector<16x512xbf16>
      %c0_14 = arith.constant 0 : index
      %c0_15 = arith.constant 0 : index
      %17 = vector.load %arg6[%c0_14, %c0_15] : memref<16x512xbf16, #tpu.memory_space<vmem>>, vector<16x512xbf16>
      tpu.vector_store %arg6[%c0_14, %c0_15], %16 {strides = array<i32>} : memref<16x512xbf16, #tpu.memory_space<vmem>>, vector<16x512xbf16>,
    } else {
    }
    return
  }
  func.func @transform_0(%arg0: i32, %arg1: i32, %arg2: i32) -> (i32, i32) {
    %c0_i32 = arith.constant 0 : i32
    return %arg0, %arg2 : i32, i32
  }
  func.func @transform_1(%arg0: i32, %arg1: i32, %arg2: i32) -> (i32, i32) {
    %c0_i32 = arith.constant 0 : i32
    return %arg2, %arg1 : i32, i32
  }
  func.func @transform_2(%arg0: i32, %arg1: i32, %arg2: i32) -> (i32, i32) {
    %c0_i32 = arith.constant 0 : i32
    %c0_i32_0 = arith.constant 0 : i32
    return %c0_i32, %arg1 : i32, i32
  }
  func.func @transform_3(%arg0: i32, %arg1: i32, %arg2: i32) -> (i32, i32) {
    %c0_i32 = arith.constant 0 : i32
    return %arg0, %arg1 : i32, i32
  }
}

module attributes {stable_mosaic.version = 11 : i64} {
  func.func @kernel(%arg0: i32, %arg1: i32, %arg2: i32, %arg3: memref<16x128xbf16, #tpu.memory_space<vmem>>, %arg4: memref<128x512xbf16, #tpu.memory_space<vmem>>, %arg5: memref<1x512xf32, #tpu.memory_space<vmem>>, %arg6: memref<16x512xbf16, #tpu.memory_space<vmem>>, %arg7: memref<16x512xf32, #tpu.memory_space<vmem>>) attributes {dimension_semantics = [#tpu.dimension_semantics<parallel>, #tpu.dimension_semantics<parallel>, #tpu.dimension_semantics<arbitrary>], iteration_bounds = array<i64: 1, 2, 1>, scalar_prefetch = 0 : i64, scratch_operands = 1 : i64, tpu.core_type = #tpu.core_type<tc>, window_params = [{transform_indices = @transform_0, window_bounds = array<i64: 16, 128>}, {transform_indices = @transform_1, window_bounds = array<i64: 128, 512>}, {transform_indices = @transform_2, window_bounds = array<i64: 1, 512>}, {transform_indices = @transform_3, window_bounds = array<i64: 16, 512>}]} {
    %c0_i32 = arith.constant 0 : i32
    %0 = arith.cmpi eq, %arg2, %c0_i32 : i32
    %1 = arith.extui %0 : i1 to i32
    %c0_i32_0 = arith.constant 0 : i32
    %2 = arith.cmpi ne, %1, %c0_i32_0 : i32
    scf.if %2 {
      %cst_10 = arith.constant 0.000000e+00 : f32
      %12 = vector.broadcast %cst_10 : f32 to vector<16x512xf32>
      %c0_11 = arith.constant 0 : index
      %c0_12 = arith.constant 0 : index
      %13 = vector.load %arg7[%c0_11, %c0_12] : memref<16x512xf32, #tpu.memory_space<vmem>>, vector<16x512xf32>
      tpu.vector_store %arg7[%c0_11, %c0_12], %12 {strides = array<i32>} : memref<16x512xf32, #tpu.memory_space<vmem>>, vector<16x512xf32>,
    } else {
    }
    %c0 = arith.constant 0 : index
    %c0_1 = arith.constant 0 : index
    %3 = vector.load %arg3[%c0, %c0_1] : memref<16x128xbf16, #tpu.memory_space<vmem>>, vector<16x128xbf16>
    %c0_2 = arith.constant 0 : index
    %c0_3 = arith.constant 0 : index
    %4 = vector.load %arg4[%c0_2, %c0_3] : memref<128x512xbf16, #tpu.memory_space<vmem>>, vector<128x512xbf16>
    %cst = arith.constant dense<0.000000e+00> : vector<16x512xf32>
    %5 = tpu.matmul %3, %4, %cst {dimension_numbers = #tpu.dot_dimension_numbers<[1], [0], [0], [1], [0, 0, 1, 1], [], []>} : vector<16x128xbf16>, vector<128x512xbf16>, vector<16x512xf32> -> vector<16x512xf32>
    %c0_4 = arith.constant 0 : index
    %c0_5 = arith.constant 0 : index
    %6 = vector.load %arg7[%c0_4, %c0_5] : memref<16x512xf32, #tpu.memory_space<vmem>>, vector<16x512xf32>
    %7 = arith.addf %6, %5 : vector<16x512xf32>
    %c0_6 = arith.constant 0 : index
    %c0_7 = arith.constant 0 : index
    %8 = vector.load %arg7[%c0_6, %c0_7] : memref<16x512xf32, #tpu.memory_space<vmem>>, vector<16x512xf32>
    tpu.vector_store %arg7[%c0_6, %c0_7], %7 {strides = array<i32>} : memref<16x512xf32, #tpu.memory_space<vmem>>, vector<16x512xf32>,
    %c0_i32_8 = arith.constant 0 : i32
    %9 = arith.cmpi eq, %arg2, %c0_i32_8 : i32
    %10 = arith.extui %9 : i1 to i32
    %c0_i32_9 = arith.constant 0 : i32
    %11 = arith.cmpi ne, %10, %c0_i32_9 : i32
    scf.if %11 {
      %c0_10 = arith.constant 0 : index
      %c0_11 = arith.constant 0 : index
      %12 = vector.load %arg7[%c0_10, %c0_11] : memref<16x512xf32, #tpu.memory_space<vmem>>, vector<16x512xf32>
      %c0_12 = arith.constant 0 : index
      %c0_13 = arith.constant 0 : index
      %13 = vector.load %arg5[%c0_12, %c0_13] : memref<1x512xf32, #tpu.memory_space<vmem>>, vector<1x512xf32>
      %14 = vector.broadcast %13 : vector<1x512xf32> to vector<16x512xf32>
      %15 = arith.addf %12, %14 : vector<16x512xf32>
      %16 = arith.truncf %15 : vector<16x512xf32> to vector<16x512xbf16>
      %c0_14 = arith.constant 0 : index
      %c0_15 = arith.constant 0 : index
      %17 = vector.load %arg6[%c0_14, %c0_15] : memref<16x512xbf16, #tpu.memory_space<vmem>>, vector<16x512xbf16>
      tpu.vector_store %arg6[%c0_14, %c0_15], %16 {strides = array<i32>} : memref<16x512xbf16, #tpu.memory_space<vmem>>, vector<16x512xbf16>,
    } else {
    }
    return
  }
  func.func @transform_0(%arg0: i32, %arg1: i32, %arg2: i32) -> (i32, i32) {
    %c0_i32 = arith.constant 0 : i32
    return %arg0, %arg2 : i32, i32
  }
  func.func @transform_1(%arg0: i32, %arg1: i32, %arg2: i32) -> (i32, i32) {
    %c0_i32 = arith.constant 0 : i32
    return %arg2, %arg1 : i32, i32
  }
  func.func @transform_2(%arg0: i32, %arg1: i32, %arg2: i32) -> (i32, i32) {
    %c0_i32 = arith.constant 0 : i32
    %c0_i32_0 = arith.constant 0 : i32
    return %c0_i32, %arg1 : i32, i32
  }
  func.func @transform_3(%arg0: i32, %arg1: i32, %arg2: i32) -> (i32, i32) {
    %c0_i32 = arith.constant 0 : i32
    return %arg0, %arg1 : i32, i32
  }
}

module attributes {stable_mosaic.version = 11 : i64} {
  func.func @_encoder_bilstm_kernel(%arg0: i32, %arg1: memref<8x2x1024xbf16, #tpu.memory_space<vmem>>, %arg2: memref<2x1xi32, #tpu.memory_space<vmem>>, %arg3: memref<128x512xbf16, #tpu.memory_space<vmem>>, %arg4: memref<128x512xbf16, #tpu.memory_space<vmem>>, %arg5: memref<8x2x128xbf16, #tpu.memory_space<vmem>>, %arg6: memref<8x2x128xbf16, #tpu.memory_space<vmem>>) attributes {dimension_semantics = [#tpu.dimension_semantics<parallel>], iteration_bounds = array<i64: 1>, scalar_prefetch = 0 : i64, scratch_operands = 0 : i64, tpu.core_type = #tpu.core_type<tc>, window_params = [{transform_indices = @transform_0, window_bounds = array<i64: 8, 2, 1024>}, {transform_indices = @transform_1, window_bounds = array<i64: 2, 1>}, {pipeline_mode = #tpu.pipeline_mode<synchronous>, transform_indices = @transform_2, window_bounds = array<i64: 128, 512>}, {pipeline_mode = #tpu.pipeline_mode<synchronous>, transform_indices = @transform_3, window_bounds = array<i64: 128, 512>}, {transform_indices = @transform_4, window_bounds = array<i64: 8, 2, 128>}, {transform_indices = @transform_5, window_bounds = array<i64: 8, 2, 128>}]} {
    %c0 = arith.constant 0 : index
    %c0_0 = arith.constant 0 : index
    %0 = vector.load %arg2[%c0, %c0_0] : memref<2x1xi32, #tpu.memory_space<vmem>>, vector<2x1xi32>
    %c0_1 = arith.constant 0 : index
    %c0_2 = arith.constant 0 : index
    %1 = vector.load %arg3[%c0_1, %c0_2] : memref<128x512xbf16, #tpu.memory_space<vmem>>, vector<128x512xbf16>
    %c0_3 = arith.constant 0 : index
    %c0_4 = arith.constant 0 : index
    %2 = vector.load %arg4[%c0_3, %c0_4] : memref<128x512xbf16, #tpu.memory_space<vmem>>, vector<128x512xbf16>
    %cst = arith.constant 0.000000e+00 : f32
    %3 = vector.broadcast %cst : f32 to vector<2x128xf32>
    %c0_i32 = arith.constant 0 : i32
    %c8_i32 = arith.constant 8 : i32
    %4 = arith.addi %c0_i32, %c8_i32 : i32
    %c1_i32 = arith.constant 1 : i32
    %5:4 = scf.for %arg7 = %c0_i32 to %4 step %c1_i32 iter_args(%arg8 = %3, %arg9 = %3, %arg10 = %3, %arg11 = %3) -> (vector<2x128xf32>, vector<2x128xf32>, vector<2x128xf32>, vector<2x128xf32>)  : i32 {
      %6 = arith.index_cast %arg7 : i32 to index
      %c0_6 = arith.constant 0 : index
      %c0_7 = arith.constant 0 : index
      %7 = vector.load %arg1[%6, %c0_6, %c0_7] : memref<8x2x1024xbf16, #tpu.memory_space<vmem>>, vector<1x2x1024xbf16>
      %8 = vector.shape_cast %7 : vector<1x2x1024xbf16> to vector<2x1024xbf16>
      %9 = vector.extract_strided_slice %8 {offsets = [0, 0], sizes = [2, 512], strides = [1, 1]} : vector<2x1024xbf16> to vector<2x512xbf16>
      %10 = arith.extf %9 : vector<2x512xbf16> to vector<2x512xf32>
      %11 = arith.truncf %arg8 : vector<2x128xf32> to vector<2x128xbf16>
      %cst_8 = arith.constant dense<0.000000e+00> : vector<2x512xf32>
      %12 = tpu.matmul %11, %1, %cst_8 {dimension_numbers = #tpu.dot_dimension_numbers<[1], [0], [0], [1], [0, 0, 1, 1], [], []>} : vector<2x128xbf16>, vector<128x512xbf16>, vector<2x512xf32> -> vector<2x512xf32>
      %13 = arith.addf %10, %12 : vector<2x512xf32>
      %14 = vector.extract_strided_slice %13 {offsets = [0, 0], sizes = [2, 384], strides = [1, 1]} : vector<2x512xf32> to vector<2x384xf32>
      %15 = arith.negf %14 : vector<2x384xf32>
      %16 = math.exp %15 : vector<2x384xf32>
      %cst_9 = arith.constant 1.000000e+00 : f32
      %17 = vector.broadcast %cst_9 : f32 to vector<2x384xf32>
      %18 = arith.addf %17, %16 : vector<2x384xf32>
      %19 = arith.divf %17, %18 : vector<2x384xf32>
      %20 = vector.extract_strided_slice %19 {offsets = [0, 0], sizes = [2, 128], strides = [1, 1]} : vector<2x384xf32> to vector<2x128xf32>
      %21 = vector.extract_strided_slice %19 {offsets = [0, 128], sizes = [2, 128], strides = [1, 1]} : vector<2x384xf32> to vector<2x128xf32>
      %22 = vector.extract_strided_slice %19 {offsets = [0, 256], sizes = [2, 128], strides = [1, 1]} : vector<2x384xf32> to vector<2x128xf32>
      %23 = vector.extract_strided_slice %13 {offsets = [0, 384], sizes = [2, 128], strides = [1, 1]} : vector<2x512xf32> to vector<2x128xf32>
      %24 = math.tanh %23 : vector<2x128xf32>
      %25 = arith.mulf %21, %arg9 : vector<2x128xf32>
      %26 = arith.mulf %20, %24 : vector<2x128xf32>
      %27 = arith.addf %25, %26 : vector<2x128xf32>
      %28 = math.tanh %27 : vector<2x128xf32>
      %29 = arith.mulf %22, %28 : vector<2x128xf32>
      %30 = vector.broadcast %arg7 : i32 to vector<2x1xi32>
      %31 = arith.cmpi slt, %30, %0 : vector<2x1xi32>
      %32 = vector.shape_cast %31 : vector<2x1xi1> to vector<2x1xi1>
      %33 = vector.broadcast %32 : vector<2x1xi1> to vector<2x128xi1>
      %34 = arith.select %33, %29, %arg8 : vector<2x128xi1>, vector<2x128xf32>
      %35 = vector.shape_cast %31 : vector<2x1xi1> to vector<2x1xi1>
      %36 = vector.broadcast %35 : vector<2x1xi1> to vector<2x128xi1>
      %37 = arith.select %36, %27, %arg9 : vector<2x128xi1>, vector<2x128xf32>
      %cst_10 = arith.constant 0.000000e+00 : f32
      %38 = vector.shape_cast %31 : vector<2x1xi1> to vector<2x1xi1>
      %39 = vector.broadcast %38 : vector<2x1xi1> to vector<2x128xi1>
      %40 = vector.broadcast %cst_10 : f32 to vector<2x128xf32>
      %41 = arith.select %39, %29, %40 : vector<2x128xi1>, vector<2x128xf32>
      %42 = arith.truncf %41 : vector<2x128xf32> to vector<2x128xbf16>
      %43 = arith.index_cast %arg7 : i32 to index
      %c0_11 = arith.constant 0 : index
      %c0_12 = arith.constant 0 : index
      %44 = vector.load %arg5[%43, %c0_11, %c0_12] : memref<8x2x128xbf16, #tpu.memory_space<vmem>>, vector<1x2x128xbf16>
      %45 = vector.shape_cast %44 : vector<1x2x128xbf16> to vector<2x128xbf16>
      %46 = vector.shape_cast %42 : vector<2x128xbf16> to vector<1x2x128xbf16>
      tpu.vector_store %arg5[%43, %c0_11, %c0_12], %46 {strides = array<i32>} : memref<8x2x128xbf16, #tpu.memory_space<vmem>>, vector<1x2x128xbf16>,
      %c7_i32 = arith.constant 7 : i32
      %47 = arith.subi %c7_i32, %arg7 : i32
      %48 = arith.index_cast %47 : i32 to index
      %c0_13 = arith.constant 0 : index
      %c0_14 = arith.constant 0 : index
      %49 = vector.load %arg1[%48, %c0_13, %c0_14] : memref<8x2x1024xbf16, #tpu.memory_space<vmem>>, vector<1x2x1024xbf16>
      %50 = vector.shape_cast %49 : vector<1x2x1024xbf16> to vector<2x1024xbf16>
      %51 = vector.extract_strided_slice %50 {offsets = [0, 512], sizes = [2, 512], strides = [1, 1]} : vector<2x1024xbf16> to vector<2x512xbf16>
      %52 = arith.extf %51 : vector<2x512xbf16> to vector<2x512xf32>
      %53 = arith.truncf %arg10 : vector<2x128xf32> to vector<2x128xbf16>
      %cst_15 = arith.constant dense<0.000000e+00> : vector<2x512xf32>
      %54 = tpu.matmul %53, %2, %cst_15 {dimension_numbers = #tpu.dot_dimension_numbers<[1], [0], [0], [1], [0, 0, 1, 1], [], []>} : vector<2x128xbf16>, vector<128x512xbf16>, vector<2x512xf32> -> vector<2x512xf32>
      %55 = arith.addf %52, %54 : vector<2x512xf32>
      %56 = vector.extract_strided_slice %55 {offsets = [0, 0], sizes = [2, 384], strides = [1, 1]} : vector<2x512xf32> to vector<2x384xf32>
      %57 = arith.negf %56 : vector<2x384xf32>
      %58 = math.exp %57 : vector<2x384xf32>
      %cst_16 = arith.constant 1.000000e+00 : f32
      %59 = vector.broadcast %cst_16 : f32 to vector<2x384xf32>
      %60 = arith.addf %59, %58 : vector<2x384xf32>
      %61 = arith.divf %59, %60 : vector<2x384xf32>
      %62 = vector.extract_strided_slice %61 {offsets = [0, 0], sizes = [2, 128], strides = [1, 1]} : vector<2x384xf32> to vector<2x128xf32>
      %63 = vector.extract_strided_slice %61 {offsets = [0, 128], sizes = [2, 128], strides = [1, 1]} : vector<2x384xf32> to vector<2x128xf32>
      %64 = vector.extract_strided_slice %61 {offsets = [0, 256], sizes = [2, 128], strides = [1, 1]} : vector<2x384xf32> to vector<2x128xf32>
      %65 = vector.extract_strided_slice %55 {offsets = [0, 384], sizes = [2, 128], strides = [1, 1]} : vector<2x512xf32> to vector<2x128xf32>
      %66 = math.tanh %65 : vector<2x128xf32>
      %67 = arith.mulf %63, %arg11 : vector<2x128xf32>
      %68 = arith.mulf %62, %66 : vector<2x128xf32>
      %69 = arith.addf %67, %68 : vector<2x128xf32>
      %70 = math.tanh %69 : vector<2x128xf32>
      %71 = arith.mulf %64, %70 : vector<2x128xf32>
      %72 = vector.broadcast %47 : i32 to vector<2x1xi32>
      %73 = arith.cmpi slt, %72, %0 : vector<2x1xi32>
      %74 = vector.shape_cast %73 : vector<2x1xi1> to vector<2x1xi1>
      %75 = vector.broadcast %74 : vector<2x1xi1> to vector<2x128xi1>
      %76 = arith.select %75, %71, %arg10 : vector<2x128xi1>, vector<2x128xf32>
      %77 = vector.shape_cast %73 : vector<2x1xi1> to vector<2x1xi1>
      %78 = vector.broadcast %77 : vector<2x1xi1> to vector<2x128xi1>
      %79 = arith.select %78, %69, %arg11 : vector<2x128xi1>, vector<2x128xf32>
      %cst_17 = arith.constant 0.000000e+00 : f32
      %80 = vector.shape_cast %73 : vector<2x1xi1> to vector<2x1xi1>
      %81 = vector.broadcast %80 : vector<2x1xi1> to vector<2x128xi1>
      %82 = vector.broadcast %cst_17 : f32 to vector<2x128xf32>
      %83 = arith.select %81, %71, %82 : vector<2x128xi1>, vector<2x128xf32>
      %84 = arith.truncf %83 : vector<2x128xf32> to vector<2x128xbf16>
      %85 = arith.index_cast %47 : i32 to index
      %c0_18 = arith.constant 0 : index
      %c0_19 = arith.constant 0 : index
      %86 = vector.load %arg6[%85, %c0_18, %c0_19] : memref<8x2x128xbf16, #tpu.memory_space<vmem>>, vector<1x2x128xbf16>
      %87 = vector.shape_cast %86 : vector<1x2x128xbf16> to vector<2x128xbf16>
      %88 = vector.shape_cast %84 : vector<2x128xbf16> to vector<1x2x128xbf16>
      tpu.vector_store %arg6[%85, %c0_18, %c0_19], %88 {strides = array<i32>} : memref<8x2x128xbf16, #tpu.memory_space<vmem>>, vector<1x2x128xbf16>,
      scf.yield %34, %37, %76, %79 : vector<2x128xf32>, vector<2x128xf32>, vector<2x128xf32>, vector<2x128xf32>
    }
    %c8_i32_5 = arith.constant 8 : i32
    return
  }
  func.func @transform_0(%arg0: i32) -> (i32, i32, i32) {
    %c0_i32 = arith.constant 0 : i32
    %c0_i32_0 = arith.constant 0 : i32
    %c0_i32_1 = arith.constant 0 : i32
    return %c0_i32, %arg0, %c0_i32_0 : i32, i32, i32
  }
  func.func @transform_1(%arg0: i32) -> (i32, i32) {
    %c0_i32 = arith.constant 0 : i32
    %c0_i32_0 = arith.constant 0 : i32
    return %arg0, %c0_i32 : i32, i32
  }
  func.func @transform_2(%arg0: i32) -> (i32, i32) {
    %c0_i32 = arith.constant 0 : i32
    %c0_i32_0 = arith.constant 0 : i32
    %c0_i32_1 = arith.constant 0 : i32
    return %c0_i32, %c0_i32_0 : i32, i32
  }
  func.func @transform_3(%arg0: i32) -> (i32, i32) {
    %c0_i32 = arith.constant 0 : i32
    %c0_i32_0 = arith.constant 0 : i32
    %c0_i32_1 = arith.constant 0 : i32
    return %c0_i32, %c0_i32_0 : i32, i32
  }
  func.func @transform_4(%arg0: i32) -> (i32, i32, i32) {
    %c0_i32 = arith.constant 0 : i32
    %c0_i32_0 = arith.constant 0 : i32
    %c0_i32_1 = arith.constant 0 : i32
    return %c0_i32, %arg0, %c0_i32_0 : i32, i32, i32
  }
  func.func @transform_5(%arg0: i32) -> (i32, i32, i32) {
    %c0_i32 = arith.constant 0 : i32
    %c0_i32_0 = arith.constant 0 : i32
    %c0_i32_1 = arith.constant 0 : i32
    return %c0_i32, %arg0, %c0_i32_0 : i32, i32, i32
  }
}

module attributes {stable_mosaic.version = 11 : i64} {
  func.func @kernel(%arg0: i32, %arg1: i32, %arg2: i32, %arg3: memref<16x128xbf16, #tpu.memory_space<vmem>>, %arg4: memref<128x128xbf16, #tpu.memory_space<vmem>>, %arg5: memref<16x128xbf16, #tpu.memory_space<vmem>>, %arg6: memref<128x128xbf16, #tpu.memory_space<vmem>>, %arg7: memref<16x128xf32, #tpu.memory_space<vmem>>, %arg8: memref<16x128xf32, #tpu.memory_space<vmem>>) attributes {dimension_semantics = [#tpu.dimension_semantics<parallel>, #tpu.dimension_semantics<parallel>, #tpu.dimension_semantics<arbitrary>], iteration_bounds = array<i64: 1, 1, 1>, scalar_prefetch = 0 : i64, scratch_operands = 1 : i64, tpu.core_type = #tpu.core_type<tc>, window_params = [{transform_indices = @transform_0, window_bounds = array<i64: 16, 128>}, {transform_indices = @transform_1, window_bounds = array<i64: 128, 128>}, {transform_indices = @transform_2, window_bounds = array<i64: 16, 128>}, {transform_indices = @transform_3, window_bounds = array<i64: 128, 128>}, {transform_indices = @transform_4, window_bounds = array<i64: 16, 128>}]} {
    %c0_i32 = arith.constant 0 : i32
    %0 = arith.cmpi eq, %arg2, %c0_i32 : i32
    %1 = arith.extui %0 : i1 to i32
    %c0_i32_0 = arith.constant 0 : i32
    %2 = arith.cmpi ne, %1, %c0_i32_0 : i32
    scf.if %2 {
      %cst_15 = arith.constant 0.000000e+00 : f32
      %16 = vector.broadcast %cst_15 : f32 to vector<16x128xf32>
      %c0_16 = arith.constant 0 : index
      %c0_17 = arith.constant 0 : index
      %17 = vector.load %arg8[%c0_16, %c0_17] : memref<16x128xf32, #tpu.memory_space<vmem>>, vector<16x128xf32>
      tpu.vector_store %arg8[%c0_16, %c0_17], %16 {strides = array<i32>} : memref<16x128xf32, #tpu.memory_space<vmem>>, vector<16x128xf32>,
    } else {
    }
    %c0 = arith.constant 0 : index
    %c0_1 = arith.constant 0 : index
    %3 = vector.load %arg3[%c0, %c0_1] : memref<16x128xbf16, #tpu.memory_space<vmem>>, vector<16x128xbf16>
    %c0_2 = arith.constant 0 : index
    %c0_3 = arith.constant 0 : index
    %4 = vector.load %arg4[%c0_2, %c0_3] : memref<128x128xbf16, #tpu.memory_space<vmem>>, vector<128x128xbf16>
    %cst = arith.constant dense<0.000000e+00> : vector<16x128xf32>
    %5 = tpu.matmul %3, %4, %cst {dimension_numbers = #tpu.dot_dimension_numbers<[1], [0], [0], [1], [0, 0, 1, 1], [], []>} : vector<16x128xbf16>, vector<128x128xbf16>, vector<16x128xf32> -> vector<16x128xf32>
    %c0_4 = arith.constant 0 : index
    %c0_5 = arith.constant 0 : index
    %6 = vector.load %arg5[%c0_4, %c0_5] : memref<16x128xbf16, #tpu.memory_space<vmem>>, vector<16x128xbf16>
    %c0_6 = arith.constant 0 : index
    %c0_7 = arith.constant 0 : index
    %7 = vector.load %arg6[%c0_6, %c0_7] : memref<128x128xbf16, #tpu.memory_space<vmem>>, vector<128x128xbf16>
    %cst_8 = arith.constant dense<0.000000e+00> : vector<16x128xf32>
    %8 = tpu.matmul %6, %7, %cst_8 {dimension_numbers = #tpu.dot_dimension_numbers<[1], [0], [0], [1], [0, 0, 1, 1], [], []>} : vector<16x128xbf16>, vector<128x128xbf16>, vector<16x128xf32> -> vector<16x128xf32>
    %9 = arith.addf %5, %8 : vector<16x128xf32>
    %c0_9 = arith.constant 0 : index
    %c0_10 = arith.constant 0 : index
    %10 = vector.load %arg8[%c0_9, %c0_10] : memref<16x128xf32, #tpu.memory_space<vmem>>, vector<16x128xf32>
    %11 = arith.addf %10, %9 : vector<16x128xf32>
    %c0_11 = arith.constant 0 : index
    %c0_12 = arith.constant 0 : index
    %12 = vector.load %arg8[%c0_11, %c0_12] : memref<16x128xf32, #tpu.memory_space<vmem>>, vector<16x128xf32>
    tpu.vector_store %arg8[%c0_11, %c0_12], %11 {strides = array<i32>} : memref<16x128xf32, #tpu.memory_space<vmem>>, vector<16x128xf32>,
    %c0_i32_13 = arith.constant 0 : i32
    %13 = arith.cmpi eq, %arg2, %c0_i32_13 : i32
    %14 = arith.extui %13 : i1 to i32
    %c0_i32_14 = arith.constant 0 : i32
    %15 = arith.cmpi ne, %14, %c0_i32_14 : i32
    scf.if %15 {
      %c0_15 = arith.constant 0 : index
      %c0_16 = arith.constant 0 : index
      %16 = vector.load %arg8[%c0_15, %c0_16] : memref<16x128xf32, #tpu.memory_space<vmem>>, vector<16x128xf32>
      %17 = math.tanh %16 : vector<16x128xf32>
      %c0_17 = arith.constant 0 : index
      %c0_18 = arith.constant 0 : index
      %18 = vector.load %arg7[%c0_17, %c0_18] : memref<16x128xf32, #tpu.memory_space<vmem>>, vector<16x128xf32>
      tpu.vector_store %arg7[%c0_17, %c0_18], %17 {strides = array<i32>} : memref<16x128xf32, #tpu.memory_space<vmem>>, vector<16x128xf32>,
    } else {
    }
    return
  }
  func.func @transform_0(%arg0: i32, %arg1: i32, %arg2: i32) -> (i32, i32) {
    %c0_i32 = arith.constant 0 : i32
    return %arg0, %arg2 : i32, i32
  }
  func.func @transform_1(%arg0: i32, %arg1: i32, %arg2: i32) -> (i32, i32) {
    %c0_i32 = arith.constant 0 : i32
    return %arg2, %arg1 : i32, i32
  }
  func.func @transform_2(%arg0: i32, %arg1: i32, %arg2: i32) -> (i32, i32) {
    %c0_i32 = arith.constant 0 : i32
    return %arg0, %arg2 : i32, i32
  }
  func.func @transform_3(%arg0: i32, %arg1: i32, %arg2: i32) -> (i32, i32) {
    %c0_i32 = arith.constant 0 : i32
    return %arg2, %arg1 : i32, i32
  }
  func.func @transform_4(%arg0: i32, %arg1: i32, %arg2: i32) -> (i32, i32) {
    %c0_i32 = arith.constant 0 : i32
    return %arg0, %arg1 : i32, i32
  }
}

module attributes {stable_mosaic.version = 11 : i64} {
  func.func @kernel(%arg0: i32, %arg1: i32, %arg2: i32, %arg3: memref<16x128xbf16, #tpu.memory_space<vmem>>, %arg4: memref<128x128xbf16, #tpu.memory_space<vmem>>, %arg5: memref<16x128xbf16, #tpu.memory_space<vmem>>, %arg6: memref<128x128xbf16, #tpu.memory_space<vmem>>, %arg7: memref<16x128xbf16, #tpu.memory_space<vmem>>, %arg8: memref<16x128xf32, #tpu.memory_space<vmem>>) attributes {dimension_semantics = [#tpu.dimension_semantics<parallel>, #tpu.dimension_semantics<parallel>, #tpu.dimension_semantics<arbitrary>], iteration_bounds = array<i64: 1, 1, 1>, scalar_prefetch = 0 : i64, scratch_operands = 1 : i64, tpu.core_type = #tpu.core_type<tc>, window_params = [{transform_indices = @transform_0, window_bounds = array<i64: 16, 128>}, {transform_indices = @transform_1, window_bounds = array<i64: 128, 128>}, {transform_indices = @transform_2, window_bounds = array<i64: 16, 128>}, {transform_indices = @transform_3, window_bounds = array<i64: 128, 128>}, {transform_indices = @transform_4, window_bounds = array<i64: 16, 128>}]} {
    %c0_i32 = arith.constant 0 : i32
    %0 = arith.cmpi eq, %arg2, %c0_i32 : i32
    %1 = arith.extui %0 : i1 to i32
    %c0_i32_0 = arith.constant 0 : i32
    %2 = arith.cmpi ne, %1, %c0_i32_0 : i32
    scf.if %2 {
      %cst_15 = arith.constant 0.000000e+00 : f32
      %16 = vector.broadcast %cst_15 : f32 to vector<16x128xf32>
      %c0_16 = arith.constant 0 : index
      %c0_17 = arith.constant 0 : index
      %17 = vector.load %arg8[%c0_16, %c0_17] : memref<16x128xf32, #tpu.memory_space<vmem>>, vector<16x128xf32>
      tpu.vector_store %arg8[%c0_16, %c0_17], %16 {strides = array<i32>} : memref<16x128xf32, #tpu.memory_space<vmem>>, vector<16x128xf32>,
    } else {
    }
    %c0 = arith.constant 0 : index
    %c0_1 = arith.constant 0 : index
    %3 = vector.load %arg3[%c0, %c0_1] : memref<16x128xbf16, #tpu.memory_space<vmem>>, vector<16x128xbf16>
    %c0_2 = arith.constant 0 : index
    %c0_3 = arith.constant 0 : index
    %4 = vector.load %arg4[%c0_2, %c0_3] : memref<128x128xbf16, #tpu.memory_space<vmem>>, vector<128x128xbf16>
    %cst = arith.constant dense<0.000000e+00> : vector<16x128xf32>
    %5 = tpu.matmul %3, %4, %cst {dimension_numbers = #tpu.dot_dimension_numbers<[1], [0], [0], [1], [0, 0, 1, 1], [], []>} : vector<16x128xbf16>, vector<128x128xbf16>, vector<16x128xf32> -> vector<16x128xf32>
    %c0_4 = arith.constant 0 : index
    %c0_5 = arith.constant 0 : index
    %6 = vector.load %arg5[%c0_4, %c0_5] : memref<16x128xbf16, #tpu.memory_space<vmem>>, vector<16x128xbf16>
    %c0_6 = arith.constant 0 : index
    %c0_7 = arith.constant 0 : index
    %7 = vector.load %arg6[%c0_6, %c0_7] : memref<128x128xbf16, #tpu.memory_space<vmem>>, vector<128x128xbf16>
    %cst_8 = arith.constant dense<0.000000e+00> : vector<16x128xf32>
    %8 = tpu.matmul %6, %7, %cst_8 {dimension_numbers = #tpu.dot_dimension_numbers<[1], [0], [0], [1], [0, 0, 1, 1], [], []>} : vector<16x128xbf16>, vector<128x128xbf16>, vector<16x128xf32> -> vector<16x128xf32>
    %9 = arith.addf %5, %8 : vector<16x128xf32>
    %c0_9 = arith.constant 0 : index
    %c0_10 = arith.constant 0 : index
    %10 = vector.load %arg8[%c0_9, %c0_10] : memref<16x128xf32, #tpu.memory_space<vmem>>, vector<16x128xf32>
    %11 = arith.addf %10, %9 : vector<16x128xf32>
    %c0_11 = arith.constant 0 : index
    %c0_12 = arith.constant 0 : index
    %12 = vector.load %arg8[%c0_11, %c0_12] : memref<16x128xf32, #tpu.memory_space<vmem>>, vector<16x128xf32>
    tpu.vector_store %arg8[%c0_11, %c0_12], %11 {strides = array<i32>} : memref<16x128xf32, #tpu.memory_space<vmem>>, vector<16x128xf32>,
    %c0_i32_13 = arith.constant 0 : i32
    %13 = arith.cmpi eq, %arg2, %c0_i32_13 : i32
    %14 = arith.extui %13 : i1 to i32
    %c0_i32_14 = arith.constant 0 : i32
    %15 = arith.cmpi ne, %14, %c0_i32_14 : i32
    scf.if %15 {
      %c0_15 = arith.constant 0 : index
      %c0_16 = arith.constant 0 : index
      %16 = vector.load %arg8[%c0_15, %c0_16] : memref<16x128xf32, #tpu.memory_space<vmem>>, vector<16x128xf32>
      %17 = arith.truncf %16 : vector<16x128xf32> to vector<16x128xbf16>
      %c0_17 = arith.constant 0 : index
      %c0_18 = arith.constant 0 : index
      %18 = vector.load %arg7[%c0_17, %c0_18] : memref<16x128xbf16, #tpu.memory_space<vmem>>, vector<16x128xbf16>
      tpu.vector_store %arg7[%c0_17, %c0_18], %17 {strides = array<i32>} : memref<16x128xbf16, #tpu.memory_space<vmem>>, vector<16x128xbf16>,
    } else {
    }
    return
  }
  func.func @transform_0(%arg0: i32, %arg1: i32, %arg2: i32) -> (i32, i32) {
    %c0_i32 = arith.constant 0 : i32
    return %arg0, %arg2 : i32, i32
  }
  func.func @transform_1(%arg0: i32, %arg1: i32, %arg2: i32) -> (i32, i32) {
    %c0_i32 = arith.constant 0 : i32
    return %arg2, %arg1 : i32, i32
  }
  func.func @transform_2(%arg0: i32, %arg1: i32, %arg2: i32) -> (i32, i32) {
    %c0_i32 = arith.constant 0 : i32
    return %arg0, %arg2 : i32, i32
  }
  func.func @transform_3(%arg0: i32, %arg1: i32, %arg2: i32) -> (i32, i32) {
    %c0_i32 = arith.constant 0 : i32
    return %arg2, %arg1 : i32, i32
  }
  func.func @transform_4(%arg0: i32, %arg1: i32, %arg2: i32) -> (i32, i32) {
    %c0_i32 = arith.constant 0 : i32
    return %arg0, %arg1 : i32, i32
  }
}

module attributes {stable_mosaic.version = 11 : i64} {
  func.func @_decoder_lstm_kernel(%arg0: i32, %arg1: memref<8x2x512xbf16, #tpu.memory_space<vmem>>, %arg2: memref<2x128xf32, #tpu.memory_space<vmem>>, %arg3: memref<2x128xf32, #tpu.memory_space<vmem>>, %arg4: memref<128x512xbf16, #tpu.memory_space<vmem>>, %arg5: memref<8x2x128xbf16, #tpu.memory_space<vmem>>) attributes {dimension_semantics = [#tpu.dimension_semantics<parallel>], iteration_bounds = array<i64: 1>, scalar_prefetch = 0 : i64, scratch_operands = 0 : i64, tpu.core_type = #tpu.core_type<tc>, window_params = [{transform_indices = @transform_0, window_bounds = array<i64: 8, 2, 512>}, {transform_indices = @transform_1, window_bounds = array<i64: 2, 128>}, {transform_indices = @transform_2, window_bounds = array<i64: 2, 128>}, {pipeline_mode = #tpu.pipeline_mode<synchronous>, transform_indices = @transform_3, window_bounds = array<i64: 128, 512>}, {transform_indices = @transform_4, window_bounds = array<i64: 8, 2, 128>}]} {
    %c0 = arith.constant 0 : index
    %c0_0 = arith.constant 0 : index
    %0 = vector.load %arg4[%c0, %c0_0] : memref<128x512xbf16, #tpu.memory_space<vmem>>, vector<128x512xbf16>
    %c0_1 = arith.constant 0 : index
    %c0_2 = arith.constant 0 : index
    %1 = vector.load %arg2[%c0_1, %c0_2] : memref<2x128xf32, #tpu.memory_space<vmem>>, vector<2x128xf32>
    %c0_3 = arith.constant 0 : index
    %c0_4 = arith.constant 0 : index
    %2 = vector.load %arg3[%c0_3, %c0_4] : memref<2x128xf32, #tpu.memory_space<vmem>>, vector<2x128xf32>
    %c0_i32 = arith.constant 0 : i32
    %c8_i32 = arith.constant 8 : i32
    %3 = arith.addi %c0_i32, %c8_i32 : i32
    %c1_i32 = arith.constant 1 : i32
    %4:2 = scf.for %arg6 = %c0_i32 to %3 step %c1_i32 iter_args(%arg7 = %1, %arg8 = %2) -> (vector<2x128xf32>, vector<2x128xf32>)  : i32 {
      %5 = arith.index_cast %arg6 : i32 to index
      %c0_6 = arith.constant 0 : index
      %c0_7 = arith.constant 0 : index
      %6 = vector.load %arg1[%5, %c0_6, %c0_7] : memref<8x2x512xbf16, #tpu.memory_space<vmem>>, vector<1x2x512xbf16>
      %7 = vector.shape_cast %6 : vector<1x2x512xbf16> to vector<2x512xbf16>
      %8 = arith.extf %7 : vector<2x512xbf16> to vector<2x512xf32>
      %9 = arith.truncf %arg7 : vector<2x128xf32> to vector<2x128xbf16>
      %cst = arith.constant dense<0.000000e+00> : vector<2x512xf32>
      %10 = tpu.matmul %9, %0, %cst {dimension_numbers = #tpu.dot_dimension_numbers<[1], [0], [0], [1], [0, 0, 1, 1], [], []>} : vector<2x128xbf16>, vector<128x512xbf16>, vector<2x512xf32> -> vector<2x512xf32>
      %11 = arith.addf %8, %10 : vector<2x512xf32>
      %12 = vector.extract_strided_slice %11 {offsets = [0, 0], sizes = [2, 384], strides = [1, 1]} : vector<2x512xf32> to vector<2x384xf32>
      %13 = arith.negf %12 : vector<2x384xf32>
      %14 = math.exp %13 : vector<2x384xf32>
      %cst_8 = arith.constant 1.000000e+00 : f32
      %15 = vector.broadcast %cst_8 : f32 to vector<2x384xf32>
      %16 = arith.addf %15, %14 : vector<2x384xf32>
      %17 = arith.divf %15, %16 : vector<2x384xf32>
      %18 = vector.extract_strided_slice %17 {offsets = [0, 0], sizes = [2, 128], strides = [1, 1]} : vector<2x384xf32> to vector<2x128xf32>
      %19 = vector.extract_strided_slice %17 {offsets = [0, 128], sizes = [2, 128], strides = [1, 1]} : vector<2x384xf32> to vector<2x128xf32>
      %20 = vector.extract_strided_slice %17 {offsets = [0, 256], sizes = [2, 128], strides = [1, 1]} : vector<2x384xf32> to vector<2x128xf32>
      %21 = vector.extract_strided_slice %11 {offsets = [0, 384], sizes = [2, 128], strides = [1, 1]} : vector<2x512xf32> to vector<2x128xf32>
      %22 = math.tanh %21 : vector<2x128xf32>
      %23 = arith.mulf %19, %arg8 : vector<2x128xf32>
      %24 = arith.mulf %18, %22 : vector<2x128xf32>
      %25 = arith.addf %23, %24 : vector<2x128xf32>
      %26 = math.tanh %25 : vector<2x128xf32>
      %27 = arith.mulf %20, %26 : vector<2x128xf32>
      %28 = arith.truncf %27 : vector<2x128xf32> to vector<2x128xbf16>
      %29 = arith.index_cast %arg6 : i32 to index
      %c0_9 = arith.constant 0 : index
      %c0_10 = arith.constant 0 : index
      %30 = vector.load %arg5[%29, %c0_9, %c0_10] : memref<8x2x128xbf16, #tpu.memory_space<vmem>>, vector<1x2x128xbf16>
      %31 = vector.shape_cast %30 : vector<1x2x128xbf16> to vector<2x128xbf16>
      %32 = vector.shape_cast %28 : vector<2x128xbf16> to vector<1x2x128xbf16>
      tpu.vector_store %arg5[%29, %c0_9, %c0_10], %32 {strides = array<i32>} : memref<8x2x128xbf16, #tpu.memory_space<vmem>>, vector<1x2x128xbf16>,
      scf.yield %27, %25 : vector<2x128xf32>, vector<2x128xf32>
    }
    %c8_i32_5 = arith.constant 8 : i32
    return
  }
  func.func @transform_0(%arg0: i32) -> (i32, i32, i32) {
    %c0_i32 = arith.constant 0 : i32
    %c0_i32_0 = arith.constant 0 : i32
    %c0_i32_1 = arith.constant 0 : i32
    return %c0_i32, %arg0, %c0_i32_0 : i32, i32, i32
  }
  func.func @transform_1(%arg0: i32) -> (i32, i32) {
    %c0_i32 = arith.constant 0 : i32
    %c0_i32_0 = arith.constant 0 : i32
    return %arg0, %c0_i32 : i32, i32
  }
  func.func @transform_2(%arg0: i32) -> (i32, i32) {
    %c0_i32 = arith.constant 0 : i32
    %c0_i32_0 = arith.constant 0 : i32
    return %arg0, %c0_i32 : i32, i32
  }
  func.func @transform_3(%arg0: i32) -> (i32, i32) {
    %c0_i32 = arith.constant 0 : i32
    %c0_i32_0 = arith.constant 0 : i32
    %c0_i32_1 = arith.constant 0 : i32
    return %c0_i32, %c0_i32_0 : i32, i32
  }
  func.func @transform_4(%arg0: i32) -> (i32, i32, i32) {
    %c0_i32 = arith.constant 0 : i32
    %c0_i32_0 = arith.constant 0 : i32
    %c0_i32_1 = arith.constant 0 : i32
    return %c0_i32, %arg0, %c0_i32_0 : i32, i32, i32
  }
}

module attributes {stable_mosaic.version = 11 : i64} {
  func.func @kernel(%arg0: i32, %arg1: i32, %arg2: i32, %arg3: memref<16x128xbf16, #tpu.memory_space<vmem>>, %arg4: memref<128x128xbf16, #tpu.memory_space<vmem>>, %arg5: memref<16x128xbf16, #tpu.memory_space<vmem>>, %arg6: memref<128x128xbf16, #tpu.memory_space<vmem>>, %arg7: memref<16x128xbf16, #tpu.memory_space<vmem>>, %arg8: memref<16x128xf32, #tpu.memory_space<vmem>>) attributes {dimension_semantics = [#tpu.dimension_semantics<parallel>, #tpu.dimension_semantics<parallel>, #tpu.dimension_semantics<arbitrary>], iteration_bounds = array<i64: 1, 1, 1>, scalar_prefetch = 0 : i64, scratch_operands = 1 : i64, tpu.core_type = #tpu.core_type<tc>, window_params = [{transform_indices = @transform_0, window_bounds = array<i64: 16, 128>}, {transform_indices = @transform_1, window_bounds = array<i64: 128, 128>}, {transform_indices = @transform_2, window_bounds = array<i64: 16, 128>}, {transform_indices = @transform_3, window_bounds = array<i64: 128, 128>}, {transform_indices = @transform_4, window_bounds = array<i64: 16, 128>}]} {
    %c0_i32 = arith.constant 0 : i32
    %0 = arith.cmpi eq, %arg2, %c0_i32 : i32
    %1 = arith.extui %0 : i1 to i32
    %c0_i32_0 = arith.constant 0 : i32
    %2 = arith.cmpi ne, %1, %c0_i32_0 : i32
    scf.if %2 {
      %cst_15 = arith.constant 0.000000e+00 : f32
      %16 = vector.broadcast %cst_15 : f32 to vector<16x128xf32>
      %c0_16 = arith.constant 0 : index
      %c0_17 = arith.constant 0 : index
      %17 = vector.load %arg8[%c0_16, %c0_17] : memref<16x128xf32, #tpu.memory_space<vmem>>, vector<16x128xf32>
      tpu.vector_store %arg8[%c0_16, %c0_17], %16 {strides = array<i32>} : memref<16x128xf32, #tpu.memory_space<vmem>>, vector<16x128xf32>,
    } else {
    }
    %c0 = arith.constant 0 : index
    %c0_1 = arith.constant 0 : index
    %3 = vector.load %arg3[%c0, %c0_1] : memref<16x128xbf16, #tpu.memory_space<vmem>>, vector<16x128xbf16>
    %c0_2 = arith.constant 0 : index
    %c0_3 = arith.constant 0 : index
    %4 = vector.load %arg4[%c0_2, %c0_3] : memref<128x128xbf16, #tpu.memory_space<vmem>>, vector<128x128xbf16>
    %cst = arith.constant dense<0.000000e+00> : vector<16x128xf32>
    %5 = tpu.matmul %3, %4, %cst {dimension_numbers = #tpu.dot_dimension_numbers<[1], [0], [0], [1], [0, 0, 1, 1], [], []>} : vector<16x128xbf16>, vector<128x128xbf16>, vector<16x128xf32> -> vector<16x128xf32>
    %c0_4 = arith.constant 0 : index
    %c0_5 = arith.constant 0 : index
    %6 = vector.load %arg5[%c0_4, %c0_5] : memref<16x128xbf16, #tpu.memory_space<vmem>>, vector<16x128xbf16>
    %c0_6 = arith.constant 0 : index
    %c0_7 = arith.constant 0 : index
    %7 = vector.load %arg6[%c0_6, %c0_7] : memref<128x128xbf16, #tpu.memory_space<vmem>>, vector<128x128xbf16>
    %cst_8 = arith.constant dense<0.000000e+00> : vector<16x128xf32>
    %8 = tpu.matmul %6, %7, %cst_8 {dimension_numbers = #tpu.dot_dimension_numbers<[1], [0], [0], [1], [0, 0, 1, 1], [], []>} : vector<16x128xbf16>, vector<128x128xbf16>, vector<16x128xf32> -> vector<16x128xf32>
    %9 = arith.addf %5, %8 : vector<16x128xf32>
    %c0_9 = arith.constant 0 : index
    %c0_10 = arith.constant 0 : index
    %10 = vector.load %arg8[%c0_9, %c0_10] : memref<16x128xf32, #tpu.memory_space<vmem>>, vector<16x128xf32>
    %11 = arith.addf %10, %9 : vector<16x128xf32>
    %c0_11 = arith.constant 0 : index
    %c0_12 = arith.constant 0 : index
    %12 = vector.load %arg8[%c0_11, %c0_12] : memref<16x128xf32, #tpu.memory_space<vmem>>, vector<16x128xf32>
    tpu.vector_store %arg8[%c0_11, %c0_12], %11 {strides = array<i32>} : memref<16x128xf32, #tpu.memory_space<vmem>>, vector<16x128xf32>,
    %c0_i32_13 = arith.constant 0 : i32
    %13 = arith.cmpi eq, %arg2, %c0_i32_13 : i32
    %14 = arith.extui %13 : i1 to i32
    %c0_i32_14 = arith.constant 0 : i32
    %15 = arith.cmpi ne, %14, %c0_i32_14 : i32
    scf.if %15 {
      %c0_15 = arith.constant 0 : index
      %c0_16 = arith.constant 0 : index
      %16 = vector.load %arg8[%c0_15, %c0_16] : memref<16x128xf32, #tpu.memory_space<vmem>>, vector<16x128xf32>
      %17 = math.tanh %16 : vector<16x128xf32>
      %18 = arith.truncf %17 : vector<16x128xf32> to vector<16x128xbf16>
      %c0_17 = arith.constant 0 : index
      %c0_18 = arith.constant 0 : index
      %19 = vector.load %arg7[%c0_17, %c0_18] : memref<16x128xbf16, #tpu.memory_space<vmem>>, vector<16x128xbf16>
      tpu.vector_store %arg7[%c0_17, %c0_18], %18 {strides = array<i32>} : memref<16x128xbf16, #tpu.memory_space<vmem>>, vector<16x128xbf16>,
    } else {
    }
    return
  }
  func.func @transform_0(%arg0: i32, %arg1: i32, %arg2: i32) -> (i32, i32) {
    %c0_i32 = arith.constant 0 : i32
    return %arg0, %arg2 : i32, i32
  }
  func.func @transform_1(%arg0: i32, %arg1: i32, %arg2: i32) -> (i32, i32) {
    %c0_i32 = arith.constant 0 : i32
    return %arg2, %arg1 : i32, i32
  }
  func.func @transform_2(%arg0: i32, %arg1: i32, %arg2: i32) -> (i32, i32) {
    %c0_i32 = arith.constant 0 : i32
    return %arg0, %arg2 : i32, i32
  }
  func.func @transform_3(%arg0: i32, %arg1: i32, %arg2: i32) -> (i32, i32) {
    %c0_i32 = arith.constant 0 : i32
    return %arg2, %arg1 : i32, i32
  }
  func.func @transform_4(%arg0: i32, %arg1: i32, %arg2: i32) -> (i32, i32) {
    %c0_i32 = arith.constant 0 : i32
    return %arg0, %arg1 : i32, i32
  }
}

module attributes {stable_mosaic.version = 11 : i64} {
  func.func @_attention_kernel(%arg0: i32, %arg1: memref<2x8x128xbf16, #tpu.memory_space<vmem>>, %arg2: memref<2x8x128xbf16, #tpu.memory_space<vmem>>, %arg3: memref<2x1xi32, #tpu.memory_space<vmem>>, %arg4: memref<2x8x128xbf16, #tpu.memory_space<vmem>>) attributes {dimension_semantics = [#tpu.dimension_semantics<parallel>], iteration_bounds = array<i64: 1>, scalar_prefetch = 0 : i64, scratch_operands = 0 : i64, tpu.core_type = #tpu.core_type<tc>, window_params = [{transform_indices = @transform_0, window_bounds = array<i64: 2, 8, 128>}, {transform_indices = @transform_1, window_bounds = array<i64: 2, 8, 128>}, {transform_indices = @transform_2, window_bounds = array<i64: 2, 1>}, {transform_indices = @transform_3, window_bounds = array<i64: 2, 8, 128>}]} {
    %c0 = arith.constant 0 : index
    %c0_0 = arith.constant 0 : index
    %c0_1 = arith.constant 0 : index
    %0 = vector.load %arg1[%c0, %c0_0, %c0_1] : memref<2x8x128xbf16, #tpu.memory_space<vmem>>, vector<2x8x128xbf16>
    %c0_2 = arith.constant 0 : index
    %c0_3 = arith.constant 0 : index
    %c0_4 = arith.constant 0 : index
    %1 = vector.load %arg2[%c0_2, %c0_3, %c0_4] : memref<2x8x128xbf16, #tpu.memory_space<vmem>>, vector<2x8x128xbf16>
    %c0_5 = arith.constant 0 : index
    %c0_6 = arith.constant 0 : index
    %2 = vector.load %arg3[%c0_5, %c0_6] : memref<2x1xi32, #tpu.memory_space<vmem>>, vector<2x1xi32>
    "tpu.trace_start"() <{level = 10 : i32, message = "bqd,bsd->bqs"}> : () -> ()
    %cst = arith.constant dense<0.000000e+00> : vector<2x8x8xf32>
    %3 = tpu.matmul %0, %1, %cst {dimension_numbers = #tpu.dot_dimension_numbers<[2], [2], [1], [1], [0, 0, 0, 1, 1, 1], [0], [0]>} : vector<2x8x128xbf16>, vector<2x8x128xbf16>, vector<2x8x8xf32> -> vector<2x8x8xf32>
    "tpu.trace_stop"() : () -> ()
    %4 = tpu.iota {dimensions = array<i32: 2>} : vector<2x1x8xi32>
    %5 = vector.shape_cast %2 : vector<2x1xi32> to vector<2x1x1xi32>
    %6 = vector.broadcast %5 : vector<2x1x1xi32> to vector<2x1x8xi32>
    %7 = arith.cmpi slt, %4, %6 : vector<2x1x8xi32>
    %cst_7 = arith.constant -1.000000e+30 : f32
    %8 = vector.shape_cast %7 : vector<2x1x8xi1> to vector<2x1x8xi1>
    %9 = vector.broadcast %8 : vector<2x1x8xi1> to vector<2x8x8xi1>
    %10 = vector.broadcast %cst_7 : f32 to vector<2x8x8xf32>
    %11 = arith.select %9, %3, %10 : vector<2x8x8xi1>, vector<2x8x8xf32>
    %cst_8 = arith.constant dense<0xFF800000> : vector<2x8xf32>
    %12 = vector.multi_reduction <maximumf>, %11, %cst_8 [2] : vector<2x8x8xf32> to vector<2x8xf32>
    %13 = vector.shape_cast %12 : vector<2x8xf32> to vector<2x8x1xf32>
    %14 = vector.broadcast %13 : vector<2x8x1xf32> to vector<2x8x8xf32>
    %15 = arith.subf %11, %14 : vector<2x8x8xf32>
    %16 = math.exp %15 : vector<2x8x8xf32>
    %cst_9 = arith.constant dense<0.000000e+00> : vector<2x8xf32>
    %17 = vector.multi_reduction <add>, %16, %cst_9 [2] : vector<2x8x8xf32> to vector<2x8xf32>
    %18 = vector.shape_cast %17 : vector<2x8xf32> to vector<2x8x1xf32>
    %19 = tpu.reciprocal %18 {approx = true} : vector<2x8x1xf32> -> vector<2x8x1xf32>
    %20 = vector.broadcast %19 : vector<2x8x1xf32> to vector<2x8x8xf32>
    %21 = arith.mulf %16, %20 : vector<2x8x8xf32>
    %22 = arith.truncf %21 : vector<2x8x8xf32> to vector<2x8x8xbf16>
    "tpu.trace_start"() <{level = 10 : i32, message = "bqs,bsd->bqd"}> : () -> ()
    %cst_10 = arith.constant dense<0.000000e+00> : vector<2x8x128xf32>
    %23 = tpu.matmul %22, %1, %cst_10 {dimension_numbers = #tpu.dot_dimension_numbers<[2], [1], [1], [2], [0, 0, 0, 1, 1, 2], [0], [0]>} : vector<2x8x8xbf16>, vector<2x8x128xbf16>, vector<2x8x128xf32> -> vector<2x8x128xf32>
    "tpu.trace_stop"() : () -> ()
    %24 = arith.truncf %23 : vector<2x8x128xf32> to vector<2x8x128xbf16>
    %c0_11 = arith.constant 0 : index
    %c0_12 = arith.constant 0 : index
    %c0_13 = arith.constant 0 : index
    %25 = vector.load %arg4[%c0_11, %c0_12, %c0_13] : memref<2x8x128xbf16, #tpu.memory_space<vmem>>, vector<2x8x128xbf16>
    tpu.vector_store %arg4[%c0_11, %c0_12, %c0_13], %24 {strides = array<i32>} : memref<2x8x128xbf16, #tpu.memory_space<vmem>>, vector<2x8x128xbf16>,
    return
  }
  func.func @transform_0(%arg0: i32) -> (i32, i32, i32) {
    %c0_i32 = arith.constant 0 : i32
    %c0_i32_0 = arith.constant 0 : i32
    %c0_i32_1 = arith.constant 0 : i32
    return %arg0, %c0_i32, %c0_i32_0 : i32, i32, i32
  }
  func.func @transform_1(%arg0: i32) -> (i32, i32, i32) {
    %c0_i32 = arith.constant 0 : i32
    %c0_i32_0 = arith.constant 0 : i32
    %c0_i32_1 = arith.constant 0 : i32
    return %arg0, %c0_i32, %c0_i32_0 : i32, i32, i32
  }
  func.func @transform_2(%arg0: i32) -> (i32, i32) {
    %c0_i32 = arith.constant 0 : i32
    %c0_i32_0 = arith.constant 0 : i32
    return %arg0, %c0_i32 : i32, i32
  }
  func.func @transform_3(%arg0: i32) -> (i32, i32, i32) {
    %c0_i32 = arith.constant 0 : i32
    %c0_i32_0 = arith.constant 0 : i32
    %c0_i32_1 = arith.constant 0 : i32
    return %arg0, %c0_i32, %c0_i32_0 : i32, i32, i32
  }
}

module attributes {stable_mosaic.version = 11 : i64} {
  func.func @kernel(%arg0: i32, %arg1: i32, %arg2: i32, %arg3: memref<16x128xbf16, #tpu.memory_space<vmem>>, %arg4: memref<128x1024xbf16, #tpu.memory_space<vmem>>, %arg5: memref<16x1024xf32, #tpu.memory_space<vmem>>, %arg6: memref<16x1024xf32, #tpu.memory_space<vmem>>) attributes {dimension_semantics = [#tpu.dimension_semantics<parallel>, #tpu.dimension_semantics<parallel>, #tpu.dimension_semantics<arbitrary>], iteration_bounds = array<i64: 1, 1, 1>, scalar_prefetch = 0 : i64, scratch_operands = 1 : i64, tpu.core_type = #tpu.core_type<tc>, window_params = [{transform_indices = @transform_0, window_bounds = array<i64: 16, 128>}, {transform_indices = @transform_1, window_bounds = array<i64: 128, 1024>}, {transform_indices = @transform_2, window_bounds = array<i64: 16, 1024>}]} {
    %c0_i32 = arith.constant 0 : i32
    %0 = arith.cmpi eq, %arg2, %c0_i32 : i32
    %1 = arith.extui %0 : i1 to i32
    %c0_i32_0 = arith.constant 0 : i32
    %2 = arith.cmpi ne, %1, %c0_i32_0 : i32
    scf.if %2 {
      %cst_10 = arith.constant 0.000000e+00 : f32
      %12 = vector.broadcast %cst_10 : f32 to vector<16x1024xf32>
      %c0_11 = arith.constant 0 : index
      %c0_12 = arith.constant 0 : index
      %13 = vector.load %arg6[%c0_11, %c0_12] : memref<16x1024xf32, #tpu.memory_space<vmem>>, vector<16x1024xf32>
      tpu.vector_store %arg6[%c0_11, %c0_12], %12 {strides = array<i32>} : memref<16x1024xf32, #tpu.memory_space<vmem>>, vector<16x1024xf32>,
    } else {
    }
    %c0 = arith.constant 0 : index
    %c0_1 = arith.constant 0 : index
    %3 = vector.load %arg3[%c0, %c0_1] : memref<16x128xbf16, #tpu.memory_space<vmem>>, vector<16x128xbf16>
    %c0_2 = arith.constant 0 : index
    %c0_3 = arith.constant 0 : index
    %4 = vector.load %arg4[%c0_2, %c0_3] : memref<128x1024xbf16, #tpu.memory_space<vmem>>, vector<128x1024xbf16>
    %cst = arith.constant dense<0.000000e+00> : vector<16x1024xf32>
    %5 = tpu.matmul %3, %4, %cst {dimension_numbers = #tpu.dot_dimension_numbers<[1], [0], [0], [1], [0, 0, 1, 1], [], []>} : vector<16x128xbf16>, vector<128x1024xbf16>, vector<16x1024xf32> -> vector<16x1024xf32>
    %c0_4 = arith.constant 0 : index
    %c0_5 = arith.constant 0 : index
    %6 = vector.load %arg6[%c0_4, %c0_5] : memref<16x1024xf32, #tpu.memory_space<vmem>>, vector<16x1024xf32>
    %7 = arith.addf %6, %5 : vector<16x1024xf32>
    %c0_6 = arith.constant 0 : index
    %c0_7 = arith.constant 0 : index
    %8 = vector.load %arg6[%c0_6, %c0_7] : memref<16x1024xf32, #tpu.memory_space<vmem>>, vector<16x1024xf32>
    tpu.vector_store %arg6[%c0_6, %c0_7], %7 {strides = array<i32>} : memref<16x1024xf32, #tpu.memory_space<vmem>>, vector<16x1024xf32>,
    %c0_i32_8 = arith.constant 0 : i32
    %9 = arith.cmpi eq, %arg2, %c0_i32_8 : i32
    %10 = arith.extui %9 : i1 to i32
    %c0_i32_9 = arith.constant 0 : i32
    %11 = arith.cmpi ne, %10, %c0_i32_9 : i32
    scf.if %11 {
      %c0_10 = arith.constant 0 : index
      %c0_11 = arith.constant 0 : index
      %12 = vector.load %arg6[%c0_10, %c0_11] : memref<16x1024xf32, #tpu.memory_space<vmem>>, vector<16x1024xf32>
      %c0_12 = arith.constant 0 : index
      %c0_13 = arith.constant 0 : index
      %13 = vector.load %arg5[%c0_12, %c0_13] : memref<16x1024xf32, #tpu.memory_space<vmem>>, vector<16x1024xf32>
      tpu.vector_store %arg5[%c0_12, %c0_13], %12 {strides = array<i32>} : memref<16x1024xf32, #tpu.memory_space<vmem>>, vector<16x1024xf32>,
    } else {
    }
    return
  }
  func.func @transform_0(%arg0: i32, %arg1: i32, %arg2: i32) -> (i32, i32) {
    %c0_i32 = arith.constant 0 : i32
    return %arg0, %arg2 : i32, i32
  }
  func.func @transform_1(%arg0: i32, %arg1: i32, %arg2: i32) -> (i32, i32) {
    %c0_i32 = arith.constant 0 : i32
    return %arg2, %arg1 : i32, i32
  }
  func.func @transform_2(%arg0: i32, %arg1: i32, %arg2: i32) -> (i32, i32) {
    %c0_i32 = arith.constant 0 : i32
    return %arg0, %arg1 : i32, i32
  }
}

</mosaic_0001>

<bundles_post_ra>
// kernel: seq2seq_forward.9
= control target key start
LH: loop header
LB: loop body
LE: loop exit
PB: predicated region body
PF: predicated region fallthrough
CT: control target
= control target key end

     0   :  { %s1079_s12 = smov 0   ;;  %s1081_s13 = smov 0   ;;  %s1296_s0 = inlined_call_operand.vmem [shape: bf16[16,128], index: 0, kind: input, shape index: {}]   ;;  %s1297_s1 = inlined_call_operand.vmem [shape: bf16[128,1024], index: 1, kind: input, shape index: {}]   ;;  %s1298_s2 = inlined_call_operand.vmem [shape: f32[1,1024], index: 2, kind: input, shape index: {}]   ;;  %s1299_s3 = inlined_call_operand.vmem [shape: bf16[16,1024], index: 3, kind: output, shape index: {}]  }
   0x1   :  { %s1083_s14 = smov 0   ;;  %s1085_s15 = smov 0  }
   0x2   :  { %s1087_s16 = smov 0  }
   0x3 LB: > { %s28_s17 = sadd.s32 1, %s1053_s15  ;;  %s795_s18 = sadd.s32 4294967295, %s1057_s16   ;;  %s1057_s16 = sphi %s1087_s16, %s13_s16   ;;  %s1053_s15 = sphi %s1085_s15, %s1304_s15   ;;  %s1049_s14 = sphi %s1083_s14, %s1303_s14   ;;  %s1045_s13 = sphi %s1081_s13, %s1302_s13   ;;  %s1041_s12 = sphi %s1079_s12, %s1301_s12  }
   0x4   : > { %p30_p0 = scmp.ge.s32.totalorder %s28_s17, 2  ;;  %p76_p1 = scmp.ne.s32.totalorder %s1045_s13, %s1041_s12 }
   0x5   : > { %p77_p2 = scmp.eq.s32.totalorder %s1057_s16, 0  ;;  %p134_p4 = scmp.eq.s32.totalorder %s795_s18, 1 }
   0x6   : > { %s1306_s17 = smov (%p30_p0, %s28_s17), 0  ;;  %s69_s20 = sadd.s32 1, %s1045_s13 }
   0x7   : > { %p78_p3 = por %p77_p2, %p76_p1  ;;  %s65_s19 = ssub.s32 %s1053_s15, %s1306_s17 }
   0x8   : > { %p67_p5 = scmp.eq.s32.totalorder %s65_s19, 0  ;;  %p1114_p6 = por %p134_p4, %p76_p1 }
   0x9   : > { %p799_p7 = scmp.ge.s32.totalorder %s1057_s16, 2 }
   0xa   : > { %s1119_s22 = scalar_select %p67_p5, %s1045_s13, %s69_s20  }
   0xb   : > { %168 = sbr.rel (%p799_p7) target bundleno = 52 (0x34), region = 20 }
  0x10   : > { %171 = sbr.rel (!%p78_p3) target bundleno = 52 (0x34), region = 24  ;;  %s173_s23 = sand.u32 (%p78_p3), 1, %s1045_s13  }
  0x11   : > { %s944_s24 = sshll.u32 (%p78_p3), %s1053_s15, 4  ;;  %s800_s25 = sshll.u32 (%p78_p3), %s173_s23, 8 }
  0x12   : > { %s1127_s28 = scalar_lea.vmem (%p78_p3), %s1297_s1, %s944_s24  ;;  %s1132_s29 = scalar_lea.vmem (%p78_p3), [#allocation3], %s800_s25 }
  0x13   : > { %v194_v0 = vld [vmem:[%s1127_s28] sm:$0xff] (%p78_p3)  ;;  %v196_v1 = vld [vmem:[%s1127_s28 + $0x8] sm:$0xff] (%p78_p3) }
  0x14   : > { %v198_v2 = vld [vmem:[%s1127_s28 + $0x20] sm:$0xff] (%p78_p3)  ;;  %195 = vst [vmem:[%s1132_s29] sm:$0xff] (%p78_p3), %v194_v0  ;;  %v200_v3 = vld [vmem:[%s1127_s28 + $0x28] sm:$0xff] (%p78_p3) }
  0x15   : > { %197 = vst [vmem:[%s1132_s29 + $0x8] sm:$0xff] %v196_v1  ;;  %v202_v4 = vld [vmem:[%s1127_s28 + $0x40] sm:$0xff]  ;;  %v204_v5 = vld [vmem:[%s1127_s28 + $0x48] sm:$0xff] }
  0x16   : > { %199 = vst [vmem:[%s1132_s29 + $0x10] sm:$0xff] %v198_v2  ;;  %v206_v6 = vld [vmem:[%s1127_s28 + $0x60] sm:$0xff]  ;;  %v208_v7 = vld [vmem:[%s1127_s28 + $0x68] sm:$0xff] }
  0x17   : > { %201 = vst [vmem:[%s1132_s29 + $0x18] sm:$0xff] %v200_v3  ;;  %v210_v8 = vld [vmem:[%s1127_s28 + $0x80] sm:$0xff]  ;;  %v212_v9 = vld [vmem:[%s1127_s28 + $0x88] sm:$0xff] }
  0x18   : > { %203 = vst [vmem:[%s1132_s29 + $0x20] sm:$0xff] %v202_v4  ;;  %v214_v10 = vld [vmem:[%s1127_s28 + $0xa0] sm:$0xff]  ;;  %v216_v11 = vld [vmem:[%s1127_s28 + $0xa8] sm:$0xff] }
  0x19   : > { %205 = vst [vmem:[%s1132_s29 + $0x28] sm:$0xff] %v204_v5  ;;  %v218_v12 = vld [vmem:[%s1127_s28 + $0xc0] sm:$0xff]  ;;  %v220_v13 = vld [vmem:[%s1127_s28 + $0xc8] sm:$0xff] }
  0x1a   : > { %207 = vst [vmem:[%s1132_s29 + $0x30] sm:$0xff] %v206_v6  ;;  %v222_v14 = vld [vmem:[%s1127_s28 + $0xe0] sm:$0xff]  ;;  %v224_v15 = vld [vmem:[%s1127_s28 + $0xe8] sm:$0xff] }
  0x1b   : > { %209 = vst [vmem:[%s1132_s29 + $0x38] sm:$0xff] %v208_v7  ;;  %v226_v16 = vld [vmem:[%s1127_s28 + $0x100] sm:$0xff]  ;;  %v228_v17 = vld [vmem:[%s1127_s28 + $0x108] sm:$0xff] }
  0x1c   : > { %211 = vst [vmem:[%s1132_s29 + $0x40] sm:$0xff] %v210_v8  ;;  %v230_v18 = vld [vmem:[%s1127_s28 + $0x120] sm:$0xff]  ;;  %v232_v19 = vld [vmem:[%s1127_s28 + $0x128] sm:$0xff] }
  0x1d   : > { %213 = vst [vmem:[%s1132_s29 + $0x48] sm:$0xff] %v212_v9  ;;  %v234_v20 = vld [vmem:[%s1127_s28 + $0x140] sm:$0xff]  ;;  %v236_v21 = vld [vmem:[%s1127_s28 + $0x148] sm:$0xff] }
  0x1e   : > { %215 = vst [vmem:[%s1132_s29 + $0x50] sm:$0xff] %v214_v10  ;;  %v238_v22 = vld [vmem:[%s1127_s28 + $0x160] sm:$0xff]  ;;  %v240_v23 = vld [vmem:[%s1127_s28 + $0x168] sm:$0xff] }
  0x1f   : > { %217 = vst [vmem:[%s1132_s29 + $0x58] sm:$0xff] %v216_v11  ;;  %v242_v24 = vld [vmem:[%s1127_s28 + $0x180] sm:$0xff]  ;;  %v244_v25 = vld [vmem:[%s1127_s28 + $0x188] sm:$0xff] }
  0x20   : > { %219 = vst [vmem:[%s1132_s29 + $0x60] sm:$0xff] %v218_v12  ;;  %v246_v26 = vld [vmem:[%s1127_s28 + $0x1a0] sm:$0xff]  ;;  %v248_v27 = vld [vmem:[%s1127_s28 + $0x1a8] sm:$0xff] }
  0x21   : > { %221 = vst [vmem:[%s1132_s29 + $0x68] sm:$0xff] %v220_v13  ;;  %v250_v28 = vld [vmem:[%s1127_s28 + $0x1c0] sm:$0xff]  ;;  %v252_v29 = vld [vmem:[%s1127_s28 + $0x1c8] sm:$0xff] }
  0x22   : > { %223 = vst [vmem:[%s1132_s29 + $0x70] sm:$0xff] %v222_v14  ;;  %v254_v30 = vld [vmem:[%s1127_s28 + $0x1e0] sm:$0xff]  ;;  %v256_v31 = vld [vmem:[%s1127_s28 + $0x1e8] sm:$0xff] }
  0x23   : > { %225 = vst [vmem:[%s1132_s29 + $0x78] sm:$0xff] %v224_v15 }
  0x24   : > { %227 = vst [vmem:[%s1132_s29 + $0x80] sm:$0xff] %v226_v16 }
  0x25   : > { %229 = vst [vmem:[%s1132_s29 + $0x88] sm:$0xff] %v228_v17 }
  0x26   : > { %231 = vst [vmem:[%s1132_s29 + $0x90] sm:$0xff] %v230_v18 }
  0x27   : > { %233 = vst [vmem:[%s1132_s29 + $0x98] sm:$0xff] %v232_v19 }
  0x28   : > { %235 = vst [vmem:[%s1132_s29 + $0xa0] sm:$0xff] %v234_v20 }
  0x29   : > { %237 = vst [vmem:[%s1132_s29 + $0xa8] sm:$0xff] %v236_v21 }
  0x2a   : > { %239 = vst [vmem:[%s1132_s29 + $0xb0] sm:$0xff] %v238_v22 }
  0x2b   : > { %241 = vst [vmem:[%s1132_s29 + $0xb8] sm:$0xff] %v240_v23 }
  0x2c   : > { %243 = vst [vmem:[%s1132_s29 + $0xc0] sm:$0xff] %v242_v24 }
  0x2d   : > { %245 = vst [vmem:[%s1132_s29 + $0xc8] sm:$0xff] %v244_v25 }
  0x2e   : > { %247 = vst [vmem:[%s1132_s29 + $0xd0] sm:$0xff] %v246_v26 }
  0x2f   : > { %249 = vst [vmem:[%s1132_s29 + $0xd8] sm:$0xff] %v248_v27 }
  0x30   : > { %251 = vst [vmem:[%s1132_s29 + $0xe0] sm:$0xff] %v250_v28 }
  0x31   : > { %253 = vst [vmem:[%s1132_s29 + $0xe8] sm:$0xff] %v252_v29 }
  0x32   : > { %255 = vst [vmem:[%s1132_s29 + $0xf0] sm:$0xff] %v254_v30 }
  0x33   : > { %257 = vst [vmem:[%s1132_s29 + $0xf8] sm:$0xff] %v256_v31 }
  0x34 PF: > { %p803_p8 = scmp.ge.s32.totalorder %s1057_s16, 1  ;;  %p270_p9 = scmp.lt.s32.totalorder %s1057_s16, 3 }
  0x36   : > { %p271_p10 = pnand %p803_p8, %p270_p9 }
  0x37   : > { %s277_s30 = sand.u32 (!%p271_p10), 1, %s1041_s12   ;;  %s806_s8 = sshll.u32 (!%p271_p10), %s1049_s14, 2 }
  0x38   : > { %274 = sbr.rel (%p271_p10) target bundleno = 250 (0xfa), region = 51  ;;  %s804_s4 = sshll.u32 (!%p271_p10), %s277_s30, 8 }
  0x39   : > { %s1200_s5 = scalar_lea.vmem (!%p271_p10), [#allocation3], %s804_s4  ;;  %p323_p11 = scmp.lt.s32.totalorder (!%p271_p10), %s806_s8, 7 }
  0x3a   : > { %s805_s18 = sshll.u32 (!%p271_p10), %s277_s30, 5 }
  0x3b   : > { %s310_s19 = scalar_lea.vmem (!%p271_p10), [#allocation4], %s805_s18 }
  0x3d   : > { %v925_v32 = vld [vmem:[%s1200_s5 + $0xe0] sm:$0xf]  ;;  %v976_v33 = vld [vmem:[%s1200_s5 + $0xec] sm:$0xf0]  ;;  %v974_v34 = vld [vmem:[%s1200_s5 + $0xe4] sm:$0xf] }
  0x3e   : > { %v926_v35 = vor.u32 %v976_v33, %v925_v32  ;;  %v927_v36 = vld [vmem:[%s1200_s5 + $0xf0] sm:$0xf0]  ;;  %v933_v37 = vld [vmem:[%s1200_s5 + $0xe8] sm:$0xf]  ;;  %v977_v38 = vld [vmem:[%s1200_s5 + $0xf4] sm:$0xf0] }
  0x3f   : > { %v930_v39 = vor.u32 %v974_v34, %v927_v36  ;;  %v934_v40 = vor.u32 %v977_v38, %v933_v37  ;;  %v975_v41 = vld [vmem:[%s1200_s5 + $0xec] sm:$0xf]  ;;  %v935_v42 = vld [vmem:[%s1200_s5 + $0xf8] sm:$0xf0]  ;;  %v909_v43 = vld [vmem:[%s1200_s5 + $0xc0] sm:$0xf] }
  0x40   : > { %541 = vmatpush.bf16.msra.mxu0 %v926_v35  ;;  %v938_v44 = vor.u32 %v975_v41, %v935_v42  ;;  %v972_v45 = vld [vmem:[%s1200_s5 + $0xcc] sm:$0xf0]  ;;  %v970_v46 = vld [vmem:[%s1200_s5 + $0xc4] sm:$0xf]  ;;  %v911_v47 = vld [vmem:[%s1200_s5 + $0xd0] sm:$0xf0] }
  0x41   : > { %555 = vmatpush.bf16.msra.mxu1 %v930_v39  ;;  %569 = vmatpush.bf16.msra.mxu2 %v934_v40  ;;  %v910_v48 = vor.u32 %v972_v45, %v909_v43  ;;  %v914_v49 = vor.u32 %v970_v46, %v911_v47  ;;  %v917_v50 = vld [vmem:[%s1200_s5 + $0xc8] sm:$0xf]  ;;  %v973_v51 = vld [vmem:[%s1200_s5 + $0xd4] sm:$0xf0]  ;;  %v971_v52 = vld [vmem:[%s1200_s5 + $0xcc] sm:$0xf] }
  0x42   : > { %583 = vmatpush.bf16.msra.mxu3 %v938_v44  ;;  %v918_v53 = vor.u32 %v973_v51, %v917_v50  ;;  %v919_v54 = vld [vmem:[%s1200_s5 + $0xd8] sm:$0xf0]  ;;  %v893_v55 = vld [vmem:[%s1200_s5 + $0xa0] sm:$0xf]  ;;  %v968_v56 = vld [vmem:[%s1200_s5 + $0xac] sm:$0xf0] }
  0x43   : > { %v922_v57 = vor.u32 %v971_v52, %v919_v54  ;;  %v966_v58 = vld [vmem:[%s1200_s5 + $0xa4] sm:$0xf]  ;;  %v895_v59 = vld [vmem:[%s1200_s5 + $0xb0] sm:$0xf0]  ;;  %v901_v60 = vld [vmem:[%s1200_s5 + $0xa8] sm:$0xf]  ;;  %v894_v61 = vor.u32 %v968_v56, %v893_v55 }
  0x44   : > { %542 = vmatpush.bf16.msra.mxu0 %v910_v48  ;;  %v969_v62 = vld [vmem:[%s1200_s5 + $0xb4] sm:$0xf0]  ;;  %v967_v63 = vld [vmem:[%s1200_s5 + $0xac] sm:$0xf]  ;;  %v903_v0 = vld [vmem:[%s1200_s5 + $0xb8] sm:$0xf0]  ;;  %v898_v1 = vor.u32 %v966_v58, %v895_v59 }
  0x45   : > { %556 = vmatpush.bf16.msra.mxu1 %v914_v49  ;;  %570 = vmatpush.bf16.msra.mxu2 %v918_v53  ;;  %v902_v2 = vor.u32 %v969_v62, %v901_v60  ;;  %v877_v3 = vld [vmem:[%s1200_s5 + $0x80] sm:$0xf]  ;;  %v964_v4 = vld [vmem:[%s1200_s5 + $0x8c] sm:$0xf0]  ;;  %v962_v5 = vld [vmem:[%s1200_s5 + $0x84] sm:$0xf]  ;;  %v906_v6 = vor.u32 %v967_v63, %v903_v0 }
  0x46   : > { %584 = vmatpush.bf16.msra.mxu3 %v922_v57  ;;  %v879_v7 = vld [vmem:[%s1200_s5 + $0x90] sm:$0xf0]  ;;  %v885_v8 = vld [vmem:[%s1200_s5 + $0x88] sm:$0xf]  ;;  %v965_v9 = vld [vmem:[%s1200_s5 + $0x94] sm:$0xf0]  ;;  %v878_v12 = vor.u32 %v964_v4, %v877_v3 }
  0x47   : > { %v963_v10 = vld [vmem:[%s1200_s5 + $0x8c] sm:$0xf]  ;;  %v887_v11 = vld [vmem:[%s1200_s5 + $0x98] sm:$0xf0]  ;;  %v882_v13 = vor.u32 %v962_v5, %v879_v7  ;;  %v886_v14 = vor.u32 %v965_v9, %v885_v8  ;;  %v861_v15 = vld [vmem:[%s1200_s5 + $0x60] sm:$0xf] }
  0x48   : > { %543 = vmatpush.bf16.msra.mxu0 %v894_v61  ;;  %v960_v16 = vld [vmem:[%s1200_s5 + $0x6c] sm:$0xf0]  ;;  %v958_v17 = vld [vmem:[%s1200_s5 + $0x64] sm:$0xf]  ;;  %v890_v18 = vor.u32 %v963_v10, %v887_v11  ;;  %v863_v19 = vld [vmem:[%s1200_s5 + $0x70] sm:$0xf0] }
  0x49   : > { %557 = vmatpush.bf16.msra.mxu1 %v898_v1  ;;  %571 = vmatpush.bf16.msra.mxu2 %v902_v2  ;;  %v869_v20 = vld [vmem:[%s1200_s5 + $0x68] sm:$0xf]  ;;  %v961_v21 = vld [vmem:[%s1200_s5 + $0x74] sm:$0xf0]  ;;  %v959_v22 = vld [vmem:[%s1200_s5 + $0x6c] sm:$0xf]  ;;  %v862_v24 = vor.u32 %v960_v16, %v861_v15  ;;  %v866_v25 = vor.u32 %v958_v17, %v863_v19 }
  0x4a   : > { %585 = vmatpush.bf16.msra.mxu3 %v906_v6  ;;  %v871_v23 = vld [vmem:[%s1200_s5 + $0x78] sm:$0xf0]  ;;  %v870_v26 = vor.u32 %v961_v21, %v869_v20  ;;  %v845_v27 = vld [vmem:[%s1200_s5 + $0x40] sm:$0xf]  ;;  %v956_v28 = vld [vmem:[%s1200_s5 + $0x4c] sm:$0xf0] }
  0x4b   : > { %v954_v29 = vld [vmem:[%s1200_s5 + $0x44] sm:$0xf]  ;;  %v874_v30 = vor.u32 %v959_v22, %v871_v23  ;;  %v847_v31 = vld [vmem:[%s1200_s5 + $0x50] sm:$0xf0]  ;;  %v853_v32 = vld [vmem:[%s1200_s5 + $0x48] sm:$0xf]  ;;  %v846_v36 = vor.u32 %v956_v28, %v845_v27 }
  0x4c   : > { %544 = vmatpush.bf16.msra.mxu0 %v878_v12  ;;  %v957_v33 = vld [vmem:[%s1200_s5 + $0x54] sm:$0xf0]  ;;  %v955_v34 = vld [vmem:[%s1200_s5 + $0x4c] sm:$0xf]  ;;  %v855_v35 = vld [vmem:[%s1200_s5 + $0x58] sm:$0xf0]  ;;  %v850_v37 = vor.u32 %v954_v29, %v847_v31 }
  0x4d   : > { %558 = vmatpush.bf16.msra.mxu1 %v882_v13  ;;  %572 = vmatpush.bf16.msra.mxu2 %v886_v14  ;;  %v854_v38 = vor.u32 %v957_v33, %v853_v32  ;;  %v829_v39 = vld [vmem:[%s1200_s5 + $0x20] sm:$0xf]  ;;  %v952_v40 = vld [vmem:[%s1200_s5 + $0x2c] sm:$0xf0]  ;;  %v950_v41 = vld [vmem:[%s1200_s5 + $0x24] sm:$0xf]  ;;  %v858_v42 = vor.u32 %v955_v34, %v855_v35 }
  0x4e   : > { %586 = vmatpush.bf16.msra.mxu3 %v890_v18  ;;  %v831_v43 = vld [vmem:[%s1200_s5 + $0x30] sm:$0xf0]  ;;  %v837_v44 = vld [vmem:[%s1200_s5 + $0x28] sm:$0xf]  ;;  %v953_v45 = vld [vmem:[%s1200_s5 + $0x34] sm:$0xf0]  ;;  %v830_v48 = vor.u32 %v952_v40, %v829_v39 }
  0x4f   : > { %v951_v46 = vld [vmem:[%s1200_s5 + $0x2c] sm:$0xf]  ;;  %v839_v47 = vld [vmem:[%s1200_s5 + $0x38] sm:$0xf0]  ;;  %v834_v49 = vor.u32 %v950_v41, %v831_v43  ;;  %v838_v50 = vor.u32 %v953_v45, %v837_v44  ;;  %v813_v51 = vld [vmem:[%s1200_s5] sm:$0xf] }
  0x50   : > { %545 = vmatpush.bf16.msra.mxu0 %v862_v24  ;;  %v948_v52 = vld [vmem:[%s1200_s5 + $0xc] sm:$0xf0]  ;;  %v946_v53 = vld [vmem:[%s1200_s5 + $0x4] sm:$0xf]  ;;  %v842_v54 = vor.u32 %v951_v46, %v839_v47  ;;  %v815_v55 = vld [vmem:[%s1200_s5 + $0x10] sm:$0xf0] }
  0x51   : > { %559 = vmatpush.bf16.msra.mxu1 %v866_v25  ;;  %573 = vmatpush.bf16.msra.mxu2 %v870_v26  ;;  %v821_v56 = vld [vmem:[%s1200_s5 + $0x8] sm:$0xf]  ;;  %v949_v57 = vld [vmem:[%s1200_s5 + $0x14] sm:$0xf0]  ;;  %v947_v58 = vld [vmem:[%s1200_s5 + $0xc] sm:$0xf]  ;;  %v814_v60 = vor.u32 %v948_v52, %v813_v51  ;;  %v818_v61 = vor.u32 %v946_v53, %v815_v55 }
  0x52   : > { %587 = vmatpush.bf16.msra.mxu3 %v874_v30  ;;  %v823_v59 = vld [vmem:[%s1200_s5 + $0x18] sm:$0xf0]  ;;  %v822_v62 = vor.u32 %v949_v57, %v821_v56  ;;  %v945_v0 = vld [vmem:[%s1296_s0] sm:$0xff]  ;;  %s1308_s8 = smov (!%p323_p11, %s806_s8), 7  ;;  %s978_s12 = sshll.u32 (%p1114_p6), %s1049_s14, 4 }
  0x53   : > { %v826_v63 = vor.u32 %v947_v58, %v823_v59  ;;  %s325_s11 = scalar_lea.vmem %s1298_s2, %s1308_s8  ;;  %s670_s24 = scalar_lea.vmem (%p1114_p6), %s1299_s3, %s978_s12 }
  0x54   : > { %546 = vmatpush.bf16.msra.mxu0 %v846_v36  ;;  %v632_v1 = vld [vmem:[%s325_s11] sm:$0xf] }
  0x55   : > { %560 = vmatpush.bf16.msra.mxu1 %v850_v37  ;;  %574 = vmatpush.bf16.msra.mxu2 %v854_v38  ;;  %v634_v2 = vperm.slane %v632_v1, 0  ;;  %v635_v3 = vperm.slane %v632_v1, 1  ;;  %v636_v9 = vperm.slane %v632_v1, 2  ;;  %v637_v10 = vperm.slane %v632_v1, 3 }
  0x56   : > { %588 = vmatpush.bf16.msra.mxu3 %v858_v42 }
  0x58   : > { %547 = vmatpush.bf16.msra.mxu0 %v830_v48 }
  0x59   : > { %561 = vmatpush.bf16.msra.mxu1 %v834_v49  ;;  %575 = vmatpush.bf16.msra.mxu2 %v838_v50 }
  0x5a   : > { %589 = vmatpush.bf16.msra.mxu3 %v842_v54 }
  0x5c   : > { %548 = vmatpush.bf16.msra.mxu0 %v814_v60 }
  0x5d   : > { %562 = vmatpush.bf16.msra.mxu1 %v818_v61  ;;  %576 = vmatpush.bf16.msra.mxu2 %v822_v62 }
  0x5e   : > { %590 = vmatpush.bf16.msra.mxu3 %v826_v63 }
  0x5f   : > { %549 = vmatmul.bf16.vlgmr.msra.gmra.mxu0 %v945_v0 }
  0x60   : > { %563 = vmatmul.bf16.vlgmr.msra.gmra.mxu1 %v945_v0  ;;  %577 = vmatmul.bf16.vlgmr.msra.gmra.mxu2 %v945_v0 }
  0x61   : > { %591 = vmatmul.bf16.vlgmr.msra.gmra.mxu3 %v945_v0 }
  0xdc   : > { %v550_v4 = vpop.f32.mrf.mxu0 }
  0xdd   : > { %v642_v5 = vadd.f32 %v634_v2, %v550_v4  ;;  %v564_v6 = vpop.f32.mrf.mxu1 }
  0xde   : > { %v643_v7 = vadd.f32 %v635_v3, %v564_v6 }
  0xe0   : > { %v650_v8 = vpack.c.bf16 %v643_v7, %v642_v5 }
  0xe2   : > { %654 = vst [vmem:[%s310_s19] sm:$0xff] %v650_v8 }
  0xe3   : > { %v578_v11 = vpop.f32.mrf.mxu2 }
  0xe4   : > { %v644_v12 = vadd.f32 %v636_v9, %v578_v11  ;;  %v592_v13 = vpop.f32.mrf.mxu3  ;;  %v552_v14 = vpop.f32.mrf.mxu0 }
  0xe5   : > { %v645_v15 = vadd.f32 %v637_v10, %v592_v13  ;;  %v646_v16 = vadd.f32 %v634_v2, %v552_v14  ;;  %v566_v17 = vpop.f32.mrf.mxu1 }
  0xe6   : > { %v647_v18 = vadd.f32 %v635_v3, %v566_v17 }
  0xe7   : > { %v651_v19 = vpack.c.bf16 %v645_v15, %v644_v12 }
  0xe8   : > { %v652_v20 = vpack.c.bf16 %v647_v18, %v646_v16 }
  0xe9   : > { %655 = vst [vmem:[%s310_s19 + $0x8] sm:$0xff] %v651_v19  ;;  %v683_v26 = vld [vmem:[%s310_s19] sm:$0xff] (%p1114_p6) }
  0xea   : > { %656 = vst [vmem:[%s310_s19 + $0x10] sm:$0xff] %v652_v20 }
  0xeb   : > { %v580_v21 = vpop.f32.mrf.mxu2  ;;  %684 = vst [vmem:[%s670_s24] sm:$0xff] (%p1114_p6), %v683_v26 }
  0xec   : > { %v648_v22 = vadd.f32 %v636_v9, %v580_v21  ;;  %v594_v23 = vpop.f32.mrf.mxu3 }
  0xed   : > { %v649_v24 = vadd.f32 %v637_v10, %v594_v23  ;;  %664 = sbr.rel (!%p1114_p6) target bundleno = 250 (0xfa), region = 67 }
  0xef   : > { %v653_v25 = vpack.c.bf16 %v649_v24, %v648_v22 }
  0xf0   : > { %v685_v27 = vld [vmem:[%s310_s19 + $0x8] sm:$0xff] (%p1114_p6) }
  0xf1   : > { %657 = vst [vmem:[%s310_s19 + $0x18] sm:$0xff] %v653_v25  ;;  %v687_v28 = vld [vmem:[%s310_s19 + $0x10] sm:$0xff] (%p1114_p6) }
  0xf2   : > { %686 = vst [vmem:[%s670_s24 + $0x8] sm:$0xff] %v685_v27 }
  0xf3   : > { %688 = vst [vmem:[%s670_s24 + $0x20] sm:$0xff] %v687_v28 }
  0xf8   : > { %v689_v29 = vld [vmem:[%s310_s19 + $0x18] sm:$0xff] }
  0xf9   : > { %690 = vst [vmem:[%s670_s24 + $0x28] sm:$0xff] %v689_v29 }
  0xfa PF: > { %s13_s16 = sadd.s32 1, %s1057_s16   ;;  %s1301_s12 = smov %s1045_s13 }
  0xfb   : > { %p10_p12 = scmp.ge.s32.totalorder %s13_s16, 4   ;;  %s1302_s13 = smov %s1119_s22 }
  0xfc   : > { %s1303_s14 = smov %s1053_s15  ;;  %s1304_s15 = smov %s1306_s17 }
  0xfd   :  { %12 = sbr.rel (!%p10_p12) target bundleno = 3 (0x3), region = 127 }

// kernel: seq2seq_forward.10
= control target key start
LH: loop header
LB: loop body
LE: loop exit
PB: predicated region body
PF: predicated region fallthrough
CT: control target
= control target key end

     0   :  { %s742_s1 = inlined_call_operand.vmem [shape: bf16[128,512], index: 1, kind: input, shape index: {}]   ;;  %s743_s0 = inlined_call_operand.vmem [shape: bf16[16,128], index: 0, kind: input, shape index: {}]   ;;  %s744_s2 = inlined_call_operand.vmem [shape: f32[1,512], index: 2, kind: input, shape index: {}]   ;;  %s745_s3 = inlined_call_operand.vmem [shape: bf16[16,512], index: 3, kind: output, shape index: {}]  }
   0x1   :  { %v465_v0 = vld [vmem:[%s742_s1 + $0xe0] sm:$0xf]  ;;  %v510_v1 = vld [vmem:[%s742_s1 + $0xec] sm:$0xf0]  ;;  %v508_v2 = vld [vmem:[%s742_s1 + $0xe4] sm:$0xf] }
   0x2   :  { %v466_v3 = vor.u32 %v510_v1, %v465_v0  ;;  %v467_v4 = vld [vmem:[%s742_s1 + $0xf0] sm:$0xf0]  ;;  %v473_v5 = vld [vmem:[%s742_s1 + $0xe8] sm:$0xf]  ;;  %v511_v6 = vld [vmem:[%s742_s1 + $0xf4] sm:$0xf0] }
   0x3   :  { %v470_v7 = vor.u32 %v508_v2, %v467_v4  ;;  %v474_v8 = vor.u32 %v511_v6, %v473_v5  ;;  %v509_v9 = vld [vmem:[%s742_s1 + $0xec] sm:$0xf]  ;;  %v475_v10 = vld [vmem:[%s742_s1 + $0xf8] sm:$0xf0]  ;;  %v449_v11 = vld [vmem:[%s742_s1 + $0xc0] sm:$0xf] }
   0x4   :  { %226 = vmatpush.bf16.msra.mxu0 %v466_v3  ;;  %v478_v12 = vor.u32 %v509_v9, %v475_v10  ;;  %v506_v13 = vld [vmem:[%s742_s1 + $0xcc] sm:$0xf0]  ;;  %v504_v14 = vld [vmem:[%s742_s1 + $0xc4] sm:$0xf]  ;;  %v451_v15 = vld [vmem:[%s742_s1 + $0xd0] sm:$0xf0] }
   0x5   :  { %240 = vmatpush.bf16.msra.mxu1 %v470_v7  ;;  %254 = vmatpush.bf16.msra.mxu2 %v474_v8  ;;  %v450_v16 = vor.u32 %v506_v13, %v449_v11  ;;  %v454_v17 = vor.u32 %v504_v14, %v451_v15  ;;  %v457_v18 = vld [vmem:[%s742_s1 + $0xc8] sm:$0xf]  ;;  %v507_v19 = vld [vmem:[%s742_s1 + $0xd4] sm:$0xf0]  ;;  %v505_v20 = vld [vmem:[%s742_s1 + $0xcc] sm:$0xf] }
   0x6   :  { %268 = vmatpush.bf16.msra.mxu3 %v478_v12  ;;  %v458_v21 = vor.u32 %v507_v19, %v457_v18  ;;  %v459_v22 = vld [vmem:[%s742_s1 + $0xd8] sm:$0xf0]  ;;  %v433_v23 = vld [vmem:[%s742_s1 + $0xa0] sm:$0xf]  ;;  %v502_v24 = vld [vmem:[%s742_s1 + $0xac] sm:$0xf0] }
   0x7   :  { %v462_v25 = vor.u32 %v505_v20, %v459_v22  ;;  %v500_v26 = vld [vmem:[%s742_s1 + $0xa4] sm:$0xf]  ;;  %v435_v27 = vld [vmem:[%s742_s1 + $0xb0] sm:$0xf0]  ;;  %v441_v28 = vld [vmem:[%s742_s1 + $0xa8] sm:$0xf]  ;;  %v434_v29 = vor.u32 %v502_v24, %v433_v23 }
   0x8   :  { %227 = vmatpush.bf16.msra.mxu0 %v450_v16  ;;  %v503_v30 = vld [vmem:[%s742_s1 + $0xb4] sm:$0xf0]  ;;  %v501_v31 = vld [vmem:[%s742_s1 + $0xac] sm:$0xf]  ;;  %v443_v32 = vld [vmem:[%s742_s1 + $0xb8] sm:$0xf0]  ;;  %v438_v33 = vor.u32 %v500_v26, %v435_v27 }
   0x9   :  { %241 = vmatpush.bf16.msra.mxu1 %v454_v17  ;;  %255 = vmatpush.bf16.msra.mxu2 %v458_v21  ;;  %v442_v34 = vor.u32 %v503_v30, %v441_v28  ;;  %v417_v35 = vld [vmem:[%s742_s1 + $0x80] sm:$0xf]  ;;  %v498_v36 = vld [vmem:[%s742_s1 + $0x8c] sm:$0xf0]  ;;  %v496_v37 = vld [vmem:[%s742_s1 + $0x84] sm:$0xf]  ;;  %v446_v38 = vor.u32 %v501_v31, %v443_v32 }
   0xa   :  { %269 = vmatpush.bf16.msra.mxu3 %v462_v25  ;;  %v419_v39 = vld [vmem:[%s742_s1 + $0x90] sm:$0xf0]  ;;  %v425_v40 = vld [vmem:[%s742_s1 + $0x88] sm:$0xf]  ;;  %v499_v41 = vld [vmem:[%s742_s1 + $0x94] sm:$0xf0]  ;;  %v418_v44 = vor.u32 %v498_v36, %v417_v35 }
   0xb   :  { %v497_v42 = vld [vmem:[%s742_s1 + $0x8c] sm:$0xf]  ;;  %v427_v43 = vld [vmem:[%s742_s1 + $0x98] sm:$0xf0]  ;;  %v422_v45 = vor.u32 %v496_v37, %v419_v39  ;;  %v426_v46 = vor.u32 %v499_v41, %v425_v40  ;;  %v401_v47 = vld [vmem:[%s742_s1 + $0x60] sm:$0xf] }
   0xc   :  { %228 = vmatpush.bf16.msra.mxu0 %v434_v29  ;;  %v494_v48 = vld [vmem:[%s742_s1 + $0x6c] sm:$0xf0]  ;;  %v492_v49 = vld [vmem:[%s742_s1 + $0x64] sm:$0xf]  ;;  %v430_v50 = vor.u32 %v497_v42, %v427_v43  ;;  %v403_v51 = vld [vmem:[%s742_s1 + $0x70] sm:$0xf0] }
   0xd   :  { %242 = vmatpush.bf16.msra.mxu1 %v438_v33  ;;  %256 = vmatpush.bf16.msra.mxu2 %v442_v34  ;;  %v409_v52 = vld [vmem:[%s742_s1 + $0x68] sm:$0xf]  ;;  %v495_v53 = vld [vmem:[%s742_s1 + $0x74] sm:$0xf0]  ;;  %v493_v54 = vld [vmem:[%s742_s1 + $0x6c] sm:$0xf]  ;;  %v402_v56 = vor.u32 %v494_v48, %v401_v47  ;;  %v406_v57 = vor.u32 %v492_v49, %v403_v51 }
   0xe   :  { %270 = vmatpush.bf16.msra.mxu3 %v446_v38  ;;  %v411_v55 = vld [vmem:[%s742_s1 + $0x78] sm:$0xf0]  ;;  %v410_v58 = vor.u32 %v495_v53, %v409_v52  ;;  %v385_v59 = vld [vmem:[%s742_s1 + $0x40] sm:$0xf]  ;;  %v490_v60 = vld [vmem:[%s742_s1 + $0x4c] sm:$0xf0] }
   0xf   :  { %v488_v61 = vld [vmem:[%s742_s1 + $0x44] sm:$0xf]  ;;  %v414_v62 = vor.u32 %v493_v54, %v411_v55  ;;  %v387_v63 = vld [vmem:[%s742_s1 + $0x50] sm:$0xf0]  ;;  %v393_v0 = vld [vmem:[%s742_s1 + $0x48] sm:$0xf]  ;;  %v386_v4 = vor.u32 %v490_v60, %v385_v59 }
  0x10   :  { %229 = vmatpush.bf16.msra.mxu0 %v418_v44  ;;  %v491_v1 = vld [vmem:[%s742_s1 + $0x54] sm:$0xf0]  ;;  %v489_v2 = vld [vmem:[%s742_s1 + $0x4c] sm:$0xf]  ;;  %v395_v3 = vld [vmem:[%s742_s1 + $0x58] sm:$0xf0]  ;;  %v390_v5 = vor.u32 %v488_v61, %v387_v63 }
  0x11   :  { %243 = vmatpush.bf16.msra.mxu1 %v422_v45  ;;  %257 = vmatpush.bf16.msra.mxu2 %v426_v46  ;;  %v394_v6 = vor.u32 %v491_v1, %v393_v0  ;;  %v369_v7 = vld [vmem:[%s742_s1 + $0x20] sm:$0xf]  ;;  %v486_v8 = vld [vmem:[%s742_s1 + $0x2c] sm:$0xf0]  ;;  %v484_v9 = vld [vmem:[%s742_s1 + $0x24] sm:$0xf]  ;;  %v398_v10 = vor.u32 %v489_v2, %v395_v3 }
  0x12   :  { %271 = vmatpush.bf16.msra.mxu3 %v430_v50  ;;  %v371_v11 = vld [vmem:[%s742_s1 + $0x30] sm:$0xf0]  ;;  %v377_v12 = vld [vmem:[%s742_s1 + $0x28] sm:$0xf]  ;;  %v487_v13 = vld [vmem:[%s742_s1 + $0x34] sm:$0xf0]  ;;  %v370_v16 = vor.u32 %v486_v8, %v369_v7 }
  0x13   :  { %v485_v14 = vld [vmem:[%s742_s1 + $0x2c] sm:$0xf]  ;;  %v379_v15 = vld [vmem:[%s742_s1 + $0x38] sm:$0xf0]  ;;  %v374_v17 = vor.u32 %v484_v9, %v371_v11  ;;  %v378_v18 = vor.u32 %v487_v13, %v377_v12  ;;  %v353_v19 = vld [vmem:[%s742_s1] sm:$0xf] }
  0x14   :  { %230 = vmatpush.bf16.msra.mxu0 %v402_v56  ;;  %v482_v20 = vld [vmem:[%s742_s1 + $0xc] sm:$0xf0]  ;;  %v480_v21 = vld [vmem:[%s742_s1 + $0x4] sm:$0xf]  ;;  %v382_v22 = vor.u32 %v485_v14, %v379_v15  ;;  %v355_v23 = vld [vmem:[%s742_s1 + $0x10] sm:$0xf0] }
  0x15   :  { %244 = vmatpush.bf16.msra.mxu1 %v406_v57  ;;  %258 = vmatpush.bf16.msra.mxu2 %v410_v58  ;;  %v361_v24 = vld [vmem:[%s742_s1 + $0x8] sm:$0xf]  ;;  %v483_v25 = vld [vmem:[%s742_s1 + $0x14] sm:$0xf0]  ;;  %v481_v26 = vld [vmem:[%s742_s1 + $0xc] sm:$0xf]  ;;  %v354_v28 = vor.u32 %v482_v20, %v353_v19  ;;  %v358_v29 = vor.u32 %v480_v21, %v355_v23 }
  0x16   :  { %272 = vmatpush.bf16.msra.mxu3 %v414_v62  ;;  %v363_v27 = vld [vmem:[%s742_s1 + $0x18] sm:$0xf0]  ;;  %v362_v30 = vor.u32 %v483_v25, %v361_v24  ;;  %v479_v32 = vld [vmem:[%s743_s0] sm:$0xff] }
  0x17   :  { %v366_v31 = vor.u32 %v481_v26, %v363_v27  ;;  %v317_v33 = vld [vmem:[%s744_s2] sm:$0xf] }
  0x18   :  { %231 = vmatpush.bf16.msra.mxu0 %v386_v4  ;;  %v319_v34 = vperm.slane %v317_v33, 0  ;;  %v320_v35 = vperm.slane %v317_v33, 1  ;;  %v321_v41 = vperm.slane %v317_v33, 2  ;;  %v322_v42 = vperm.slane %v317_v33, 3 }
  0x19   :  { %245 = vmatpush.bf16.msra.mxu1 %v390_v5  ;;  %259 = vmatpush.bf16.msra.mxu2 %v394_v6 }
  0x1a   :  { %273 = vmatpush.bf16.msra.mxu3 %v398_v10 }
  0x1c   :  { %232 = vmatpush.bf16.msra.mxu0 %v370_v16 }
  0x1d   :  { %246 = vmatpush.bf16.msra.mxu1 %v374_v17  ;;  %260 = vmatpush.bf16.msra.mxu2 %v378_v18 }
  0x1e   :  { %274 = vmatpush.bf16.msra.mxu3 %v382_v22 }
  0x20   :  { %233 = vmatpush.bf16.msra.mxu0 %v354_v28 }
  0x21   :  { %247 = vmatpush.bf16.msra.mxu1 %v358_v29  ;;  %261 = vmatpush.bf16.msra.mxu2 %v362_v30 }
  0x22   :  { %275 = vmatpush.bf16.msra.mxu3 %v366_v31 }
  0x23   :  { %234 = vmatmul.bf16.vlgmr.msra.gmra.mxu0 %v479_v32 }
  0x24   :  { %248 = vmatmul.bf16.vlgmr.msra.gmra.mxu1 %v479_v32  ;;  %262 = vmatmul.bf16.vlgmr.msra.gmra.mxu2 %v479_v32 }
  0x25   :  { %276 = vmatmul.bf16.vlgmr.msra.gmra.mxu3 %v479_v32 }
  0xa0   :  { %v235_v36 = vpop.f32.mrf.mxu0 }
  0xa1   :  { %v327_v37 = vadd.f32 %v319_v34, %v235_v36  ;;  %v249_v38 = vpop.f32.mrf.mxu1 }
  0xa2   :  { %v328_v39 = vadd.f32 %v320_v35, %v249_v38 }
  0xa4   :  { %v335_v40 = vpack.c.bf16 %v328_v39, %v327_v37 }
  0xa6   :  { %339 = vst [vmem:[%s745_s3] sm:$0xff] %v335_v40 }
  0xa7   :  { %v263_v43 = vpop.f32.mrf.mxu2 }
  0xa8   :  { %v329_v44 = vadd.f32 %v321_v41, %v263_v43  ;;  %v277_v45 = vpop.f32.mrf.mxu3  ;;  %v237_v46 = vpop.f32.mrf.mxu0 }
  0xa9   :  { %v330_v47 = vadd.f32 %v322_v42, %v277_v45  ;;  %v331_v48 = vadd.f32 %v319_v34, %v237_v46  ;;  %v251_v49 = vpop.f32.mrf.mxu1 }
  0xaa   :  { %v332_v50 = vadd.f32 %v320_v35, %v251_v49 }
  0xab   :  { %v336_v51 = vpack.c.bf16 %v330_v47, %v329_v44 }
  0xac   :  { %v337_v52 = vpack.c.bf16 %v332_v50, %v331_v48 }
  0xad   :  { %340 = vst [vmem:[%s745_s3 + $0x8] sm:$0xff] %v336_v51 }
  0xae   :  { %341 = vst [vmem:[%s745_s3 + $0x10] sm:$0xff] %v337_v52 }
  0xaf   :  { %v265_v53 = vpop.f32.mrf.mxu2 }
  0xb0   :  { %v333_v54 = vadd.f32 %v321_v41, %v265_v53  ;;  %v279_v55 = vpop.f32.mrf.mxu3 }
  0xb1   :  { %v334_v56 = vadd.f32 %v322_v42, %v279_v55 }
  0xb3   :  { %v338_v57 = vpack.c.bf16 %v334_v56, %v333_v54 }
  0xb5   :  { %342 = vst [vmem:[%s745_s3 + $0x18] sm:$0xff] %v338_v57 }

// kernel: seq2seq_forward.12
= control target key start
LH: loop header
LB: loop body
LE: loop exit
PB: predicated region body
PF: predicated region fallthrough
CT: control target
= control target key end

     0   :  { %s393_s3 = inlined_call_operand.vmem [shape: bf16[128,128], index: 3, kind: input, shape index: {}]   ;;  %s394_s1 = inlined_call_operand.vmem [shape: bf16[128,128], index: 1, kind: input, shape index: {}]   ;;  %s395_s2 = inlined_call_operand.vmem [shape: bf16[16,128], index: 2, kind: input, shape index: {}]   ;;  %s396_s0 = inlined_call_operand.vmem [shape: bf16[16,128], index: 0, kind: input, shape index: {}]   ;;  %s397_s4 = inlined_call_operand.vmem [shape: f32[16,128], index: 4, kind: output, shape index: {}]  }
   0x1   :  { %v303_v0 = vld [vmem:[%s393_s3 + $0x38] sm:$0xff]  ;;  %v302_v2 = vld [vmem:[%s393_s3 + $0x30] sm:$0xff]  ;;  %v301_v4 = vld [vmem:[%s393_s3 + $0x28] sm:$0xff] }
   0x2   :  { %v294_v1 = vld [vmem:[%s394_s1 + $0x38] sm:$0xff]  ;;  %113 = vmatpush.bf16.msra.mxu0 %v303_v0  ;;  %v293_v3 = vld [vmem:[%s394_s1 + $0x30] sm:$0xff]  ;;  %v292_v5 = vld [vmem:[%s394_s1 + $0x28] sm:$0xff] }
   0x3   :  { %181 = vmatpush.bf16.msra.mxu1 %v294_v1  ;;  %v300_v6 = vld [vmem:[%s393_s3 + $0x20] sm:$0xff]  ;;  %v299_v8 = vld [vmem:[%s393_s3 + $0x18] sm:$0xff]  ;;  %v298_v10 = vld [vmem:[%s393_s3 + $0x10] sm:$0xff] }
   0x4   :  { %v291_v7 = vld [vmem:[%s394_s1 + $0x20] sm:$0xff]  ;;  %v290_v9 = vld [vmem:[%s394_s1 + $0x18] sm:$0xff]  ;;  %v289_v11 = vld [vmem:[%s394_s1 + $0x10] sm:$0xff] }
   0x5   :  { %v297_v12 = vld [vmem:[%s393_s3 + $0x8] sm:$0xff]  ;;  %v296_v14 = vld [vmem:[%s393_s3] sm:$0xff] }
   0x6   :  { %114 = vmatpush.bf16.msra.mxu0 %v302_v2  ;;  %v288_v13 = vld [vmem:[%s394_s1 + $0x8] sm:$0xff]  ;;  %v287_v15 = vld [vmem:[%s394_s1] sm:$0xff] }
   0x7   :  { %182 = vmatpush.bf16.msra.mxu1 %v293_v3  ;;  %v295_v16 = vld [vmem:[%s395_s2] sm:$0xff] }
   0x8   :  { %v286_v17 = vld [vmem:[%s396_s0] sm:$0xff] }
   0xa   :  { %115 = vmatpush.bf16.msra.mxu0 %v301_v4 }
   0xb   :  { %183 = vmatpush.bf16.msra.mxu1 %v292_v5 }
   0xe   :  { %116 = vmatpush.bf16.msra.mxu0 %v300_v6 }
   0xf   :  { %184 = vmatpush.bf16.msra.mxu1 %v291_v7 }
  0x12   :  { %117 = vmatpush.bf16.msra.mxu0 %v299_v8 }
  0x13   :  { %185 = vmatpush.bf16.msra.mxu1 %v290_v9 }
  0x16   :  { %118 = vmatpush.bf16.msra.mxu0 %v298_v10 }
  0x17   :  { %186 = vmatpush.bf16.msra.mxu1 %v289_v11 }
  0x1a   :  { %119 = vmatpush.bf16.msra.mxu0 %v297_v12 }
  0x1b   :  { %187 = vmatpush.bf16.msra.mxu1 %v288_v13 }
  0x1e   :  { %120 = vmatpush.bf16.msra.mxu0 %v296_v14 }
  0x1f   :  { %188 = vmatpush.bf16.msra.mxu1 %v287_v15 }
  0x21   :  { %121 = vmatmul.bf16.vlgmr.msra.gmra.mxu0 %v295_v16 }
  0x22   :  { %189 = vmatmul.bf16.vlgmr.msra.gmra.mxu1 %v286_v17 }
  0x9e   :  { %v122_v18 = vpop.f32.mrf.mxu0 }
  0x9f   :  { %v190_v19 = vpop.f32.mrf.mxu1 }
  0xa0   :  { %v191_v20 = vadd.f32 %v190_v19, %v122_v18 }
  0xa2   :  { %304 = vtanh.f32 %v191_v20 }
  0xa6   :  { %v124_v21 = vpop.f32.mrf.mxu0 }
  0xa7   :  { %v192_v22 = vpop.f32.mrf.mxu1 }
  0xa8   :  { %v305_v23 = vpop.eup %304  ;;  %v193_v24 = vadd.f32 %v192_v22, %v124_v21 }
  0xa9   :  { %208 = vst [vmem:[%s397_s4] sm:$0xff] %v305_v23 }
  0xaa   :  { %306 = vtanh.f32 %v193_v24 }
  0xb0   :  { %v307_v25 = vpop.eup %306 }
  0xb1   :  { %209 = vst [vmem:[%s397_s4 + $0x8] sm:$0xff] %v307_v25 }

// kernel: seq2seq_forward.13
= control target key start
LH: loop header
LB: loop body
LE: loop exit
PB: predicated region body
PF: predicated region fallthrough
CT: control target
= control target key end

     0   :  { %s391_s3 = inlined_call_operand.vmem [shape: bf16[128,128], index: 3, kind: input, shape index: {}]   ;;  %s392_s1 = inlined_call_operand.vmem [shape: bf16[128,128], index: 1, kind: input, shape index: {}]   ;;  %s393_s2 = inlined_call_operand.vmem [shape: bf16[16,128], index: 2, kind: input, shape index: {}]   ;;  %s394_s0 = inlined_call_operand.vmem [shape: bf16[16,128], index: 0, kind: input, shape index: {}]   ;;  %s395_s4 = inlined_call_operand.vmem [shape: bf16[16,128], index: 4, kind: output, shape index: {}]  }
   0x1   :  { %v303_v0 = vld [vmem:[%s391_s3 + $0x38] sm:$0xff]  ;;  %v302_v2 = vld [vmem:[%s391_s3 + $0x30] sm:$0xff]  ;;  %v301_v4 = vld [vmem:[%s391_s3 + $0x28] sm:$0xff] }
   0x2   :  { %v294_v1 = vld [vmem:[%s392_s1 + $0x38] sm:$0xff]  ;;  %113 = vmatpush.bf16.msra.mxu0 %v303_v0  ;;  %v293_v3 = vld [vmem:[%s392_s1 + $0x30] sm:$0xff]  ;;  %v292_v5 = vld [vmem:[%s392_s1 + $0x28] sm:$0xff] }
   0x3   :  { %181 = vmatpush.bf16.msra.mxu1 %v294_v1  ;;  %v300_v6 = vld [vmem:[%s391_s3 + $0x20] sm:$0xff]  ;;  %v299_v8 = vld [vmem:[%s391_s3 + $0x18] sm:$0xff]  ;;  %v298_v10 = vld [vmem:[%s391_s3 + $0x10] sm:$0xff] }
   0x4   :  { %v291_v7 = vld [vmem:[%s392_s1 + $0x20] sm:$0xff]  ;;  %v290_v9 = vld [vmem:[%s392_s1 + $0x18] sm:$0xff]  ;;  %v289_v11 = vld [vmem:[%s392_s1 + $0x10] sm:$0xff] }
   0x5   :  { %v297_v12 = vld [vmem:[%s391_s3 + $0x8] sm:$0xff]  ;;  %v296_v14 = vld [vmem:[%s391_s3] sm:$0xff] }
   0x6   :  { %114 = vmatpush.bf16.msra.mxu0 %v302_v2  ;;  %v288_v13 = vld [vmem:[%s392_s1 + $0x8] sm:$0xff]  ;;  %v287_v15 = vld [vmem:[%s392_s1] sm:$0xff] }
   0x7   :  { %182 = vmatpush.bf16.msra.mxu1 %v293_v3  ;;  %v295_v16 = vld [vmem:[%s393_s2] sm:$0xff] }
   0x8   :  { %v286_v17 = vld [vmem:[%s394_s0] sm:$0xff] }
   0xa   :  { %115 = vmatpush.bf16.msra.mxu0 %v301_v4 }
   0xb   :  { %183 = vmatpush.bf16.msra.mxu1 %v292_v5 }
   0xe   :  { %116 = vmatpush.bf16.msra.mxu0 %v300_v6 }
   0xf   :  { %184 = vmatpush.bf16.msra.mxu1 %v291_v7 }
  0x12   :  { %117 = vmatpush.bf16.msra.mxu0 %v299_v8 }
  0x13   :  { %185 = vmatpush.bf16.msra.mxu1 %v290_v9 }
  0x16   :  { %118 = vmatpush.bf16.msra.mxu0 %v298_v10 }
  0x17   :  { %186 = vmatpush.bf16.msra.mxu1 %v289_v11 }
  0x1a   :  { %119 = vmatpush.bf16.msra.mxu0 %v297_v12 }
  0x1b   :  { %187 = vmatpush.bf16.msra.mxu1 %v288_v13 }
  0x1e   :  { %120 = vmatpush.bf16.msra.mxu0 %v296_v14 }
  0x1f   :  { %188 = vmatpush.bf16.msra.mxu1 %v287_v15 }
  0x21   :  { %121 = vmatmul.bf16.vlgmr.msra.gmra.mxu0 %v295_v16 }
  0x22   :  { %189 = vmatmul.bf16.vlgmr.msra.gmra.mxu1 %v286_v17 }
  0x9e   :  { %v122_v18 = vpop.f32.mrf.mxu0 }
  0x9f   :  { %v190_v19 = vpop.f32.mrf.mxu1 }
  0xa0   :  { %v191_v22 = vadd.f32 %v190_v19, %v122_v18 }
  0xa6   :  { %v124_v20 = vpop.f32.mrf.mxu0 }
  0xa7   :  { %v192_v21 = vpop.f32.mrf.mxu1 }
  0xa8   :  { %v193_v23 = vadd.f32 %v192_v21, %v124_v20 }
  0xaa   :  { %v307_v24 = vpack.c.bf16 %v193_v23, %v191_v22 }
  0xac   :  { %308 = vst [vmem:[%s395_s4] sm:$0xff] %v307_v24  }

// kernel: seq2seq_forward.11
= control target key start
LH: loop header
LB: loop body
LE: loop exit
PB: predicated region body
PF: predicated region fallthrough
CT: control target
= control target key end

     0   :  { %s1788_s11 = smov 0   ;;  %s1983_s0 = inlined_call_operand.vmem [shape: bf16[8,2,1024], index: 0, kind: input, shape index: {}]   ;;  %s1984_s1 = inlined_call_operand.vmem [shape: s32[2,1], index: 1, kind: input, shape index: {}]   ;;  %s1985_s2 = inlined_call_operand.vmem [shape: bf16[128,512], index: 2, kind: input, shape index: {}]   ;;  %s1986_s4 = inlined_call_operand.vmem [shape: bf16[8,2,128], index: 4, kind: output, shape index: {0}]   ;;  %s1987_s5 = inlined_call_operand.vmem [shape: bf16[8,2,128], index: 5, kind: output, shape index: {1}]   ;;  %s1988_s3 = inlined_call_operand.vmem [shape: bf16[128,512], index: 3, kind: input, shape index: {}]  }
   0x1   :  { %v1138_v0 = vld [vmem:[%s1984_s1] sm:$0x3]  ;;  %v1143_v1 = vld [vmem:[%s1985_s2 + $0x4] sm:$0xf]  ;;  %v1153_v3 = vld [vmem:[%s1985_s2 + $0xc] sm:$0xf] }
   0x2   :  { %1994 = vst [vmem:[#allocation2_spill] sm:$0xff] %v1138_v0  ;;  %v1148_v2 = vld [vmem:[%s1985_s2] sm:$0xf]  ;;  %v1158_v4 = vld [vmem:[%s1985_s2 + $0x8] sm:$0xf] }
   0x3   :  { %1995 = vst [vmem:[#allocation3_spill] sm:$0xff] %v1143_v1  ;;  %v1163_v5 = vld [vmem:[%s1985_s2 + $0x10] sm:$0xf0]  ;;  %v1168_v6 = vld [vmem:[%s1985_s2 + $0xc] sm:$0xf0] }
   0x4   :  { %1996 = vst [vmem:[#allocation4_spill] sm:$0xff] %v1148_v2  ;;  %v1173_v7 = vld [vmem:[%s1985_s2 + $0x18] sm:$0xf0]  ;;  %v1178_v8 = vld [vmem:[%s1985_s2 + $0x14] sm:$0xf0] }
   0x5   :  { %1997 = vst [vmem:[#allocation5_spill] sm:$0xff] %v1153_v3  ;;  %v1183_v9 = vld [vmem:[%s1985_s2 + $0x24] sm:$0xf]  ;;  %v1188_v10 = vld [vmem:[%s1985_s2 + $0x20] sm:$0xf] }
   0x6   :  { %1998 = vst [vmem:[#allocation6_spill] sm:$0xff] %v1158_v4  ;;  %v1193_v11 = vld [vmem:[%s1985_s2 + $0x2c] sm:$0xf]  ;;  %v1198_v12 = vld [vmem:[%s1985_s2 + $0x28] sm:$0xf] }
   0x7   :  { %1999 = vst [vmem:[#allocation7_spill] sm:$0xff] %v1163_v5  ;;  %v1203_v13 = vld [vmem:[%s1985_s2 + $0x30] sm:$0xf0]  ;;  %v1208_v14 = vld [vmem:[%s1985_s2 + $0x2c] sm:$0xf0]  ;;  %v1782_v5 = vmov 0.0  }
   0x8   :  { %2000 = vst [vmem:[#allocation8_spill] sm:$0xff] %v1168_v6  ;;  %v1213_v15 = vld [vmem:[%s1985_s2 + $0x38] sm:$0xf0]  ;;  %v1218_v16 = vld [vmem:[%s1985_s2 + $0x34] sm:$0xf0]  ;;  %v1786_v6 = vmov 0.0  }
   0x9   :  { %2001 = vst [vmem:[#allocation9_spill] sm:$0xff] %v1173_v7  ;;  %v1223_v17 = vld [vmem:[%s1985_s2 + $0x44] sm:$0xf]  ;;  %v1228_v18 = vld [vmem:[%s1985_s2 + $0x40] sm:$0xf] }
   0xa   :  { %2002 = vst [vmem:[#allocation10_spill] sm:$0xff] %v1178_v8  ;;  %v1233_v19 = vld [vmem:[%s1985_s2 + $0x4c] sm:$0xf]  ;;  %v1238_v20 = vld [vmem:[%s1985_s2 + $0x48] sm:$0xf] }
   0xb   :  { %2003 = vst [vmem:[#allocation11_spill] sm:$0xff] %v1183_v9  ;;  %v1243_v21 = vld [vmem:[%s1985_s2 + $0x50] sm:$0xf0]  ;;  %v1248_v22 = vld [vmem:[%s1985_s2 + $0x4c] sm:$0xf0] }
   0xc   :  { %2004 = vst [vmem:[#allocation12_spill] sm:$0xff] %v1188_v10  ;;  %v1253_v23 = vld [vmem:[%s1985_s2 + $0x58] sm:$0xf0]  ;;  %v1258_v24 = vld [vmem:[%s1985_s2 + $0x54] sm:$0xf0] }
   0xd   :  { %2005 = vst [vmem:[#allocation13_spill] sm:$0xff] %v1193_v11  ;;  %v1263_v25 = vld [vmem:[%s1985_s2 + $0x64] sm:$0xf]  ;;  %v1268_v26 = vld [vmem:[%s1985_s2 + $0x60] sm:$0xf] }
   0xe   :  { %2006 = vst [vmem:[#allocation14_spill] sm:$0xff] %v1198_v12  ;;  %v1273_v27 = vld [vmem:[%s1985_s2 + $0x6c] sm:$0xf]  ;;  %v1278_v28 = vld [vmem:[%s1985_s2 + $0x68] sm:$0xf] }
   0xf   :  { %2007 = vst [vmem:[#allocation15_spill] sm:$0xff] %v1203_v13  ;;  %v1283_v29 = vld [vmem:[%s1985_s2 + $0x70] sm:$0xf0]  ;;  %v1288_v30 = vld [vmem:[%s1985_s2 + $0x6c] sm:$0xf0] }
  0x10   :  { %2008 = vst [vmem:[#allocation16_spill] sm:$0xff] %v1208_v14  ;;  %v1293_v31 = vld [vmem:[%s1985_s2 + $0x78] sm:$0xf0]  ;;  %v1298_v32 = vld [vmem:[%s1985_s2 + $0x74] sm:$0xf0] }
  0x11   :  { %2009 = vst [vmem:[#allocation17_spill] sm:$0xff] %v1213_v15  ;;  %v1303_v33 = vld [vmem:[%s1985_s2 + $0x84] sm:$0xf]  ;;  %v1308_v34 = vld [vmem:[%s1985_s2 + $0x80] sm:$0xf] }
  0x12   :  { %2010 = vst [vmem:[#allocation18_spill] sm:$0xff] %v1218_v16  ;;  %v1313_v35 = vld [vmem:[%s1985_s2 + $0x8c] sm:$0xf]  ;;  %v1318_v36 = vld [vmem:[%s1985_s2 + $0x88] sm:$0xf] }
  0x13   :  { %2011 = vst [vmem:[#allocation19_spill] sm:$0xff] %v1223_v17  ;;  %v1323_v37 = vld [vmem:[%s1985_s2 + $0x90] sm:$0xf0]  ;;  %v1328_v38 = vld [vmem:[%s1985_s2 + $0x8c] sm:$0xf0] }
  0x14   :  { %2012 = vst [vmem:[#allocation20_spill] sm:$0xff] %v1228_v18  ;;  %v1333_v39 = vld [vmem:[%s1985_s2 + $0x98] sm:$0xf0]  ;;  %v1338_v40 = vld [vmem:[%s1985_s2 + $0x94] sm:$0xf0] }
  0x15   :  { %2013 = vst [vmem:[#allocation21_spill] sm:$0xff] %v1233_v19  ;;  %v1343_v41 = vld [vmem:[%s1985_s2 + $0xa4] sm:$0xf]  ;;  %v1348_v42 = vld [vmem:[%s1985_s2 + $0xa0] sm:$0xf] }
  0x16   :  { %2014 = vst [vmem:[#allocation22_spill] sm:$0xff] %v1238_v20  ;;  %v1353_v43 = vld [vmem:[%s1985_s2 + $0xac] sm:$0xf]  ;;  %v1358_v44 = vld [vmem:[%s1985_s2 + $0xa8] sm:$0xf] }
  0x17   :  { %2015 = vst [vmem:[#allocation23_spill] sm:$0xff] %v1243_v21  ;;  %v1363_v45 = vld [vmem:[%s1985_s2 + $0xb0] sm:$0xf0]  ;;  %v1368_v46 = vld [vmem:[%s1985_s2 + $0xac] sm:$0xf0] }
  0x18   :  { %2016 = vst [vmem:[#allocation24_spill] sm:$0xff] %v1248_v22  ;;  %v1373_v47 = vld [vmem:[%s1985_s2 + $0xb8] sm:$0xf0]  ;;  %v1378_v48 = vld [vmem:[%s1985_s2 + $0xb4] sm:$0xf0] }
  0x19   :  { %2017 = vst [vmem:[#allocation25_spill] sm:$0xff] %v1253_v23  ;;  %v1383_v49 = vld [vmem:[%s1985_s2 + $0xc4] sm:$0xf]  ;;  %v1388_v50 = vld [vmem:[%s1985_s2 + $0xc0] sm:$0xf] }
  0x1a   :  { %2018 = vst [vmem:[#allocation26_spill] sm:$0xff] %v1258_v24  ;;  %v1393_v51 = vld [vmem:[%s1985_s2 + $0xcc] sm:$0xf]  ;;  %v1398_v52 = vld [vmem:[%s1985_s2 + $0xc8] sm:$0xf] }
  0x1b   :  { %2019 = vst [vmem:[#allocation27_spill] sm:$0xff] %v1263_v25  ;;  %v1403_v53 = vld [vmem:[%s1985_s2 + $0xd0] sm:$0xf0]  ;;  %v1408_v54 = vld [vmem:[%s1985_s2 + $0xcc] sm:$0xf0] }
  0x1c   :  { %v1413_v55 = vld [vmem:[%s1985_s2 + $0xd8] sm:$0xf0]  ;;  %v1418_v56 = vld [vmem:[%s1985_s2 + $0xd4] sm:$0xf0]  ;;  %v1423_v57 = vld [vmem:[%s1985_s2 + $0xe4] sm:$0xf] }
  0x1d   :  { %2020 = vst [vmem:[#allocation28_spill] sm:$0xff] %v1423_v57  ;;  %v1428_v58 = vld [vmem:[%s1985_s2 + $0xe0] sm:$0xf]  ;;  %v1433_v59 = vld [vmem:[%s1985_s2 + $0xec] sm:$0xf] }
  0x1e   :  { %2021 = vst [vmem:[#allocation29_spill] sm:$0xff] %v1428_v58  ;;  %v1438_v60 = vld [vmem:[%s1985_s2 + $0xe8] sm:$0xf]  ;;  %v1443_v61 = vld [vmem:[%s1985_s2 + $0xf0] sm:$0xf0] }
  0x1f   :  { %v1448_v62 = vld [vmem:[%s1985_s2 + $0xec] sm:$0xf0]  ;;  %v1453_v63 = vld [vmem:[%s1985_s2 + $0xf8] sm:$0xf0]  ;;  %v1458_v0 = vld [vmem:[%s1985_s2 + $0xf4] sm:$0xf0] }
  0x20   :  { %2022 = vst [vmem:[#allocation30_spill] sm:$0xff] %v1458_v0  ;;  %v1463_v3 = vld [vmem:[%s1988_s3 + $0x4] sm:$0xf]  ;;  %v1468_v7 = vld [vmem:[%s1988_s3] sm:$0xf] }
  0x21   :  { %2023 = vst [vmem:[#allocation31_spill] sm:$0xff] %v1463_v3  ;;  %v1473_v8 = vld [vmem:[%s1988_s3 + $0xc] sm:$0xf]  ;;  %v1478_v4 = vld [vmem:[%s1988_s3 + $0x8] sm:$0xf] }
  0x22   :  { %2024 = vst [vmem:[#allocation32_spill] sm:$0xff] %v1468_v7  ;;  %v1483_v1 = vld [vmem:[%s1988_s3 + $0x10] sm:$0xf0]  ;;  %v1488_v3 = vld [vmem:[%s1988_s3 + $0xc] sm:$0xf0] }
  0x23   :  { %2025 = vst [vmem:[#allocation33_spill] sm:$0xff] %v1473_v8  ;;  %v1493_v7 = vld [vmem:[%s1988_s3 + $0x18] sm:$0xf0]  ;;  %v1498_v8 = vld [vmem:[%s1988_s3 + $0x14] sm:$0xf0] }
  0x24   :  { %2026 = vst [vmem:[#allocation34_spill] sm:$0xff] %v1478_v4  ;;  %v1503_v4 = vld [vmem:[%s1988_s3 + $0x24] sm:$0xf] }
  0x25   :  { %2027 = vst [vmem:[#allocation35_spill] sm:$0xff] %v1483_v1  ;;  %v1508_v1 = vld [vmem:[%s1988_s3 + $0x20] sm:$0xf] }
  0x26   :  { %2028 = vst [vmem:[#allocation36_spill] sm:$0xff] %v1488_v3  ;;  %v1513_v3 = vld [vmem:[%s1988_s3 + $0x2c] sm:$0xf] }
  0x27   :  { %2029 = vst [vmem:[#allocation37_spill] sm:$0xff] %v1493_v7  ;;  %v1518_v7 = vld [vmem:[%s1988_s3 + $0x28] sm:$0xf] }
  0x28   :  { %2030 = vst [vmem:[#allocation38_spill] sm:$0xff] %v1498_v8  ;;  %v1523_v8 = vld [vmem:[%s1988_s3 + $0x30] sm:$0xf0] }
  0x29   :  { %2031 = vst [vmem:[#allocation39_spill] sm:$0xff] %v1503_v4  ;;  %v1528_v4 = vld [vmem:[%s1988_s3 + $0x2c] sm:$0xf0] }
  0x2a   :  { %2032 = vst [vmem:[#allocation40_spill] sm:$0xff] %v1508_v1  ;;  %v1533_v1 = vld [vmem:[%s1988_s3 + $0x38] sm:$0xf0] }
  0x2b   :  { %2033 = vst [vmem:[#allocation41_spill] sm:$0xff] %v1513_v3  ;;  %v1538_v3 = vld [vmem:[%s1988_s3 + $0x34] sm:$0xf0] }
  0x2c   :  { %2034 = vst [vmem:[#allocation42_spill] sm:$0xff] %v1518_v7  ;;  %v1543_v7 = vld [vmem:[%s1988_s3 + $0x44] sm:$0xf] }
  0x2d   :  { %2035 = vst [vmem:[#allocation43_spill] sm:$0xff] %v1523_v8  ;;  %v1548_v8 = vld [vmem:[%s1988_s3 + $0x40] sm:$0xf] }
  0x2e   :  { %2036 = vst [vmem:[#allocation44_spill] sm:$0xff] %v1528_v4  ;;  %v1553_v4 = vld [vmem:[%s1988_s3 + $0x4c] sm:$0xf] }
  0x2f   :  { %2037 = vst [vmem:[#allocation45_spill] sm:$0xff] %v1533_v1  ;;  %v1558_v1 = vld [vmem:[%s1988_s3 + $0x48] sm:$0xf] }
  0x30   :  { %2038 = vst [vmem:[#allocation46_spill] sm:$0xff] %v1538_v3  ;;  %v1563_v3 = vld [vmem:[%s1988_s3 + $0x50] sm:$0xf0] }
  0x31   :  { %2039 = vst [vmem:[#allocation47_spill] sm:$0xff] %v1543_v7  ;;  %v1568_v7 = vld [vmem:[%s1988_s3 + $0x4c] sm:$0xf0] }
  0x32   :  { %2040 = vst [vmem:[#allocation48_spill] sm:$0xff] %v1548_v8  ;;  %v1573_v8 = vld [vmem:[%s1988_s3 + $0x58] sm:$0xf0] }
  0x33   :  { %2041 = vst [vmem:[#allocation49_spill] sm:$0xff] %v1553_v4  ;;  %v1578_v4 = vld [vmem:[%s1988_s3 + $0x54] sm:$0xf0] }
  0x34   :  { %2042 = vst [vmem:[#allocation50_spill] sm:$0xff] %v1558_v1  ;;  %v1583_v1 = vld [vmem:[%s1988_s3 + $0x64] sm:$0xf] }
  0x35   :  { %2043 = vst [vmem:[#allocation51_spill] sm:$0xff] %v1563_v3  ;;  %v1588_v3 = vld [vmem:[%s1988_s3 + $0x60] sm:$0xf] }
  0x36   :  { %2044 = vst [vmem:[#allocation52_spill] sm:$0xff] %v1568_v7  ;;  %v1593_v7 = vld [vmem:[%s1988_s3 + $0x6c] sm:$0xf] }
  0x37   :  { %2045 = vst [vmem:[#allocation53_spill] sm:$0xff] %v1573_v8  ;;  %v1598_v8 = vld [vmem:[%s1988_s3 + $0x68] sm:$0xf] }
  0x38   :  { %2046 = vst [vmem:[#allocation54_spill] sm:$0xff] %v1578_v4  ;;  %v1603_v4 = vld [vmem:[%s1988_s3 + $0x70] sm:$0xf0] }
  0x39   :  { %2047 = vst [vmem:[#allocation55_spill] sm:$0xff] %v1583_v1  ;;  %v1608_v1 = vld [vmem:[%s1988_s3 + $0x6c] sm:$0xf0] }
  0x3a   :  { %2048 = vst [vmem:[#allocation56_spill] sm:$0xff] %v1588_v3  ;;  %v1613_v3 = vld [vmem:[%s1988_s3 + $0x78] sm:$0xf0] }
  0x3b   :  { %2049 = vst [vmem:[#allocation57_spill] sm:$0xff] %v1593_v7  ;;  %v1618_v7 = vld [vmem:[%s1988_s3 + $0x74] sm:$0xf0] }
  0x3c   :  { %2050 = vst [vmem:[#allocation58_spill] sm:$0xff] %v1598_v8  ;;  %v1623_v8 = vld [vmem:[%s1988_s3 + $0x84] sm:$0xf] }
  0x3d   :  { %2051 = vst [vmem:[#allocation59_spill] sm:$0xff] %v1603_v4  ;;  %v1628_v4 = vld [vmem:[%s1988_s3 + $0x80] sm:$0xf] }
  0x3e   :  { %2052 = vst [vmem:[#allocation60_spill] sm:$0xff] %v1608_v1  ;;  %v1633_v1 = vld [vmem:[%s1988_s3 + $0x8c] sm:$0xf] }
  0x3f   :  { %2053 = vst [vmem:[#allocation61_spill] sm:$0xff] %v1613_v3  ;;  %v1638_v3 = vld [vmem:[%s1988_s3 + $0x88] sm:$0xf] }
  0x40   :  { %2054 = vst [vmem:[#allocation62_spill] sm:$0xff] %v1618_v7  ;;  %v1643_v7 = vld [vmem:[%s1988_s3 + $0x90] sm:$0xf0] }
  0x41   :  { %2055 = vst [vmem:[#allocation63_spill] sm:$0xff] %v1623_v8  ;;  %v1648_v8 = vld [vmem:[%s1988_s3 + $0x8c] sm:$0xf0] }
  0x42   :  { %2056 = vst [vmem:[#allocation64_spill] sm:$0xff] %v1628_v4  ;;  %v1653_v4 = vld [vmem:[%s1988_s3 + $0x98] sm:$0xf0] }
  0x43   :  { %2057 = vst [vmem:[#allocation65_spill] sm:$0xff] %v1633_v1  ;;  %v1658_v1 = vld [vmem:[%s1988_s3 + $0x94] sm:$0xf0] }
  0x44   :  { %2058 = vst [vmem:[#allocation66_spill] sm:$0xff] %v1638_v3  ;;  %v1663_v3 = vld [vmem:[%s1988_s3 + $0xa4] sm:$0xf] }
  0x45   :  { %2059 = vst [vmem:[#allocation67_spill] sm:$0xff] %v1643_v7  ;;  %v1668_v7 = vld [vmem:[%s1988_s3 + $0xa0] sm:$0xf] }
  0x46   :  { %2060 = vst [vmem:[#allocation68_spill] sm:$0xff] %v1648_v8  ;;  %v1673_v8 = vld [vmem:[%s1988_s3 + $0xac] sm:$0xf] }
  0x47   :  { %2061 = vst [vmem:[#allocation69_spill] sm:$0xff] %v1653_v4  ;;  %v1678_v4 = vld [vmem:[%s1988_s3 + $0xa8] sm:$0xf] }
  0x48   :  { %2062 = vst [vmem:[#allocation70_spill] sm:$0xff] %v1658_v1  ;;  %v1683_v1 = vld [vmem:[%s1988_s3 + $0xb0] sm:$0xf0] }
  0x49   :  { %2063 = vst [vmem:[#allocation71_spill] sm:$0xff] %v1663_v3  ;;  %v1688_v3 = vld [vmem:[%s1988_s3 + $0xac] sm:$0xf0] }
  0x4a   :  { %2064 = vst [vmem:[#allocation72_spill] sm:$0xff] %v1668_v7  ;;  %v1693_v7 = vld [vmem:[%s1988_s3 + $0xb8] sm:$0xf0] }
  0x4b   :  { %2065 = vst [vmem:[#allocation73_spill] sm:$0xff] %v1673_v8  ;;  %v1698_v8 = vld [vmem:[%s1988_s3 + $0xb4] sm:$0xf0] }
  0x4c   :  { %2066 = vst [vmem:[#allocation74_spill] sm:$0xff] %v1678_v4  ;;  %v1703_v4 = vld [vmem:[%s1988_s3 + $0xc4] sm:$0xf] }
  0x4d   :  { %2067 = vst [vmem:[#allocation75_spill] sm:$0xff] %v1683_v1  ;;  %v1708_v1 = vld [vmem:[%s1988_s3 + $0xc0] sm:$0xf] }
  0x4e   :  { %2068 = vst [vmem:[#allocation76_spill] sm:$0xff] %v1688_v3  ;;  %v1713_v3 = vld [vmem:[%s1988_s3 + $0xcc] sm:$0xf] }
  0x4f   :  { %2069 = vst [vmem:[#allocation77_spill] sm:$0xff] %v1693_v7  ;;  %v1718_v7 = vld [vmem:[%s1988_s3 + $0xc8] sm:$0xf] }
  0x50   :  { %2070 = vst [vmem:[#allocation78_spill] sm:$0xff] %v1698_v8  ;;  %v1723_v8 = vld [vmem:[%s1988_s3 + $0xd0] sm:$0xf0] }
  0x51   :  { %2071 = vst [vmem:[#allocation79_spill] sm:$0xff] %v1703_v4  ;;  %v1728_v4 = vld [vmem:[%s1988_s3 + $0xcc] sm:$0xf0] }
  0x52   :  { %2072 = vst [vmem:[#allocation80_spill] sm:$0xff] %v1708_v1  ;;  %v1733_v1 = vld [vmem:[%s1988_s3 + $0xd8] sm:$0xf0] }
  0x53   :  { %2073 = vst [vmem:[#allocation81_spill] sm:$0xff] %v1713_v3  ;;  %v1738_v3 = vld [vmem:[%s1988_s3 + $0xd4] sm:$0xf0] }
  0x54   :  { %2074 = vst [vmem:[#allocation82_spill] sm:$0xff] %v1718_v7  ;;  %v1743_v7 = vld [vmem:[%s1988_s3 + $0xe4] sm:$0xf] }
  0x55   :  { %2075 = vst [vmem:[#allocation83_spill] sm:$0xff] %v1723_v8  ;;  %v1748_v8 = vld [vmem:[%s1988_s3 + $0xe0] sm:$0xf] }
  0x56   :  { %2076 = vst [vmem:[#allocation84_spill] sm:$0xff] %v1728_v4  ;;  %v1753_v4 = vld [vmem:[%s1988_s3 + $0xec] sm:$0xf] }
  0x57   :  { %2077 = vst [vmem:[#allocation85_spill] sm:$0xff] %v1733_v1  ;;  %v1758_v1 = vld [vmem:[%s1988_s3 + $0xe8] sm:$0xf] }
  0x58   :  { %2078 = vst [vmem:[#allocation86_spill] sm:$0xff] %v1738_v3  ;;  %v1763_v3 = vld [vmem:[%s1988_s3 + $0xf0] sm:$0xf0] }
  0x59   :  { %2079 = vst [vmem:[#allocation87_spill] sm:$0xff] %v1743_v7  ;;  %v1768_v7 = vld [vmem:[%s1988_s3 + $0xec] sm:$0xf0] }
  0x5a   :  { %2080 = vst [vmem:[#allocation88_spill] sm:$0xff] %v1748_v8  ;;  %v1773_v8 = vld [vmem:[%s1988_s3 + $0xf8] sm:$0xf0] }
  0x5b   :  { %2081 = vst [vmem:[#allocation89_spill] sm:$0xff] %v1753_v4  ;;  %v1778_v4 = vld [vmem:[%s1988_s3 + $0xf4] sm:$0xf0] }
  0x5c   :  { %2082 = vst [vmem:[#allocation90_spill] sm:$0xff] %v1758_v1  ;;  %v1780_v1 = vmov 0.0  }
  0x5d   :  { %2083 = vst [vmem:[#allocation91_spill] sm:$0xff] %v1763_v3  ;;  %v1784_v3 = vmov 0.0  }
  0x5e   :  { %2084 = vst [vmem:[#allocation92_spill] sm:$0xff] %v1768_v7 }
  0x5f   :  { %2085 = vst [vmem:[#allocation93_spill] sm:$0xff] %v1773_v8 }
  0x60   :  { %2086 = vst [vmem:[#allocation94_spill] sm:$0xff] %v1778_v4 }
  0x61 LB: > { %2087 = vst [vmem:[#allocation95_spill] sm:$0xff] %v1086_v1  ;;  %v2091_v58 = vld [vmem:[#allocation29_spill] sm:$0xff]  ;;  %v2092_v57 = vld [vmem:[#allocation28_spill] sm:$0xff]  ;;  %v2093_v0 = vld [vmem:[#allocation30_spill] sm:$0xff]  ;;  %s1890_s3 = ssub.s32 7, %s1102_s11  ;;  %s682_s12 = sshll.u32 %s1102_s11, 3  ;;  %s1102_s11 = sphi %s1788_s11, %s89_s11   ;;  %v1098_v6 = vphi %v1786_v6, %v366_v6   ;;  %v1094_v3 = vphi %v1784_v3, %v367_v3   ;;  %v1090_v5 = vphi %v1782_v5, %v645_v5   ;;  %v1086_v1 = vphi %v1780_v1, %v646_v1  }
  0x62   : > { %2088 = vst [vmem:[#allocation96_spill] sm:$0xff] %v1090_v5  ;;  %v798_v8 = vor.u32 %v1448_v62, %v2091_v58  ;;  %v802_v4 = vor.u32 %v2092_v57, %v1443_v61  ;;  %v806_v1 = vor.u32 %v2093_v0, %v1438_v60  ;;  %v810_v5 = vor.u32 %v1433_v59, %v1453_v63  ;;  %v2094_v25 = vld [vmem:[#allocation27_spill] sm:$0xff]  ;;  %v2095_v18 = vld [vmem:[#allocation20_spill] sm:$0xff]  ;;  %v2099_v20 = vld [vmem:[#allocation22_spill] sm:$0xff]  ;;  %s95_s15 = scalar_lea.vmem %s1983_s0, %s682_s12  ;;  %s812_s16 = sshll.u32 %s1890_s3, 3 }
  0x63   : > { %2089 = vst [vmem:[#allocation97_spill] sm:$0xff] %v1094_v3  ;;  %v782_v3 = vor.u32 %v1408_v54, %v1388_v50  ;;  %v790_v58 = vor.u32 %v1418_v56, %v1398_v52  ;;  %v794_v57 = vor.u32 %v1393_v51, %v1413_v55  ;;  %v2096_v22 = vld [vmem:[#allocation24_spill] sm:$0xff]  ;;  %v2097_v21 = vld [vmem:[#allocation23_spill] sm:$0xff]  ;;  %v2100_v24 = vld [vmem:[#allocation26_spill] sm:$0xff]  ;;  %vm318_vm2 = vcmask 1041408   ;;  %s374_s19 = scalar_lea.vmem %s1983_s0, %s812_s16  ;;  %s370_s22 = scalar_lea.vmem %s1986_s4, %s1102_s11 }
  0x64   : > { %2090 = vst [vmem:[#allocation98_spill] sm:$0xff] %v1098_v6  ;;  %259 = vmatpush.bf16.msra.mxu0 %v798_v8  ;;  %272 = vmatpush.bf16.msra.mxu1 %v802_v4  ;;  %v786_v6 = vor.u32 %v1383_v49, %v1403_v53  ;;  %v766_v8 = vor.u32 %v1368_v46, %v1348_v42  ;;  %v2098_v17 = vld [vmem:[#allocation19_spill] sm:$0xff]  ;;  %v2101_v23 = vld [vmem:[#allocation25_spill] sm:$0xff]  ;;  %v2103_v10 = vld [vmem:[#allocation12_spill] sm:$0xff]  ;;  %vm320_vm3 = vcmask 1045508   ;;  %vm322_vm4 = vcmask 1043456   ;;  %s649_s25 = scalar_lea.vmem %s1987_s5, %s1890_s3 }
  0x65   : > { %285 = vmatpush.bf16.msra.mxu2 %v806_v1  ;;  %298 = vmatpush.bf16.msra.mxu3 %v810_v5  ;;  %v770_v4 = vor.u32 %v1343_v41, %v1363_v45  ;;  %v774_v1 = vor.u32 %v1378_v48, %v1358_v44  ;;  %v778_v5 = vor.u32 %v1353_v43, %v1373_v47  ;;  %v2102_v19 = vld [vmem:[#allocation21_spill] sm:$0xff]  ;;  %v2104_v14 = vld [vmem:[#allocation16_spill] sm:$0xff]  ;;  %v2105_v13 = vld [vmem:[#allocation15_spill] sm:$0xff] }
  0x66   : > { %v2106_v9 = vld [vmem:[#allocation11_spill] sm:$0xff]  ;;  %v2107_v12 = vld [vmem:[#allocation14_spill] sm:$0xff]  ;;  %v2109_v15 = vld [vmem:[#allocation17_spill] sm:$0xff] }
  0x67   : > { %v2108_v16 = vld [vmem:[#allocation18_spill] sm:$0xff]  ;;  %v2110_v11 = vld [vmem:[#allocation13_spill] sm:$0xff]  ;;  %v2111_v2 = vld [vmem:[#allocation4_spill] sm:$0xff] }
  0x68   : > { %260 = vmatpush.bf16.msra.mxu0 %v782_v3  ;;  %273 = vmatpush.bf16.msra.mxu1 %v786_v6  ;;  %v750_v3 = vor.u32 %v1328_v38, %v1308_v34  ;;  %v754_v6 = vor.u32 %v1303_v33, %v1323_v37  ;;  %v2112_v0 = vld [vmem:[#allocation8_spill] sm:$0xff] }
  0x69   : > { %286 = vmatpush.bf16.msra.mxu2 %v790_v58  ;;  %299 = vmatpush.bf16.msra.mxu3 %v794_v57  ;;  %v758_v58 = vor.u32 %v1338_v40, %v1318_v36  ;;  %v762_v57 = vor.u32 %v1313_v35, %v1333_v39  ;;  %v2120_v7 = vld [vmem:[#allocation92_spill] sm:$0xff] }
  0x6c   : > { %261 = vmatpush.bf16.msra.mxu0 %v766_v8  ;;  %274 = vmatpush.bf16.msra.mxu1 %v770_v4  ;;  %v734_v8 = vor.u32 %v1288_v30, %v1268_v26  ;;  %v738_v4 = vor.u32 %v2094_v25, %v1283_v29 }
  0x6d   : > { %287 = vmatpush.bf16.msra.mxu2 %v774_v1  ;;  %300 = vmatpush.bf16.msra.mxu3 %v778_v5  ;;  %v742_v1 = vor.u32 %v1298_v32, %v1278_v28  ;;  %v746_v5 = vor.u32 %v1273_v27, %v1293_v31 }
  0x70   : > { %262 = vmatpush.bf16.msra.mxu0 %v750_v3  ;;  %275 = vmatpush.bf16.msra.mxu1 %v754_v6  ;;  %v718_v3 = vor.u32 %v2096_v22, %v2095_v18  ;;  %v722_v6 = vor.u32 %v2098_v17, %v2097_v21  ;;  %v2114_v17 = vld [vmem:[#allocation3_spill] sm:$0xff] }
  0x71   : > { %288 = vmatpush.bf16.msra.mxu2 %v758_v58  ;;  %301 = vmatpush.bf16.msra.mxu3 %v762_v57  ;;  %v726_v58 = vor.u32 %v2100_v24, %v2099_v20  ;;  %v730_v57 = vor.u32 %v2102_v19, %v2101_v23  ;;  %v2125_v19 = vld [vmem:[#allocation93_spill] sm:$0xff] }
  0x74   : > { %263 = vmatpush.bf16.msra.mxu0 %v734_v8  ;;  %276 = vmatpush.bf16.msra.mxu1 %v738_v4  ;;  %v702_v8 = vor.u32 %v2104_v14, %v2103_v10  ;;  %v706_v4 = vor.u32 %v2106_v9, %v2105_v13  ;;  %v2115_v10 = vld [vmem:[#allocation6_spill] sm:$0xff]  ;;  %v2118_v13 = vld [vmem:[#allocation5_spill] sm:$0xff]  ;;  %v2119_v14 = vld [vmem:[#allocation88_spill] sm:$0xff] }
  0x75   : > { %289 = vmatpush.bf16.msra.mxu2 %v742_v1  ;;  %302 = vmatpush.bf16.msra.mxu3 %v746_v5  ;;  %v710_v1 = vor.u32 %v2108_v16, %v2107_v12  ;;  %v714_v5 = vor.u32 %v2110_v11, %v2109_v15  ;;  %v2116_v9 = vld [vmem:[#allocation10_spill] sm:$0xff]  ;;  %v928_v11 = vor.u32 %v2120_v7, %v2119_v14 }
  0x76   : > { %v2123_v16 = vld [vmem:[#allocation90_spill] sm:$0xff] }
  0x78   : > { %264 = vmatpush.bf16.msra.mxu0 %v718_v3  ;;  %277 = vmatpush.bf16.msra.mxu1 %v722_v6  ;;  %v686_v3 = vor.u32 %v2112_v0, %v2111_v2  ;;  %v2113_v6 = vld [vmem:[#allocation7_spill] sm:$0xff]  ;;  %v2124_v0 = vld [vmem:[#allocation94_spill] sm:$0xff] }
  0x79   : > { %290 = vmatpush.bf16.msra.mxu2 %v726_v58  ;;  %303 = vmatpush.bf16.msra.mxu3 %v730_v57  ;;  %v690_v18 = vor.u32 %v2114_v17, %v2113_v6  ;;  %v694_v58 = vor.u32 %v2116_v9, %v2115_v10  ;;  %v2117_v57 = vld [vmem:[#allocation9_spill] sm:$0xff]  ;;  %v936_v2 = vor.u32 %v2124_v0, %v2123_v16  ;;  %v2128_v10 = vld [vmem:[#allocation80_spill] sm:$0xff]  ;;  %v2130_v6 = vld [vmem:[#allocation83_spill] sm:$0xff]  ;;  %v359_v16 = vstv %s1102_s11  ;;  %s89_s11 = sadd.s32 1, %s1102_s11  }
  0x7a   : > { %v698_v12 = vor.u32 %v2118_v13, %v2117_v57  ;;  %v2126_v17 = vld [vmem:[#allocation89_spill] sm:$0xff]  ;;  %v2129_v13 = vld [vmem:[#allocation84_spill] sm:$0xff]  ;;  %v2131_v57 = vld [vmem:[#allocation79_spill] sm:$0xff]  ;;  %p86_p0 = scmp.ge.s32.totalorder %s89_s11, 8  }
  0x7b   : > { %v912_v14 = vor.u32 %v2129_v13, %v2128_v10  ;;  %v2135_v0 = vld [vmem:[#allocation81_spill] sm:$0xff]  ;;  %v1104_v13 = vmov 0  }
  0x7c   : > { %265 = vmatpush.bf16.msra.mxu0 %v702_v8  ;;  %278 = vmatpush.bf16.msra.mxu1 %v706_v4  ;;  %v2121_v8 = vld [vmem:[#allocation91_spill] sm:$0xff] }
  0x7d   : > { %291 = vmatpush.bf16.msra.mxu2 %v710_v1  ;;  %304 = vmatpush.bf16.msra.mxu3 %v714_v5  ;;  %v2122_v4 = vld [vmem:[#allocation87_spill] sm:$0xff]  ;;  %v940_v1 = vor.u32 %v2126_v17, %v2125_v19  ;;  %v2127_v5 = vld [vmem:[#allocation98_spill] sm:$0xff] }
  0x7e   : > { %v932_v15 = vor.u32 %v2122_v4, %v2121_v8  ;;  %v98_v9 = vpack.c.bf16 %v2127_v5, %v2127_v5  ;;  %v916_v8 = vor.u32 %v2131_v57, %v2130_v6  ;;  %v2132_v19 = vld [vmem:[#allocation82_spill] sm:$0xff]  ;;  %v2134_v4 = vld [vmem:[#allocation85_spill] sm:$0xff]  ;;  %1047 = vset.pattern.permute.xlu0 %v1104_v13 }
  0x7f   : > { %v924_v17 = vor.u32 %v2135_v0, %v2134_v4  ;;  %v2141_v57 = vld [vmem:[#allocation74_spill] sm:$0xff]  ;;  %v638_v0 = vstv %s1890_s3 }
  0x80   : > { %266 = vmatpush.bf16.msra.mxu0 %v686_v3  ;;  %279 = vmatpush.bf16.msra.mxu1 %v690_v18  ;;  %v2133_v3 = vld [vmem:[#allocation86_spill] sm:$0xff] }
  0x81   : > { %292 = vmatpush.bf16.msra.mxu2 %v694_v58  ;;  %305 = vmatpush.bf16.msra.mxu3 %v698_v12  ;;  %v920_v18 = vor.u32 %v2133_v3, %v2132_v19  ;;  %v2136_v58 = vld [vmem:[#allocation2_spill] sm:$0xff]  ;;  %v2143_v3 = vld [vmem:[#allocation77_spill] sm:$0xff] }
  0x82   : > { %vm360_vm0 = vcmp.lt.s32.totalorder %v359_v16, %v2136_v58  ;;  %v2142_v16 = vld [vmem:[#allocation78_spill] sm:$0xff]  ;;  %vm639_vm1 = vcmp.lt.s32.totalorder %v638_v0, %v2136_v58  ;;  %v2161_v0 = vld [vmem:[#allocation48_spill] sm:$0xff] }
  0x83   : > { %280 = vmatmul.bf16.vlgmr.msra.gmra.mxu1 %v98_v9  ;;  %267 = vmatmul.bf16.vlgmr.msra.gmra.mxu0 %v98_v9  ;;  %v361_v6 = vsel %vm360_vm0, 1, %v1104_v13  ;;  %v904_v19 = vor.u32 %v2142_v16, %v2141_v57  ;;  %v2151_v57 = vld [vmem:[#allocation69_spill] sm:$0xff] }
  0x84   : > { %541 = vmatpush.bf16.msrb.mxu0 %v928_v11  ;;  %554 = vmatpush.bf16.msrb.mxu1 %v932_v15  ;;  %v2137_v11 = vld [vmem:[#allocation72_spill] sm:$0xff]  ;;  %v2139_v15 = vld [vmem:[#allocation75_spill] sm:$0xff]  ;;  %v2152_v16 = vld [vmem:[#allocation65_spill] sm:$0xff] }
  0x85   : > { %567 = vmatpush.bf16.msrb.mxu2 %v936_v2  ;;  %580 = vmatpush.bf16.msrb.mxu3 %v940_v1  ;;  %v2138_v2 = vld [vmem:[#allocation76_spill] sm:$0xff]  ;;  %v2140_v1 = vld [vmem:[#allocation71_spill] sm:$0xff]  ;;  %v892_v20 = vor.u32 %v2152_v16, %v2151_v57 }
  0x86   : > { %293 = vmatmul.bf16.vlgmr.msra.gmra.mxu2 %v98_v9  ;;  %306 = vmatmul.bf16.vlgmr.msra.gmra.mxu3 %v98_v9  ;;  %v896_v12 = vor.u32 %v2138_v2, %v2137_v11  ;;  %v900_v10 = vor.u32 %v2140_v1, %v2139_v15  ;;  %v2144_v9 = vld [vmem:[#allocation73_spill] sm:$0xff]  ;;  %v2147_v2 = vld [vmem:[#allocation67_spill] sm:$0xff] }
  0x87   : > { %v908_v4 = vor.u32 %v2144_v9, %v2143_v3  ;;  %363 = vperm.xlu0 %1047, %v361_v6   ;;  %v2148_v15 = vld [vmem:[#allocation63_spill] sm:$0xff] }
  0x88   : > { %542 = vmatpush.bf16.msrb.mxu0 %v912_v14  ;;  %555 = vmatpush.bf16.msrb.mxu1 %v916_v8  ;;  %v2145_v14 = vld [vmem:[#allocation64_spill] sm:$0xff]  ;;  %v884_v1 = vor.u32 %v2148_v15, %v2147_v2  ;;  %v2155_v3 = vld [vmem:[#allocation59_spill] sm:$0xff]  ;;  %v2159_v15 = vld [vmem:[#allocation61_spill] sm:$0xff] }
  0x89   : > { %568 = vmatpush.bf16.msrb.mxu2 %v920_v18  ;;  %581 = vmatpush.bf16.msrb.mxu3 %v924_v17  ;;  %v2146_v8 = vld [vmem:[#allocation68_spill] sm:$0xff]  ;;  %v2149_v18 = vld [vmem:[#allocation66_spill] sm:$0xff]  ;;  %v2156_v9 = vld [vmem:[#allocation55_spill] sm:$0xff] }
  0x8a   : > { %v880_v11 = vor.u32 %v2146_v8, %v2145_v14  ;;  %v2150_v17 = vld [vmem:[#allocation70_spill] sm:$0xff]  ;;  %v868_v14 = vor.u32 %v2156_v9, %v2155_v3  ;;  %v640_v8 = vsel %vm639_vm1, 1, %v1104_v13  ;;  %v2163_v57 = vld [vmem:[#allocation51_spill] sm:$0xff]  ;;  %v2168_v3 = vld [vmem:[#allocation49_spill] sm:$0xff] }
  0x8b   : > { %v888_v7 = vor.u32 %v2150_v17, %v2149_v18  ;;  %v2160_v18 = vld [vmem:[#allocation57_spill] sm:$0xff]  ;;  %v2164_v16 = vld [vmem:[#allocation47_spill] sm:$0xff]  ;;  %v2165_v13 = vld [vmem:[#allocation50_spill] sm:$0xff] }
  0x8c   : > { %543 = vmatpush.bf16.msrb.mxu0 %v896_v12  ;;  %556 = vmatpush.bf16.msrb.mxu1 %v900_v10  ;;  %v2153_v12 = vld [vmem:[#allocation56_spill] sm:$0xff]  ;;  %v876_v17 = vor.u32 %v2160_v18, %v2159_v15  ;;  %v2173_v18 = vld [vmem:[#allocation42_spill] sm:$0xff] }
  0x8d   : > { %569 = vmatpush.bf16.msrb.mxu2 %v904_v19  ;;  %582 = vmatpush.bf16.msrb.mxu3 %v908_v4  ;;  %v2154_v10 = vld [vmem:[#allocation60_spill] sm:$0xff]  ;;  %v2157_v19 = vld [vmem:[#allocation58_spill] sm:$0xff] }
  0x8e   : > { %v864_v6 = vor.u32 %v2154_v10, %v2153_v12  ;;  %v2158_v4 = vld [vmem:[#allocation62_spill] sm:$0xff]  ;;  %v852_v12 = vor.u32 %v2164_v16, %v2163_v57  ;;  %v2167_v10 = vld [vmem:[#allocation53_spill] sm:$0xff]  ;;  %v2177_v16 = vld [vmem:[#allocation32_spill] sm:$0xff] }
  0x8f   : > { %v872_v2 = vor.u32 %v2158_v4, %v2157_v19  ;;  %642 = vperm.xlu0 %1047, %v640_v8   ;;  %v860_v9 = vor.u32 %v2168_v3, %v2167_v10  ;;  %v2169_v19 = vld [vmem:[#allocation40_spill] sm:$0xff]  ;;  %v2172_v4 = vld [vmem:[#allocation39_spill] sm:$0xff]  ;;  %v2181_v3 = vld [vmem:[#allocation34_spill] sm:$0xff] }
  0x90   : > { %544 = vmatpush.bf16.msrb.mxu0 %v880_v11  ;;  %557 = vmatpush.bf16.msrb.mxu1 %v884_v1  ;;  %v2162_v11 = vld [vmem:[#allocation52_spill] sm:$0xff] }
  0x91   : > { %570 = vmatpush.bf16.msrb.mxu2 %v888_v7  ;;  %583 = vmatpush.bf16.msrb.mxu3 %v892_v20  ;;  %v848_v1 = vor.u32 %v2162_v11, %v2161_v0  ;;  %v2166_v7 = vld [vmem:[#allocation54_spill] sm:$0xff]  ;;  %v2170_v8 = vld [vmem:[#allocation44_spill] sm:$0xff]  ;;  %v2176_v11 = vld [vmem:[#allocation41_spill] sm:$0xff] }
  0x92   : > { %v856_v20 = vor.u32 %v2166_v7, %v2165_v13  ;;  %v2174_v0 = vld [vmem:[#allocation46_spill] sm:$0xff]  ;;  %v2178_v13 = vld [vmem:[#allocation36_spill] sm:$0xff]  ;;  %v2180_v7 = vld [vmem:[#allocation31_spill] sm:$0xff] }
  0x94   : > { %545 = vmatpush.bf16.msrb.mxu0 %v864_v6  ;;  %558 = vmatpush.bf16.msrb.mxu1 %v868_v14  ;;  %v832_v6 = vor.u32 %v2170_v8, %v2169_v19  ;;  %v2171_v14 = vld [vmem:[#allocation43_spill] sm:$0xff]  ;;  %v2183_v19 = vld [vmem:[#allocation37_spill] sm:$0xff] }
  0x95   : > { %571 = vmatpush.bf16.msrb.mxu2 %v872_v2  ;;  %584 = vmatpush.bf16.msrb.mxu3 %v876_v17  ;;  %v836_v15 = vor.u32 %v2172_v4, %v2171_v14  ;;  %v840_v2 = vor.u32 %v2174_v0, %v2173_v18  ;;  %v2175_v17 = vld [vmem:[#allocation45_spill] sm:$0xff]  ;;  %v2185_v4 = vld [vmem:[#allocation96_spill] sm:$0xff] }
  0x96   : > { %v844_v57 = vor.u32 %v2176_v11, %v2175_v17  ;;  %v2184_v8 = vld [vmem:[#allocation33_spill] sm:$0xff]  ;;  %v380_v18 = vpack.c.bf16 %v2185_v4, %v2185_v4 }
  0x97   : > { %v828_v14 = vor.u32 %v2184_v8, %v2183_v19 }
  0x98   : > { %546 = vmatpush.bf16.msrb.mxu0 %v848_v1  ;;  %559 = vmatpush.bf16.msrb.mxu1 %v852_v12  ;;  %v816_v1 = vor.u32 %v2178_v13, %v2177_v16  ;;  %v2179_v12 = vld [vmem:[#allocation35_spill] sm:$0xff] }
  0x99   : > { %572 = vmatpush.bf16.msrb.mxu2 %v856_v20  ;;  %585 = vmatpush.bf16.msrb.mxu3 %v860_v9  ;;  %v820_v10 = vor.u32 %v2180_v7, %v2179_v12  ;;  %v2182_v20 = vld [vmem:[#allocation38_spill] sm:$0xff] }
  0x9a   : > { %v824_v9 = vor.u32 %v2182_v20, %v2181_v3 }
  0x9c   : > { %547 = vmatpush.bf16.msrb.mxu0 %v832_v6  ;;  %560 = vmatpush.bf16.msrb.mxu1 %v836_v15 }
  0x9d   : > { %573 = vmatpush.bf16.msrb.mxu2 %v840_v2  ;;  %586 = vmatpush.bf16.msrb.mxu3 %v844_v57  ;;  %v96_v2 = vld [vmem:[%s95_s15] sm:$0xf] }
  0x9e   : > { %v97_v13 = vunpack.c.l.bf16 %v96_v2 }
  0xa0   : > { %548 = vmatpush.bf16.msrb.mxu0 %v816_v1  ;;  %561 = vmatpush.bf16.msrb.mxu1 %v820_v10 }
  0xa1   : > { %574 = vmatpush.bf16.msrb.mxu2 %v824_v9  ;;  %587 = vmatpush.bf16.msrb.mxu3 %v828_v14 }
  0xa3   : > { %549 = vmatmul.bf16.vlgmr.msrb.gmra.mxu0 %v380_v18  ;;  %562 = vmatmul.bf16.vlgmr.msrb.gmra.mxu1 %v380_v18 }
  0xa4   : > { %575 = vmatmul.bf16.vlgmr.msrb.gmra.mxu2 %v380_v18  ;;  %588 = vmatmul.bf16.vlgmr.msrb.gmra.mxu3 %v380_v18 }
 0x100   : > { %v281_v6 = vpop.f32.mrf.mxu1  ;;  %v268_v15 = vpop.f32.mrf.mxu0 }
 0x101   : > { %v315_v0 = vrot.slane %v281_v6, 6  ;;  %v375_v6 = vld [vmem:[%s374_s19] sm:$0xff] }
 0x103   : > { %v319_v1 = vsel %vm318_vm2, %v268_v15, %v315_v0 }
 0x108   : > { %v283_v7 = vpop.f32.mrf.mxu1  ;;  %v270_v10 = vpop.f32.mrf.mxu0 }
 0x109   : > { %v294_v17 = vpop.f32.mrf.mxu2  ;;  %v307_v11 = vpop.f32.mrf.mxu3 }
 0x10a   : > { %v316_v57 = vrot.slane %v294_v17, 4  ;;  %v317_v16 = vrot.slane %v307_v11, 2  ;;  %v377_v17 = vrot.slane %v375_v6, 4 }
 0x10c   : > { %v321_v12 = vsel %vm320_vm3, %v316_v57, %v317_v16  ;;  %v379_v7 = vunpack.c.l.bf16 %v377_v17 }
 0x10d   : > { %v323_v3 = vsel %vm322_vm4, %v319_v1, %v321_v12 }
 0x10e   : > { %v325_v20 = vadd.f32 %v323_v3, %v97_v13 }
 0x110   : > { %v811_v9 = vmul.f32 -1.442695, %v325_v20  ;;  %v346_v57 = vrot.slane %v325_v20, 6 }
 0x111   : > { %v296_v19 = vpop.f32.mrf.mxu2  ;;  %v309_v8 = vpop.f32.mrf.mxu3 }
 0x112   : > { %1048 = vpow2.f32 %v811_v9 }
 0x118   : > { %v1049_v14 = vpop.eup %1048 }
 0x119   : > { %v329_v18 = vadd.f32 1.0, %v1049_v14 }
 0x11b   : > { %1050 = vrcp.f32 %v329_v18  ;;  %v339_v16 = vand.u32 2147483647, %v329_v18  ;;  %v341_v13 = vand.u32 2147483648, %v329_v18  ;;  %vm335_vm5 = vweird.f32 %v329_v18 }
 0x11c   : > { %1052 = vtanh.f32 %v346_v57  ;;  %v364_v57 = vpop.permute.xlu0 %363 }
 0x11d   : > { %vm340_vm8 = vcmp.eq.f32.partialorder %v339_v16, 8.507059e+37  ;;  %v342_v19 = vor.u32 1.1754944e-38, %v341_v13  ;;  %v2186_v16 = vld [vmem:[#allocation97_spill] sm:$0xff]  ;;  %vm365_vm9 = vcmp.eq.s32.totalorder %v364_v57, 1 }
 0x120   : > { %v550_v15 = vpop.f32.mrf.mxu0  ;;  %v563_v0 = vpop.f32.mrf.mxu1 }
 0x121   : > { %v1051_v2 = vpop.eup %1050  ;;  %v597_v1 = vrot.slane %v563_v0, 6 }
 0x122   : > { %v331_v11 = vmul.f32 %v1051_v2, %v329_v18  ;;  %vm336_vm6 = vweird.f32 %v1051_v2  ;;  %v1053_v24 = vpop.eup %1052 }
 0x123   : > { %vm337_vm7 = vmor %vm335_vm5, %vm336_vm6  ;;  %v600_v8 = vsel %vm318_vm2, %v550_v15, %v597_v1 }
 0x124   : > { %v332_v12 = vsub.f32 1.0, %v331_v11 }
 0x126   : > { %v333_v10 = vmul.f32 %v1051_v2, %v332_v12 }
 0x127   : > { %v576_v3 = vpop.f32.mrf.mxu2  ;;  %v589_v9 = vpop.f32.mrf.mxu3 }
 0x128   : > { %v598_v14 = vrot.slane %v576_v3, 4  ;;  %v599_v6 = vrot.slane %v589_v9, 2  ;;  %v552_v21 = vpop.f32.mrf.mxu0  ;;  %v565_v20 = vpop.f32.mrf.mxu1  ;;  %v334_v22 = vadd.f32 %v1051_v2, %v333_v10 }
 0x12a   : > { %v601_v0 = vsel %vm320_vm3, %v598_v14, %v599_v6  ;;  %v338_v11 = vsel %vm337_vm7, %v1051_v2, %v334_v22 }
 0x12b   : > { %v602_v18 = vsel %vm322_vm4, %v600_v8, %v601_v0  ;;  %v343_v17 = vsel %vm340_vm8, %v342_v19, %v338_v11 }
 0x12c   : > { %v604_v12 = vadd.f32 %v602_v18, %v379_v7  ;;  %v350_v23 = vrot.slane %v343_v17, 2  ;;  %v353_v15 = vmul.f32 %v1053_v24, %v343_v17  ;;  %v356_v10 = vrot.slane %v343_v17, 4 }
 0x12e   : > { %v941_v25 = vmul.f32 -1.442695, %v604_v12  ;;  %v352_v13 = vmul.f32 %v2186_v16, %v350_v23  ;;  %v625_v8 = vrot.slane %v604_v12, 6 }
 0x12f   : > { %v578_v1 = vpop.f32.mrf.mxu2  ;;  %v591_v3 = vpop.f32.mrf.mxu3 }
 0x130   : > { %1054 = vpow2.f32 %v941_v25  ;;  %v354_v21 = vadd.f32 %v353_v15, %v352_v13  ;;  %v2187_v1 = vld [vmem:[#allocation95_spill] sm:$0xff] }
 0x132   : > { %1056 = vtanh.f32 %v354_v21  ;;  %v367_v3 = vsel %vm365_vm9, %v354_v21, %v2186_v16   ;;  %v643_v16 = vpop.permute.xlu0 %642 }
 0x133   : > { %vm644_vm14 = vcmp.eq.s32.totalorder %v643_v16, 1 }
 0x136   : > { %v1055_v22 = vpop.eup %1054 }
 0x137   : > { %v608_v2 = vadd.f32 1.0, %v1055_v22 }
 0x138   : > { %v1057_v7 = vpop.eup %1056 }
 0x139   : > { %1058 = vrcp.f32 %v608_v2  ;;  %v358_v9 = vmul.f32 %v1057_v7, %v356_v10  ;;  %v620_v20 = vand.u32 2147483648, %v608_v2  ;;  %v618_v11 = vand.u32 2147483647, %v608_v2 }
 0x13a   : > { %1060 = vtanh.f32 %v625_v8  ;;  %vm614_vm11 = vweird.f32 %v608_v2 }
 0x13b   : > { %v366_v6 = vsel %vm365_vm9, %v358_v9, %v2127_v5   ;;  %v368_v23 = vsel %vm365_vm9, %v358_v9, 0.0  ;;  %v621_v17 = vor.u32 1.1754944e-38, %v620_v20  ;;  %vm619_vm13 = vcmp.eq.f32.partialorder %v618_v11, 8.507059e+37 }
 0x13c   : > { %v369_v24 = vpack.c.bf16 %v368_v23, %v368_v23 }
 0x13e   : > { %371 = vst [vmem:[%s370_s22] sm:$0x1] %v369_v24 }
 0x13f   : > { %v1059_v25 = vpop.eup %1058 }
 0x140   : > { %v610_v19 = vmul.f32 %v1059_v25, %v608_v2  ;;  %vm615_vm10 = vweird.f32 %v1059_v25  ;;  %v1061_v15 = vpop.eup %1060 }
 0x141   : > { %vm616_vm12 = vmor %vm614_vm11, %vm615_vm10 }
 0x142   : > { %v611_v14 = vsub.f32 1.0, %v610_v19 }
 0x144   : > { %v612_v0 = vmul.f32 %v1059_v25, %v611_v14 }
 0x146   : > { %v613_v18 = vadd.f32 %v1059_v25, %v612_v0 }
 0x148   : > { %v617_v57 = vsel %vm616_vm12, %v1059_v25, %v613_v18 }
 0x149   : > { %v622_v5 = vsel %vm619_vm13, %v621_v17, %v617_v57 }
 0x14a   : > { %v629_v13 = vrot.slane %v622_v5, 2  ;;  %v632_v12 = vmul.f32 %v1061_v15, %v622_v5  ;;  %v635_v10 = vrot.slane %v622_v5, 4 }
 0x14c   : > { %v631_v21 = vmul.f32 %v2187_v1, %v629_v13 }
 0x14e   : > { %v633_v22 = vadd.f32 %v632_v12, %v631_v21 }
 0x150   : > { %1062 = vtanh.f32 %v633_v22  ;;  %v646_v1 = vsel %vm644_vm14, %v633_v22, %v2187_v1  }
 0x156   : > { %v1063_v7 = vpop.eup %1062 }
 0x157   : > { %v637_v2 = vmul.f32 %v1063_v7, %v635_v10 }
 0x158   :  { %88 = sbr.rel (!%p86_p0) target bundleno = 97 (0x61), region = 55 }
 0x159   : > { %v645_v5 = vsel %vm644_vm14, %v637_v2, %v2185_v4   ;;  %v647_v9 = vsel %vm644_vm14, %v637_v2, 0.0 }
 0x15a   : > { %v648_v23 = vpack.c.bf16 %v647_v9, %v647_v9 }
 0x15c   : > { %650 = vst [vmem:[%s649_s25] sm:$0x1] %v648_v23 }

// kernel: seq2seq_forward.14
= control target key start
LH: loop header
LB: loop body
LE: loop exit
PB: predicated region body
PF: predicated region fallthrough
CT: control target
= control target key end

     0   :  { %s918_s17 = smov 0   ;;  %s1007_s0 = inlined_call_operand.vmem [shape: bf16[8,2,512], index: 0, kind: input, shape index: {}]   ;;  %s1008_s3 = inlined_call_operand.vmem [shape: bf16[128,512], index: 3, kind: input, shape index: {}]   ;;  %s1009_s4 = inlined_call_operand.vmem [shape: bf16[8,2,128], index: 4, kind: output, shape index: {}]   ;;  %s1010_s1 = inlined_call_operand.vmem [shape: f32[2,128], index: 1, kind: input, shape index: {}]   ;;  %s1011_s2 = inlined_call_operand.vmem [shape: f32[2,128], index: 2, kind: input, shape index: {}]  }
   0x1   :  { %v591_v0 = vld [vmem:[%s1008_s3 + $0x4] sm:$0xf]  ;;  %v596_v1 = vld [vmem:[%s1008_s3] sm:$0xf]  ;;  %v601_v2 = vld [vmem:[%s1008_s3 + $0xc] sm:$0xf] }
   0x2   :  { %1012 = vst [vmem:[#allocation2_spill] sm:$0xff] %v591_v0  ;;  %v606_v3 = vld [vmem:[%s1008_s3 + $0x8] sm:$0xf]  ;;  %v611_v4 = vld [vmem:[%s1008_s3 + $0x10] sm:$0xf0] }
   0x3   :  { %1013 = vst [vmem:[#allocation3_spill] sm:$0xff] %v596_v1  ;;  %v616_v5 = vld [vmem:[%s1008_s3 + $0xc] sm:$0xf0]  ;;  %v621_v6 = vld [vmem:[%s1008_s3 + $0x18] sm:$0xf0] }
   0x4   :  { %1014 = vst [vmem:[#allocation4_spill] sm:$0xff] %v601_v2  ;;  %v626_v7 = vld [vmem:[%s1008_s3 + $0x14] sm:$0xf0]  ;;  %v631_v8 = vld [vmem:[%s1008_s3 + $0x24] sm:$0xf] }
   0x5   :  { %1015 = vst [vmem:[#allocation5_spill] sm:$0xff] %v606_v3  ;;  %v636_v9 = vld [vmem:[%s1008_s3 + $0x20] sm:$0xf]  ;;  %v641_v10 = vld [vmem:[%s1008_s3 + $0x2c] sm:$0xf] }
   0x6   :  { %1016 = vst [vmem:[#allocation6_spill] sm:$0xff] %v611_v4  ;;  %v646_v11 = vld [vmem:[%s1008_s3 + $0x28] sm:$0xf]  ;;  %v651_v12 = vld [vmem:[%s1008_s3 + $0x30] sm:$0xf0] }
   0x7   :  { %1017 = vst [vmem:[#allocation7_spill] sm:$0xff] %v616_v5  ;;  %v656_v13 = vld [vmem:[%s1008_s3 + $0x2c] sm:$0xf0]  ;;  %v661_v14 = vld [vmem:[%s1008_s3 + $0x38] sm:$0xf0] }
   0x8   :  { %1018 = vst [vmem:[#allocation8_spill] sm:$0xff] %v621_v6  ;;  %v666_v15 = vld [vmem:[%s1008_s3 + $0x34] sm:$0xf0]  ;;  %v671_v16 = vld [vmem:[%s1008_s3 + $0x44] sm:$0xf] }
   0x9   :  { %1019 = vst [vmem:[#allocation9_spill] sm:$0xff] %v626_v7  ;;  %v676_v17 = vld [vmem:[%s1008_s3 + $0x40] sm:$0xf]  ;;  %v681_v18 = vld [vmem:[%s1008_s3 + $0x4c] sm:$0xf] }
   0xa   :  { %1020 = vst [vmem:[#allocation10_spill] sm:$0xff] %v631_v8  ;;  %v686_v19 = vld [vmem:[%s1008_s3 + $0x48] sm:$0xf]  ;;  %v691_v20 = vld [vmem:[%s1008_s3 + $0x50] sm:$0xf0] }
   0xb   :  { %1021 = vst [vmem:[#allocation11_spill] sm:$0xff] %v636_v9  ;;  %v696_v21 = vld [vmem:[%s1008_s3 + $0x4c] sm:$0xf0]  ;;  %v701_v22 = vld [vmem:[%s1008_s3 + $0x58] sm:$0xf0] }
   0xc   :  { %1022 = vst [vmem:[#allocation12_spill] sm:$0xff] %v641_v10  ;;  %v706_v23 = vld [vmem:[%s1008_s3 + $0x54] sm:$0xf0]  ;;  %v711_v24 = vld [vmem:[%s1008_s3 + $0x64] sm:$0xf] }
   0xd   :  { %1023 = vst [vmem:[#allocation13_spill] sm:$0xff] %v646_v11  ;;  %v716_v25 = vld [vmem:[%s1008_s3 + $0x60] sm:$0xf]  ;;  %v721_v26 = vld [vmem:[%s1008_s3 + $0x6c] sm:$0xf] }
   0xe   :  { %1024 = vst [vmem:[#allocation14_spill] sm:$0xff] %v651_v12  ;;  %v726_v27 = vld [vmem:[%s1008_s3 + $0x68] sm:$0xf]  ;;  %v731_v28 = vld [vmem:[%s1008_s3 + $0x70] sm:$0xf0] }
   0xf   :  { %1025 = vst [vmem:[#allocation15_spill] sm:$0xff] %v656_v13  ;;  %v736_v29 = vld [vmem:[%s1008_s3 + $0x6c] sm:$0xf0]  ;;  %v741_v30 = vld [vmem:[%s1008_s3 + $0x78] sm:$0xf0] }
  0x10   :  { %1026 = vst [vmem:[#allocation16_spill] sm:$0xff] %v661_v14  ;;  %v746_v31 = vld [vmem:[%s1008_s3 + $0x74] sm:$0xf0]  ;;  %v751_v32 = vld [vmem:[%s1008_s3 + $0x84] sm:$0xf] }
  0x11   :  { %1027 = vst [vmem:[#allocation17_spill] sm:$0xff] %v666_v15  ;;  %v756_v33 = vld [vmem:[%s1008_s3 + $0x80] sm:$0xf]  ;;  %v761_v34 = vld [vmem:[%s1008_s3 + $0x8c] sm:$0xf] }
  0x12   :  { %1028 = vst [vmem:[#allocation18_spill] sm:$0xff] %v671_v16  ;;  %v766_v35 = vld [vmem:[%s1008_s3 + $0x88] sm:$0xf]  ;;  %v771_v36 = vld [vmem:[%s1008_s3 + $0x90] sm:$0xf0] }
  0x13   :  { %1029 = vst [vmem:[#allocation19_spill] sm:$0xff] %v676_v17  ;;  %v776_v37 = vld [vmem:[%s1008_s3 + $0x8c] sm:$0xf0]  ;;  %v781_v38 = vld [vmem:[%s1008_s3 + $0x98] sm:$0xf0] }
  0x14   :  { %1030 = vst [vmem:[#allocation20_spill] sm:$0xff] %v681_v18  ;;  %v786_v39 = vld [vmem:[%s1008_s3 + $0x94] sm:$0xf0]  ;;  %v791_v40 = vld [vmem:[%s1008_s3 + $0xa4] sm:$0xf] }
  0x15   :  { %1031 = vst [vmem:[#allocation21_spill] sm:$0xff] %v686_v19  ;;  %v796_v41 = vld [vmem:[%s1008_s3 + $0xa0] sm:$0xf]  ;;  %v801_v42 = vld [vmem:[%s1008_s3 + $0xac] sm:$0xf] }
  0x16   :  { %v806_v43 = vld [vmem:[%s1008_s3 + $0xa8] sm:$0xf]  ;;  %v811_v44 = vld [vmem:[%s1008_s3 + $0xb0] sm:$0xf0]  ;;  %v816_v45 = vld [vmem:[%s1008_s3 + $0xac] sm:$0xf0] }
  0x17   :  { %v821_v46 = vld [vmem:[%s1008_s3 + $0xb8] sm:$0xf0]  ;;  %v826_v47 = vld [vmem:[%s1008_s3 + $0xb4] sm:$0xf0]  ;;  %v831_v48 = vld [vmem:[%s1008_s3 + $0xc4] sm:$0xf] }
  0x18   :  { %v836_v49 = vld [vmem:[%s1008_s3 + $0xc0] sm:$0xf]  ;;  %v841_v50 = vld [vmem:[%s1008_s3 + $0xcc] sm:$0xf]  ;;  %v846_v51 = vld [vmem:[%s1008_s3 + $0xc8] sm:$0xf] }
  0x19   :  { %v851_v52 = vld [vmem:[%s1008_s3 + $0xd0] sm:$0xf0]  ;;  %v856_v53 = vld [vmem:[%s1008_s3 + $0xcc] sm:$0xf0]  ;;  %v861_v54 = vld [vmem:[%s1008_s3 + $0xd8] sm:$0xf0] }
  0x1a   :  { %v866_v55 = vld [vmem:[%s1008_s3 + $0xd4] sm:$0xf0]  ;;  %v871_v56 = vld [vmem:[%s1008_s3 + $0xe4] sm:$0xf]  ;;  %v876_v57 = vld [vmem:[%s1008_s3 + $0xe0] sm:$0xf] }
  0x1b   :  { %1032 = vst [vmem:[#allocation22_spill] sm:$0xff] %v871_v56  ;;  %v881_v58 = vld [vmem:[%s1008_s3 + $0xec] sm:$0xf]  ;;  %v886_v59 = vld [vmem:[%s1008_s3 + $0xe8] sm:$0xf] }
  0x1c   :  { %1033 = vst [vmem:[#allocation23_spill] sm:$0xff] %v876_v57  ;;  %v891_v60 = vld [vmem:[%s1008_s3 + $0xf0] sm:$0xf0]  ;;  %v896_v61 = vld [vmem:[%s1008_s3 + $0xec] sm:$0xf0] }
  0x1d   :  { %v901_v62 = vld [vmem:[%s1008_s3 + $0xf8] sm:$0xf0]  ;;  %v906_v63 = vld [vmem:[%s1008_s3 + $0xf4] sm:$0xf0]  ;;  %v49_v2 = vld [vmem:[%s1010_s1] sm:$0x3]  }
  0x1e   :  { %v50_v6 = vld [vmem:[%s1011_s2] sm:$0x3]  }
  0x1f LB: > { %1034 = vst [vmem:[#allocation24_spill] sm:$0xff] %v553_v6  ;;  %v469_v0 = vor.u32 %v906_v63, %v886_v59  ;;  %v473_v4 = vor.u32 %v881_v58, %v901_v62  ;;  %v445_v6 = vor.u32 %v856_v53, %v836_v49  ;;  %v449_v5 = vor.u32 %v831_v48, %v851_v52  ;;  %v1037_v17 = vld [vmem:[#allocation19_spill] sm:$0xff]  ;;  %v1038_v16 = vld [vmem:[#allocation18_spill] sm:$0xff]  ;;  %v1039_v19 = vld [vmem:[#allocation21_spill] sm:$0xff]  ;;  %s345_s1 = sshll.u32 %s561_s17, 2  ;;  %s325_s21 = scalar_lea.vmem %s1009_s4, %s561_s17  ;;  %s561_s17 = sphi %s918_s17, %s56_s17   ;;  %v557_v2 = vphi %v49_v2, %v323_v2   ;;  %v553_v6 = vphi %v50_v6, %v319_v6  }
  0x20   : > { %v1040_v18 = vld [vmem:[#allocation20_spill] sm:$0xff]  ;;  %v1041_v9 = vld [vmem:[#allocation11_spill] sm:$0xff]  ;;  %v1043_v12 = vld [vmem:[#allocation14_spill] sm:$0xff]  ;;  %s60_s18 = scalar_lea.vmem %s1007_s0, %s345_s1  ;;  %vm283_vm0 = vcmask 1041408   ;;  %vm285_vm1 = vcmask 1045508   ;;  %vm287_vm2 = vcmask 1043456  }
  0x21   : > { %250 = vmatpush.bf16.msra.mxu2 %v469_v0  ;;  %263 = vmatpush.bf16.msra.mxu3 %v473_v4  ;;  %v437_v0 = vor.u32 %v826_v47, %v806_v43  ;;  %v441_v4 = vor.u32 %v801_v42, %v821_v46  ;;  %v1042_v13 = vld [vmem:[#allocation15_spill] sm:$0xff]  ;;  %v1044_v8 = vld [vmem:[#allocation10_spill] sm:$0xff]  ;;  %v1045_v11 = vld [vmem:[#allocation13_spill] sm:$0xff]  ;;  %s56_s17 = sadd.s32 1, %s561_s17  }
  0x22   : > { %v1036_v56 = vld [vmem:[#allocation22_spill] sm:$0xff]  ;;  %v1046_v15 = vld [vmem:[#allocation17_spill] sm:$0xff]  ;;  %v1047_v14 = vld [vmem:[#allocation16_spill] sm:$0xff]  ;;  %p53_p0 = scmp.ge.s32.totalorder %s56_s17, 8  }
  0x23   : > { %v1035_v57 = vld [vmem:[#allocation23_spill] sm:$0xff]  ;;  %v465_v3 = vor.u32 %v1036_v56, %v891_v60  ;;  %v457_v56 = vor.u32 %v841_v50, %v861_v54  ;;  %v1048_v10 = vld [vmem:[#allocation12_spill] sm:$0xff] }
  0x24   : > { %v461_v7 = vor.u32 %v896_v61, %v1035_v57  ;;  %v453_v57 = vor.u32 %v866_v55, %v846_v51  ;;  %v1049_v1 = vld [vmem:[#allocation3_spill] sm:$0xff] }
  0x25   : > { %237 = vmatpush.bf16.msra.mxu1 %v465_v3  ;;  %v433_v3 = vor.u32 %v791_v40, %v811_v44  ;;  %264 = vmatpush.bf16.msra.mxu3 %v457_v56  ;;  %v425_v56 = vor.u32 %v761_v34, %v781_v38 }
  0x26   : > { %224 = vmatpush.bf16.msra.mxu0 %v461_v7  ;;  %v429_v7 = vor.u32 %v816_v45, %v796_v41  ;;  %251 = vmatpush.bf16.msra.mxu2 %v453_v57  ;;  %v421_v57 = vor.u32 %v786_v39, %v766_v35 }
  0x29   : > { %238 = vmatpush.bf16.msra.mxu1 %v449_v5  ;;  %v417_v5 = vor.u32 %v751_v32, %v771_v36  ;;  %265 = vmatpush.bf16.msra.mxu3 %v441_v4  ;;  %v409_v4 = vor.u32 %v721_v26, %v741_v30 }
  0x2a   : > { %225 = vmatpush.bf16.msra.mxu0 %v445_v6  ;;  %v413_v6 = vor.u32 %v776_v37, %v756_v33  ;;  %252 = vmatpush.bf16.msra.mxu2 %v437_v0  ;;  %v405_v0 = vor.u32 %v746_v31, %v726_v27 }
  0x2d   : > { %239 = vmatpush.bf16.msra.mxu1 %v433_v3  ;;  %v401_v3 = vor.u32 %v711_v24, %v731_v28  ;;  %266 = vmatpush.bf16.msra.mxu3 %v425_v56  ;;  %v393_v56 = vor.u32 %v1040_v18, %v701_v22 }
  0x2e   : > { %226 = vmatpush.bf16.msra.mxu0 %v429_v7  ;;  %v397_v7 = vor.u32 %v736_v29, %v716_v25  ;;  %253 = vmatpush.bf16.msra.mxu2 %v421_v57  ;;  %v389_v57 = vor.u32 %v706_v23, %v1039_v19 }
  0x31   : > { %240 = vmatpush.bf16.msra.mxu1 %v417_v5  ;;  %v385_v5 = vor.u32 %v1038_v16, %v691_v20  ;;  %267 = vmatpush.bf16.msra.mxu3 %v409_v4  ;;  %v377_v4 = vor.u32 %v1048_v10, %v1047_v14  ;;  %v1050_v16 = vld [vmem:[#allocation7_spill] sm:$0xff] }
  0x32   : > { %227 = vmatpush.bf16.msra.mxu0 %v413_v6  ;;  %v381_v6 = vor.u32 %v696_v21, %v1037_v17  ;;  %254 = vmatpush.bf16.msra.mxu2 %v405_v0  ;;  %v373_v0 = vor.u32 %v1046_v15, %v1045_v11  ;;  %v1052_v17 = vld [vmem:[#allocation2_spill] sm:$0xff]  ;;  %v63_v15 = vpack.c.bf16 %v557_v2, %v557_v2 }
  0x35   : > { %241 = vmatpush.bf16.msra.mxu1 %v401_v3  ;;  %v369_v3 = vor.u32 %v1044_v8, %v1043_v12  ;;  %268 = vmatpush.bf16.msra.mxu3 %v393_v56  ;;  %v1053_v8 = vld [vmem:[#allocation5_spill] sm:$0xff]  ;;  %v1055_v12 = vld [vmem:[#allocation8_spill] sm:$0xff] }
  0x36   : > { %228 = vmatpush.bf16.msra.mxu0 %v397_v7  ;;  %v365_v7 = vor.u32 %v1042_v13, %v1041_v9  ;;  %255 = vmatpush.bf16.msra.mxu2 %v389_v57  ;;  %v1054_v57 = vld [vmem:[#allocation9_spill] sm:$0xff]  ;;  %v1056_v13 = vld [vmem:[#allocation4_spill] sm:$0xff] }
  0x37   : > { %v357_v56 = vor.u32 %v1054_v57, %v1053_v8  ;;  %v361_v11 = vor.u32 %v1056_v13, %v1055_v12 }
  0x39   : > { %242 = vmatpush.bf16.msra.mxu1 %v385_v5  ;;  %v1051_v5 = vld [vmem:[#allocation6_spill] sm:$0xff]  ;;  %269 = vmatpush.bf16.msra.mxu3 %v377_v4 }
  0x3a   : > { %229 = vmatpush.bf16.msra.mxu0 %v381_v6  ;;  %v349_v6 = vor.u32 %v1050_v16, %v1049_v1  ;;  %v353_v9 = vor.u32 %v1052_v17, %v1051_v5  ;;  %256 = vmatpush.bf16.msra.mxu2 %v373_v0 }
  0x3d   : > { %243 = vmatpush.bf16.msra.mxu1 %v369_v3  ;;  %270 = vmatpush.bf16.msra.mxu3 %v361_v11 }
  0x3e   : > { %230 = vmatpush.bf16.msra.mxu0 %v365_v7  ;;  %257 = vmatpush.bf16.msra.mxu2 %v357_v56  ;;  %v61_v7 = vld [vmem:[%s60_s18] sm:$0xf] }
  0x3f   : > { %v62_v2 = vunpack.c.l.bf16 %v61_v7 }
  0x40   : > { %271 = vmatmul.bf16.vlgmr.msra.gmra.mxu3 %v63_v15 }
  0x41   : > { %244 = vmatpush.bf16.msra.mxu1 %v353_v9  ;;  %258 = vmatmul.bf16.vlgmr.msra.gmra.mxu2 %v63_v15 }
  0x42   : > { %231 = vmatpush.bf16.msra.mxu0 %v349_v6 }
  0x44   : > { %245 = vmatmul.bf16.vlgmr.msra.gmra.mxu1 %v63_v15 }
  0x45   : > { %232 = vmatmul.bf16.vlgmr.msra.gmra.mxu0 %v63_v15 }
  0xc1   : > { %v246_v17 = vpop.f32.mrf.mxu1 }
  0xc2   : > { %v233_v16 = vpop.f32.mrf.mxu0  ;;  %v280_v8 = vrot.slane %v246_v17, 6 }
  0xc3   : > { %v272_v13 = vpop.f32.mrf.mxu3 }
  0xc4   : > { %v259_v12 = vpop.f32.mrf.mxu2  ;;  %v284_v9 = vsel %vm283_vm0, %v233_v16, %v280_v8  ;;  %v282_v3 = vrot.slane %v272_v13, 2 }
  0xc5   : > { %v281_v11 = vrot.slane %v259_v12, 4 }
  0xc7   : > { %v286_v4 = vsel %vm285_vm1, %v281_v11, %v282_v3 }
  0xc8   : > { %v288_v6 = vsel %vm287_vm2, %v284_v9, %v286_v4 }
  0xc9   : > { %v248_v15 = vpop.f32.mrf.mxu1  ;;  %v290_v5 = vadd.f32 %v288_v6, %v62_v2 }
  0xca   : > { %v235_v0 = vpop.f32.mrf.mxu0 }
  0xcb   : > { %v474_v57 = vmul.f32 -1.442695, %v290_v5  ;;  %v274_v1 = vpop.f32.mrf.mxu3  ;;  %v311_v18 = vrot.slane %v290_v5, 6  ;;  %v1057_v0 = vld [vmem:[#allocation24_spill] sm:$0xff] }
  0xcc   : > { %v261_v56 = vpop.f32.mrf.mxu2 }
  0xcd   : > { %531 = vpow2.f32 %v474_v57 }
  0xd3   : > { %v532_v17 = vpop.eup %531 }
  0xd4   : > { %v294_v10 = vadd.f32 1.0, %v532_v17 }
  0xd6   : > { %533 = vrcp.f32 %v294_v10  ;;  %v306_v16 = vand.u32 2147483648, %v294_v10  ;;  %v304_v12 = vand.u32 2147483647, %v294_v10  ;;  %vm300_vm4 = vweird.f32 %v294_v10 }
  0xd7   : > { %535 = vtanh.f32 %v311_v18 }
  0xd8   : > { %v307_v2 = vor.u32 1.1754944e-38, %v306_v16  ;;  %vm305_vm6 = vcmp.eq.f32.partialorder %v304_v12, 8.507059e+37 }
  0xdc   : > { %v534_v14 = vpop.eup %533 }
  0xdd   : > { %v296_v7 = vmul.f32 %v534_v14, %v294_v10  ;;  %vm301_vm3 = vweird.f32 %v534_v14  ;;  %v536_v3 = vpop.eup %535 }
  0xde   : > { %vm302_vm5 = vmor %vm300_vm4, %vm301_vm3 }
  0xdf   : > { %v297_v19 = vsub.f32 1.0, %v296_v7 }
  0xe1   : > { %v298_v8 = vmul.f32 %v534_v14, %v297_v19 }
  0xe3   : > { %v299_v13 = vadd.f32 %v534_v14, %v298_v8 }
  0xe5   : > { %v303_v9 = vsel %vm302_vm5, %v534_v14, %v299_v13 }
  0xe6   : > { %v308_v1 = vsel %vm305_vm6, %v307_v2, %v303_v9 }
  0xe7   : > { %v315_v11 = vrot.slane %v308_v1, 2  ;;  %v318_v4 = vmul.f32 %v536_v3, %v308_v1  ;;  %v321_v5 = vrot.slane %v308_v1, 4 }
  0xe9   : > { %v317_v15 = vmul.f32 %v1057_v0, %v315_v11 }
  0xeb   : > { %v319_v6 = vadd.f32 %v318_v4, %v317_v15  }
  0xed   : > { %537 = vtanh.f32 %v319_v6 }
  0xf3   : > { %v538_v19 = vpop.eup %537 }
  0xf4   : > { %v323_v2 = vmul.f32 %v538_v19, %v321_v5   ;;  %55 = sbr.rel (!%p53_p0) target bundleno = 31 (0x1f), region = 45 }
  0xf6   : > { %v324_v10 = vpack.c.bf16 %v323_v2, %v323_v2 }
  0xf8   : > { %326 = vst [vmem:[%s325_s21] sm:$0x1] %v324_v10 }

// kernel: seq2seq_forward.16
= control target key start
LH: loop header
LB: loop body
LE: loop exit
PB: predicated region body
PF: predicated region fallthrough
CT: control target
= control target key end

     0   :  { %s397_s3 = inlined_call_operand.vmem [shape: bf16[128,128], index: 3, kind: input, shape index: {}]   ;;  %s398_s1 = inlined_call_operand.vmem [shape: bf16[128,128], index: 1, kind: input, shape index: {}]   ;;  %s399_s2 = inlined_call_operand.vmem [shape: bf16[16,128], index: 2, kind: input, shape index: {}]   ;;  %s400_s0 = inlined_call_operand.vmem [shape: bf16[16,128], index: 0, kind: input, shape index: {}]   ;;  %s401_s4 = inlined_call_operand.vmem [shape: bf16[16,128], index: 4, kind: output, shape index: {}]  }
   0x1   :  { %v305_v0 = vld [vmem:[%s397_s3 + $0x38] sm:$0xff]  ;;  %v304_v2 = vld [vmem:[%s397_s3 + $0x30] sm:$0xff]  ;;  %v303_v4 = vld [vmem:[%s397_s3 + $0x28] sm:$0xff] }
   0x2   :  { %v296_v1 = vld [vmem:[%s398_s1 + $0x38] sm:$0xff]  ;;  %113 = vmatpush.bf16.msra.mxu0 %v305_v0  ;;  %v295_v3 = vld [vmem:[%s398_s1 + $0x30] sm:$0xff]  ;;  %v294_v5 = vld [vmem:[%s398_s1 + $0x28] sm:$0xff] }
   0x3   :  { %181 = vmatpush.bf16.msra.mxu1 %v296_v1  ;;  %v302_v6 = vld [vmem:[%s397_s3 + $0x20] sm:$0xff]  ;;  %v301_v8 = vld [vmem:[%s397_s3 + $0x18] sm:$0xff]  ;;  %v300_v10 = vld [vmem:[%s397_s3 + $0x10] sm:$0xff] }
   0x4   :  { %v293_v7 = vld [vmem:[%s398_s1 + $0x20] sm:$0xff]  ;;  %v292_v9 = vld [vmem:[%s398_s1 + $0x18] sm:$0xff]  ;;  %v291_v11 = vld [vmem:[%s398_s1 + $0x10] sm:$0xff] }
   0x5   :  { %v299_v12 = vld [vmem:[%s397_s3 + $0x8] sm:$0xff]  ;;  %v298_v14 = vld [vmem:[%s397_s3] sm:$0xff] }
   0x6   :  { %114 = vmatpush.bf16.msra.mxu0 %v304_v2  ;;  %v290_v13 = vld [vmem:[%s398_s1 + $0x8] sm:$0xff]  ;;  %v289_v15 = vld [vmem:[%s398_s1] sm:$0xff] }
   0x7   :  { %182 = vmatpush.bf16.msra.mxu1 %v295_v3  ;;  %v297_v16 = vld [vmem:[%s399_s2] sm:$0xff] }
   0x8   :  { %v288_v17 = vld [vmem:[%s400_s0] sm:$0xff] }
   0xa   :  { %115 = vmatpush.bf16.msra.mxu0 %v303_v4 }
   0xb   :  { %183 = vmatpush.bf16.msra.mxu1 %v294_v5 }
   0xe   :  { %116 = vmatpush.bf16.msra.mxu0 %v302_v6 }
   0xf   :  { %184 = vmatpush.bf16.msra.mxu1 %v293_v7 }
  0x12   :  { %117 = vmatpush.bf16.msra.mxu0 %v301_v8 }
  0x13   :  { %185 = vmatpush.bf16.msra.mxu1 %v292_v9 }
  0x16   :  { %118 = vmatpush.bf16.msra.mxu0 %v300_v10 }
  0x17   :  { %186 = vmatpush.bf16.msra.mxu1 %v291_v11 }
  0x1a   :  { %119 = vmatpush.bf16.msra.mxu0 %v299_v12 }
  0x1b   :  { %187 = vmatpush.bf16.msra.mxu1 %v290_v13 }
  0x1e   :  { %120 = vmatpush.bf16.msra.mxu0 %v298_v14 }
  0x1f   :  { %188 = vmatpush.bf16.msra.mxu1 %v289_v15 }
  0x21   :  { %121 = vmatmul.bf16.vlgmr.msra.gmra.mxu0 %v297_v16 }
  0x22   :  { %189 = vmatmul.bf16.vlgmr.msra.gmra.mxu1 %v288_v17 }
  0x9e   :  { %v122_v18 = vpop.f32.mrf.mxu0 }
  0x9f   :  { %v190_v19 = vpop.f32.mrf.mxu1 }
  0xa0   :  { %v191_v20 = vadd.f32 %v190_v19, %v122_v18 }
  0xa2   :  { %311 = vtanh.f32 %v191_v20 }
  0xa6   :  { %v124_v21 = vpop.f32.mrf.mxu0 }
  0xa7   :  { %v192_v22 = vpop.f32.mrf.mxu1 }
  0xa8   :  { %v193_v23 = vadd.f32 %v192_v22, %v124_v21  ;;  %v312_v24 = vpop.eup %311 }
  0xaa   :  { %313 = vtanh.f32 %v193_v23 }
  0xb0   :  { %v314_v25 = vpop.eup %313 }
  0xb1   :  { %v309_v26 = vpack.c.bf16 %v314_v25, %v312_v24 }
  0xb3   :  { %310 = vst [vmem:[%s401_s4] sm:$0xff] %v309_v26  }

// kernel: seq2seq_forward.15
= control target key start
LH: loop header
LB: loop body
LE: loop exit
PB: predicated region body
PF: predicated region fallthrough
CT: control target
= control target key end

     0   :  { %v154_v2 = vmov 0   ;;  %v46_v8 = vlaneseq  ;;  %vm65_vm1 = vcmask 64512   ;;  %vm93_vm3 = vcmask 1043456   ;;  %s199_s1 = inlined_call_operand.vmem [shape: bf16[2,8,128], index: 1, kind: input, shape index: {}]   ;;  %s200_s2 = inlined_call_operand.vmem [shape: s32[2,1], index: 2, kind: input, shape index: {}]   ;;  %s201_s0 = inlined_call_operand.vmem [shape: bf16[2,8,128], index: 0, kind: input, shape index: {}]   ;;  %s202_s3 = inlined_call_operand.vmem [shape: bf16[2,8,128], index: 3, kind: output, shape index: {}]  }
   0x1   :  { %v17_v0 = vld [vmem:[%s199_s1] sm:$0xf]  ;;  %v18_v1 = vld [vmem:[%s199_s1 + $0x4] sm:$0xf]  ;;  %145 = vset.pattern.permute.xlu0 %v154_v2 }
   0x2   :  { %v19_v3 = vld [vmem:[%s200_s2] sm:$0x3]  ;;  %27 = vmatpush.bf16.xpose.msra.mxu0 %v17_v0  ;;  %40 = vmatpush.bf16.xpose.msra.mxu1 %v18_v1  ;;  %v16_v5 = vld [vmem:[%s201_s0 + $0x4] sm:$0xf]  ;;  %v47_v10 = vand.u32 127, %v46_v8  ;;  %v95_v31 = vsel %vm93_vm3, %v17_v0, 0 }
   0x3   :  { %50 = vperm.xlu0 %145, %v19_v3   ;;  %v15_v4 = vld [vmem:[%s201_s0] sm:$0xf]  ;;  %v48_v6 = vrot.slane %v19_v3, 1  ;;  %104 = vmatpush.bf16.msra.mxu2 %v95_v31  ;;  %v114_v32 = vsel %vm93_vm3, %v18_v1, 0 }
   0x4   :  { %123 = vmatpush.bf16.msra.mxu3 %v114_v32 }
   0x9   :  { %28 = vmatmul.bf16.vlgmr.msra.gmra.mxu0 %v15_v4  ;;  %41 = vmatmul.bf16.vlgmr.msra.gmra.mxu1 %v16_v5 }
   0xb   :  { %54 = vperm.xlu0 %145, %v48_v6  }
  0x75   :  { %v51_v7 = vpop.permute.xlu0 %50 }
  0x76   :  { %v52_v9 = vperm.slane %v51_v7, 0 }
  0x78   :  { %vm57_vm0 = vcmp.lt.s32.totalorder %v47_v10, %v52_v9 }
  0x7d   :  { %v55_v11 = vpop.permute.xlu0 %54 }
  0x7e   :  { %v56_v12 = vperm.slane %v55_v11, 0 }
  0x80   :  { %vm58_vm2 = vcmp.lt.s32.totalorder %v47_v10, %v56_v12 }
  0x86   :  { %v29_v13 = vpop.f32.mrf.mxu0  ;;  %v42_v14 = vpop.f32.mrf.mxu1 }
  0x87   :  { %v63_v15 = vsel %vm57_vm0, %v29_v13, -1e+30  ;;  %v64_v17 = vsel %vm58_vm2, %v42_v14, -1e+30 }
  0x88   :  { %v66_v16 = vsel %vm65_vm1, %v63_v15, -inf  ;;  %v69_v20 = vsel %vm65_vm1, %v64_v17, -inf }
  0x89   :  { %67 = vmax.xlane.f32.xlu1 %v66_v16 }
  0x8e   :  { %v31_v18 = vpop.f32.mrf.mxu0  ;;  %v44_v19 = vpop.f32.mrf.mxu1 }
  0x91   :  { %70 = vmax.xlane.f32.xlu1 %v69_v20 }
  0xfc   :  { %v68_v21 = vpop.xlane.xlu1 %67 }
  0xfd   :  { %v72_v22 = vsub.f32 %v63_v15, %v68_v21 }
  0xff   :  { %v74_v23 = vmul.f32 1.442695, %v72_v22 }
 0x101   :  { %146 = vpow2.f32 %v74_v23 }
 0x104   :  { %v71_v24 = vpop.xlane.xlu1 %70 }
 0x105   :  { %v73_v25 = vsub.f32 %v64_v17, %v71_v24 }
 0x107   :  { %v147_v26 = vpop.eup %146  ;;  %v76_v27 = vmul.f32 1.442695, %v73_v25 }
 0x108   :  { %v78_v28 = vsel %vm65_vm1, %v147_v26, 0.0 }
 0x109   :  { %148 = vpow2.f32 %v76_v27  ;;  %79 = vadd.xlane.f32.xlu2 %v78_v28 }
 0x10f   :  { %v149_v29 = vpop.eup %148 }
 0x110   :  { %v81_v30 = vsel %vm65_vm1, %v149_v29, 0.0 }
 0x111   :  { %82 = vadd.xlane.f32.xlu2 %v81_v30 }
 0x17c   :  { %v80_v33 = vpop.xlane.xlu2 %79 }
 0x17d   :  { %150 = vrcp.f32 %v80_v33 }
 0x183   :  { %v151_v34 = vpop.eup %150 }
 0x184   :  { %v83_v35 = vpop.xlane.xlu2 %82  ;;  %v86_v36 = vmul.f32 %v151_v34, %v147_v26 }
 0x185   :  { %152 = vrcp.f32 %v83_v35 }
 0x186   :  { %v88_v37 = vpack.c.bf16 %v86_v36, %v86_v36 }
 0x188   :  { %137 = vmatmul.msk.bf16.vlgmr.msra.gmra.mxu2 %vm65_vm1, %v88_v37 }
 0x18b   :  { %v153_v38 = vpop.eup %152 }
 0x18c   :  { %v87_v39 = vmul.f32 %v153_v38, %v149_v29 }
 0x18e   :  { %v89_v40 = vpack.c.bf16 %v87_v39, %v87_v39 }
 0x190   :  { %138 = vmatmul.msk.bf16.vlgmr.msra.gmra.mxu3 %vm65_vm1, %v89_v40 }
 0x20b   :  { %v106_v41 = vpop.f32.mrf.mxu2 }
 0x213   :  { %v108_v42 = vpop.f32.mrf.mxu2  ;;  %v125_v43 = vpop.f32.mrf.mxu3 }
 0x214   :  { %v142_v44 = vpack.c.bf16 %v125_v43, %v106_v41 }
 0x216   :  { %143 = vst [vmem:[%s202_s3] sm:$0xff] %v142_v44  }
 0x21b   :  { %v127_v45 = vpop.f32.mrf.mxu3 }

// kernel: seq2seq_forward.17
= control target key start
LH: loop header
LB: loop body
LE: loop exit
PB: predicated region body
PF: predicated region fallthrough
CT: control target
= control target key end

     0   :  { %s1409_s0 = inlined_call_operand.vmem [shape: bf16[16,128], index: 0, kind: input, shape index: {}]   ;;  %s1410_s1 = inlined_call_operand.vmem [shape: bf16[128,1024], index: 1, kind: input, shape index: {}]   ;;  %s1411_s2 = inlined_call_operand.hbm [shape: f32[16,1024], index: 2, kind: output, shape index: {}]  }
   0x1   :  { %v867_v0 = vld [vmem:[%s1410_s1 + $0x1c0] sm:$0xf]  ;;  %v954_v2 = vld [vmem:[%s1410_s1 + $0x1c4] sm:$0xf]  ;;  %v875_v5 = vld [vmem:[%s1410_s1 + $0x1c8] sm:$0xf] }
   0x2   :  { %v958_v1 = vld [vmem:[%s1410_s1 + $0x1dc] sm:$0xf0]  ;;  %v869_v4 = vld [vmem:[%s1410_s1 + $0x1e0] sm:$0xf0]  ;;  %v959_v6 = vld [vmem:[%s1410_s1 + $0x1e4] sm:$0xf0] }
   0x3   :  { %v868_v3 = vor.u32 %v958_v1, %v867_v0  ;;  %v872_v7 = vor.u32 %v954_v2, %v869_v4  ;;  %v876_v8 = vor.u32 %v959_v6, %v875_v5  ;;  %v955_v9 = vld [vmem:[%s1410_s1 + $0x1cc] sm:$0xf]  ;;  %v835_v11 = vld [vmem:[%s1410_s1 + $0x180] sm:$0xf]  ;;  %v946_v14 = vld [vmem:[%s1410_s1 + $0x184] sm:$0xf] }
   0x4   :  { %v877_v10 = vld [vmem:[%s1410_s1 + $0x1e8] sm:$0xf0]  ;;  %v950_v13 = vld [vmem:[%s1410_s1 + $0x19c] sm:$0xf0]  ;;  %v837_v15 = vld [vmem:[%s1410_s1 + $0x1a0] sm:$0xf0] }
   0x5   :  { %424 = vmatpush.bf16.msra.mxu0 %v868_v3  ;;  %v880_v12 = vor.u32 %v955_v9, %v877_v10  ;;  %438 = vmatpush.bf16.msra.mxu1 %v872_v7  ;;  %v836_v16 = vor.u32 %v950_v13, %v835_v11  ;;  %v840_v17 = vor.u32 %v946_v14, %v837_v15  ;;  %v843_v18 = vld [vmem:[%s1410_s1 + $0x188] sm:$0xf]  ;;  %v947_v20 = vld [vmem:[%s1410_s1 + $0x18c] sm:$0xf]  ;;  %v803_v23 = vld [vmem:[%s1410_s1 + $0x140] sm:$0xf] }
   0x6   :  { %452 = vmatpush.bf16.msra.mxu2 %v876_v8  ;;  %v951_v19 = vld [vmem:[%s1410_s1 + $0x1a4] sm:$0xf0]  ;;  %v845_v22 = vld [vmem:[%s1410_s1 + $0x1a8] sm:$0xf0]  ;;  %v942_v24 = vld [vmem:[%s1410_s1 + $0x15c] sm:$0xf0] }
   0x7   :  { %466 = vmatpush.bf16.msra.mxu3 %v880_v12  ;;  %v844_v21 = vor.u32 %v951_v19, %v843_v18  ;;  %v848_v25 = vor.u32 %v947_v20, %v845_v22  ;;  %v938_v26 = vld [vmem:[%s1410_s1 + $0x144] sm:$0xf]  ;;  %v811_v28 = vld [vmem:[%s1410_s1 + $0x148] sm:$0xf]  ;;  %v804_v29 = vor.u32 %v942_v24, %v803_v23  ;;  %v939_v31 = vld [vmem:[%s1410_s1 + $0x14c] sm:$0xf] }
   0x8   :  { %v805_v27 = vld [vmem:[%s1410_s1 + $0x160] sm:$0xf0]  ;;  %v943_v30 = vld [vmem:[%s1410_s1 + $0x164] sm:$0xf0]  ;;  %v813_v32 = vld [vmem:[%s1410_s1 + $0x168] sm:$0xf0] }
   0x9   :  { %425 = vmatpush.bf16.msra.mxu0 %v836_v16  ;;  %439 = vmatpush.bf16.msra.mxu1 %v840_v17  ;;  %v808_v33 = vor.u32 %v938_v26, %v805_v27  ;;  %v812_v34 = vor.u32 %v943_v30, %v811_v28  ;;  %v771_v35 = vld [vmem:[%s1410_s1 + $0x100] sm:$0xf]  ;;  %v930_v37 = vld [vmem:[%s1410_s1 + $0x104] sm:$0xf]  ;;  %v816_v38 = vor.u32 %v939_v31, %v813_v32  ;;  %v779_v40 = vld [vmem:[%s1410_s1 + $0x108] sm:$0xf] }
   0xa   :  { %453 = vmatpush.bf16.msra.mxu2 %v844_v21  ;;  %v934_v36 = vld [vmem:[%s1410_s1 + $0x11c] sm:$0xf0]  ;;  %v773_v39 = vld [vmem:[%s1410_s1 + $0x120] sm:$0xf0]  ;;  %v935_v41 = vld [vmem:[%s1410_s1 + $0x124] sm:$0xf0] }
   0xb   :  { %467 = vmatpush.bf16.msra.mxu3 %v848_v25  ;;  %v931_v42 = vld [vmem:[%s1410_s1 + $0x10c] sm:$0xf]  ;;  %v772_v44 = vor.u32 %v934_v36, %v771_v35  ;;  %v776_v45 = vor.u32 %v930_v37, %v773_v39  ;;  %v780_v46 = vor.u32 %v935_v41, %v779_v40  ;;  %v739_v47 = vld [vmem:[%s1410_s1 + $0xc0] sm:$0xf]  ;;  %v922_v49 = vld [vmem:[%s1410_s1 + $0xc4] sm:$0xf] }
   0xc   :  { %v781_v43 = vld [vmem:[%s1410_s1 + $0x128] sm:$0xf0]  ;;  %v926_v48 = vld [vmem:[%s1410_s1 + $0xdc] sm:$0xf0]  ;;  %v741_v51 = vld [vmem:[%s1410_s1 + $0xe0] sm:$0xf0] }
   0xd   :  { %426 = vmatpush.bf16.msra.mxu0 %v804_v29  ;;  %440 = vmatpush.bf16.msra.mxu1 %v808_v33  ;;  %v784_v50 = vor.u32 %v931_v42, %v781_v43  ;;  %v747_v52 = vld [vmem:[%s1410_s1 + $0xc8] sm:$0xf]  ;;  %v923_v54 = vld [vmem:[%s1410_s1 + $0xcc] sm:$0xf]  ;;  %v740_v56 = vor.u32 %v926_v48, %v739_v47  ;;  %v744_v57 = vor.u32 %v922_v49, %v741_v51  ;;  %v707_v59 = vld [vmem:[%s1410_s1 + $0x80] sm:$0xf] }
   0xe   :  { %454 = vmatpush.bf16.msra.mxu2 %v812_v34  ;;  %v927_v53 = vld [vmem:[%s1410_s1 + $0xe4] sm:$0xf0]  ;;  %v749_v55 = vld [vmem:[%s1410_s1 + $0xe8] sm:$0xf0]  ;;  %v918_v60 = vld [vmem:[%s1410_s1 + $0x9c] sm:$0xf0] }
   0xf   :  { %468 = vmatpush.bf16.msra.mxu3 %v816_v38  ;;  %v748_v58 = vor.u32 %v927_v53, %v747_v52  ;;  %v914_v61 = vld [vmem:[%s1410_s1 + $0x84] sm:$0xf]  ;;  %v752_v62 = vor.u32 %v923_v54, %v749_v55  ;;  %v715_v0 = vld [vmem:[%s1410_s1 + $0x88] sm:$0xf]  ;;  %v915_v2 = vld [vmem:[%s1410_s1 + $0x8c] sm:$0xf]  ;;  %v708_v4 = vor.u32 %v918_v60, %v707_v59 }
  0x10   :  { %v709_v63 = vld [vmem:[%s1410_s1 + $0xa0] sm:$0xf0]  ;;  %v919_v1 = vld [vmem:[%s1410_s1 + $0xa4] sm:$0xf0]  ;;  %v717_v3 = vld [vmem:[%s1410_s1 + $0xa8] sm:$0xf0] }
  0x11   :  { %427 = vmatpush.bf16.msra.mxu0 %v772_v44  ;;  %441 = vmatpush.bf16.msra.mxu1 %v776_v45  ;;  %v712_v5 = vor.u32 %v914_v61, %v709_v63  ;;  %v716_v6 = vor.u32 %v919_v1, %v715_v0  ;;  %v675_v7 = vld [vmem:[%s1410_s1 + $0x40] sm:$0xf]  ;;  %v906_v9 = vld [vmem:[%s1410_s1 + $0x44] sm:$0xf]  ;;  %v720_v10 = vor.u32 %v915_v2, %v717_v3  ;;  %v683_v12 = vld [vmem:[%s1410_s1 + $0x48] sm:$0xf] }
  0x12   :  { %455 = vmatpush.bf16.msra.mxu2 %v780_v46  ;;  %v910_v8 = vld [vmem:[%s1410_s1 + $0x5c] sm:$0xf0]  ;;  %v677_v11 = vld [vmem:[%s1410_s1 + $0x60] sm:$0xf0]  ;;  %v911_v13 = vld [vmem:[%s1410_s1 + $0x64] sm:$0xf0] }
  0x13   :  { %469 = vmatpush.bf16.msra.mxu3 %v784_v50  ;;  %v907_v14 = vld [vmem:[%s1410_s1 + $0x4c] sm:$0xf]  ;;  %v676_v16 = vor.u32 %v910_v8, %v675_v7  ;;  %v643_v17 = vld [vmem:[%s1410_s1] sm:$0xf]  ;;  %v680_v19 = vor.u32 %v906_v9, %v677_v11  ;;  %v684_v20 = vor.u32 %v911_v13, %v683_v12  ;;  %v898_v21 = vld [vmem:[%s1410_s1 + $0x4] sm:$0xf] }
  0x14   :  { %v685_v15 = vld [vmem:[%s1410_s1 + $0x68] sm:$0xf0]  ;;  %v902_v18 = vld [vmem:[%s1410_s1 + $0x1c] sm:$0xf0]  ;;  %v645_v22 = vld [vmem:[%s1410_s1 + $0x20] sm:$0xf0] }
  0x15   :  { %428 = vmatpush.bf16.msra.mxu0 %v740_v56  ;;  %442 = vmatpush.bf16.msra.mxu1 %v744_v57  ;;  %v651_v23 = vld [vmem:[%s1410_s1 + $0x8] sm:$0xf]  ;;  %v688_v24 = vor.u32 %v907_v14, %v685_v15  ;;  %v899_v26 = vld [vmem:[%s1410_s1 + $0xc] sm:$0xf]  ;;  %v883_v28 = vld [vmem:[%s1410_s1 + $0x1d0] sm:$0xf]  ;;  %v644_v31 = vor.u32 %v902_v18, %v643_v17  ;;  %v648_v35 = vor.u32 %v898_v21, %v645_v22 }
  0x16   :  { %456 = vmatpush.bf16.msra.mxu2 %v748_v58  ;;  %v903_v25 = vld [vmem:[%s1410_s1 + $0x24] sm:$0xf0]  ;;  %v653_v27 = vld [vmem:[%s1410_s1 + $0x28] sm:$0xf0]  ;;  %v960_v29 = vld [vmem:[%s1410_s1 + $0x1ec] sm:$0xf0] }
  0x17   :  { %470 = vmatpush.bf16.msra.mxu3 %v752_v62  ;;  %v956_v30 = vld [vmem:[%s1410_s1 + $0x1d4] sm:$0xf]  ;;  %v891_v33 = vld [vmem:[%s1410_s1 + $0x1d8] sm:$0xf]  ;;  %v652_v36 = vor.u32 %v903_v25, %v651_v23  ;;  %v957_v37 = vld [vmem:[%s1410_s1 + $0x1dc] sm:$0xf]  ;;  %v656_v39 = vor.u32 %v899_v26, %v653_v27  ;;  %v884_v40 = vor.u32 %v960_v29, %v883_v28 }
  0x18   :  { %v885_v32 = vld [vmem:[%s1410_s1 + $0x1f0] sm:$0xf0]  ;;  %v961_v34 = vld [vmem:[%s1410_s1 + $0x1f4] sm:$0xf0]  ;;  %v893_v38 = vld [vmem:[%s1410_s1 + $0x1f8] sm:$0xf0] }
  0x19   :  { %429 = vmatpush.bf16.msra.mxu0 %v708_v4  ;;  %443 = vmatpush.bf16.msra.mxu1 %v712_v5  ;;  %v851_v41 = vld [vmem:[%s1410_s1 + $0x190] sm:$0xf]  ;;  %v888_v42 = vor.u32 %v956_v30, %v885_v32  ;;  %v892_v43 = vor.u32 %v961_v34, %v891_v33  ;;  %v948_v45 = vld [vmem:[%s1410_s1 + $0x194] sm:$0xf]  ;;  %v896_v47 = vor.u32 %v957_v37, %v893_v38  ;;  %v859_v48 = vld [vmem:[%s1410_s1 + $0x198] sm:$0xf] }
  0x1a   :  { %457 = vmatpush.bf16.msra.mxu2 %v716_v6  ;;  %v952_v44 = vld [vmem:[%s1410_s1 + $0x1ac] sm:$0xf0]  ;;  %v853_v46 = vld [vmem:[%s1410_s1 + $0x1b0] sm:$0xf0]  ;;  %v953_v49 = vld [vmem:[%s1410_s1 + $0x1b4] sm:$0xf0] }
  0x1b   :  { %471 = vmatpush.bf16.msra.mxu3 %v720_v10  ;;  %v1246_v50 = vld [vmem:[%s1409_s0] sm:$0xff]  ;;  %v949_v51 = vld [vmem:[%s1410_s1 + $0x19c] sm:$0xf]  ;;  %v852_v53 = vor.u32 %v952_v44, %v851_v41  ;;  %v856_v54 = vor.u32 %v948_v45, %v853_v46  ;;  %v860_v55 = vor.u32 %v953_v49, %v859_v48  ;;  %v819_v56 = vld [vmem:[%s1410_s1 + $0x150] sm:$0xf] }
  0x1c   :  { %v861_v52 = vld [vmem:[%s1410_s1 + $0x1b8] sm:$0xf0]  ;;  %v944_v57 = vld [vmem:[%s1410_s1 + $0x16c] sm:$0xf0]  ;;  %v940_v58 = vld [vmem:[%s1410_s1 + $0x154] sm:$0xf] }
  0x1d   :  { %430 = vmatpush.bf16.msra.mxu0 %v676_v16  ;;  %444 = vmatpush.bf16.msra.mxu1 %v680_v19  ;;  %v864_v59 = vor.u32 %v949_v51, %v861_v52  ;;  %v821_v60 = vld [vmem:[%s1410_s1 + $0x170] sm:$0xf0]  ;;  %v827_v61 = vld [vmem:[%s1410_s1 + $0x158] sm:$0xf]  ;;  %v941_v63 = vld [vmem:[%s1410_s1 + $0x15c] sm:$0xf]  ;;  %v820_v1 = vor.u32 %v944_v57, %v819_v56 }
  0x1e   :  { %458 = vmatpush.bf16.msra.mxu2 %v684_v20  ;;  %v945_v62 = vld [vmem:[%s1410_s1 + $0x174] sm:$0xf0]  ;;  %v829_v0 = vld [vmem:[%s1410_s1 + $0x178] sm:$0xf0]  ;;  %v824_v2 = vor.u32 %v940_v58, %v821_v60  ;;  %v787_v4 = vld [vmem:[%s1410_s1 + $0x110] sm:$0xf] }
  0x1f   :  { %472 = vmatpush.bf16.msra.mxu3 %v688_v24  ;;  %v828_v3 = vor.u32 %v945_v62, %v827_v61  ;;  %v936_v5 = vld [vmem:[%s1410_s1 + $0x12c] sm:$0xf0]  ;;  %v932_v6 = vld [vmem:[%s1410_s1 + $0x114] sm:$0xf]  ;;  %v832_v7 = vor.u32 %v941_v63, %v829_v0  ;;  %v795_v9 = vld [vmem:[%s1410_s1 + $0x118] sm:$0xf] }
  0x20   :  { %v789_v8 = vld [vmem:[%s1410_s1 + $0x130] sm:$0xf0]  ;;  %v937_v10 = vld [vmem:[%s1410_s1 + $0x134] sm:$0xf0]  ;;  %v933_v11 = vld [vmem:[%s1410_s1 + $0x11c] sm:$0xf]  ;;  %v788_v13 = vor.u32 %v936_v5, %v787_v4 }
  0x21   :  { %431 = vmatpush.bf16.msra.mxu0 %v644_v31  ;;  %445 = vmatpush.bf16.msra.mxu1 %v648_v35  ;;  %v797_v12 = vld [vmem:[%s1410_s1 + $0x138] sm:$0xf0]  ;;  %v755_v14 = vld [vmem:[%s1410_s1 + $0xd0] sm:$0xf]  ;;  %v792_v15 = vor.u32 %v932_v6, %v789_v8  ;;  %v796_v16 = vor.u32 %v937_v10, %v795_v9  ;;  %v924_v18 = vld [vmem:[%s1410_s1 + $0xd4] sm:$0xf] }
  0x22   :  { %459 = vmatpush.bf16.msra.mxu2 %v652_v36  ;;  %v928_v17 = vld [vmem:[%s1410_s1 + $0xec] sm:$0xf0]  ;;  %v757_v19 = vld [vmem:[%s1410_s1 + $0xf0] sm:$0xf0]  ;;  %v800_v20 = vor.u32 %v933_v11, %v797_v12  ;;  %v763_v21 = vld [vmem:[%s1410_s1 + $0xd8] sm:$0xf] }
  0x23   :  { %473 = vmatpush.bf16.msra.mxu3 %v656_v39  ;;  %v929_v22 = vld [vmem:[%s1410_s1 + $0xf4] sm:$0xf0] }
  0x24   :  { %432 = vmatmul.bf16.vlgmr.msra.gmra.mxu0 %v1246_v50  ;;  %446 = vmatmul.bf16.vlgmr.msra.gmra.mxu1 %v1246_v50 }
  0x25   :  { %480 = vmatpush.bf16.msrb.mxu0 %v884_v40  ;;  %494 = vmatpush.bf16.msrb.mxu1 %v888_v42 }
  0x26   :  { %508 = vmatpush.bf16.msrb.mxu2 %v892_v43  ;;  %474 = vmatmul.bf16.vlgmr.msra.gmra.mxu3 %v1246_v50 }
  0x27   :  { %522 = vmatpush.bf16.msrb.mxu3 %v896_v47  ;;  %460 = vmatmul.bf16.vlgmr.msra.gmra.mxu2 %v1246_v50 }
  0x29   :  { %481 = vmatpush.bf16.msrb.mxu0 %v852_v53  ;;  %495 = vmatpush.bf16.msrb.mxu1 %v856_v54 }
  0x2a   :  { %509 = vmatpush.bf16.msrb.mxu2 %v860_v55 }
  0x2b   :  { %523 = vmatpush.bf16.msrb.mxu3 %v864_v59 }
  0x2d   :  { %482 = vmatpush.bf16.msrb.mxu0 %v820_v1  ;;  %496 = vmatpush.bf16.msrb.mxu1 %v824_v2 }
  0x2e   :  { %510 = vmatpush.bf16.msrb.mxu2 %v828_v3 }
  0x2f   :  { %524 = vmatpush.bf16.msrb.mxu3 %v832_v7 }
  0x30   :  { %7 = vsyncpa [#allocation4], 0  ;;  %v925_v23 = vld [vmem:[%s1410_s1 + $0xdc] sm:$0xf]  ;;  %v756_v25 = vor.u32 %v928_v17, %v755_v14  ;;  %v760_v26 = vor.u32 %v924_v18, %v757_v19  ;;  %v764_v27 = vor.u32 %v929_v22, %v763_v21  ;;  %v723_v28 = vld [vmem:[%s1410_s1 + $0x90] sm:$0xf] }
  0x31   :  { %v765_v24 = vld [vmem:[%s1410_s1 + $0xf8] sm:$0xf0]  ;;  %483 = vmatpush.bf16.msrb.mxu0 %v788_v13  ;;  %497 = vmatpush.bf16.msrb.mxu1 %v792_v15  ;;  %v920_v29 = vld [vmem:[%s1410_s1 + $0xac] sm:$0xf0]  ;;  %v916_v30 = vld [vmem:[%s1410_s1 + $0x94] sm:$0xf] }
  0x32   :  { %511 = vmatpush.bf16.msrb.mxu2 %v796_v16  ;;  %v768_v31 = vor.u32 %v925_v23, %v765_v24  ;;  %v725_v32 = vld [vmem:[%s1410_s1 + $0xb0] sm:$0xf0]  ;;  %v731_v33 = vld [vmem:[%s1410_s1 + $0x98] sm:$0xf]  ;;  %v917_v35 = vld [vmem:[%s1410_s1 + $0x9c] sm:$0xf]  ;;  %v724_v37 = vor.u32 %v920_v29, %v723_v28 }
  0x33   :  { %525 = vmatpush.bf16.msrb.mxu3 %v800_v20  ;;  %v921_v34 = vld [vmem:[%s1410_s1 + $0xb4] sm:$0xf0]  ;;  %v733_v36 = vld [vmem:[%s1410_s1 + $0xb8] sm:$0xf0]  ;;  %v728_v38 = vor.u32 %v916_v30, %v725_v32  ;;  %v691_v40 = vld [vmem:[%s1410_s1 + $0x50] sm:$0xf] }
  0x34   :  { %v732_v39 = vor.u32 %v921_v34, %v731_v33  ;;  %v912_v41 = vld [vmem:[%s1410_s1 + $0x6c] sm:$0xf0]  ;;  %v908_v42 = vld [vmem:[%s1410_s1 + $0x54] sm:$0xf]  ;;  %v736_v43 = vor.u32 %v917_v35, %v733_v36  ;;  %v699_v45 = vld [vmem:[%s1410_s1 + $0x58] sm:$0xf] }
  0x35   :  { %484 = vmatpush.bf16.msrb.mxu0 %v756_v25  ;;  %498 = vmatpush.bf16.msrb.mxu1 %v760_v26  ;;  %v693_v44 = vld [vmem:[%s1410_s1 + $0x70] sm:$0xf0]  ;;  %v913_v46 = vld [vmem:[%s1410_s1 + $0x74] sm:$0xf0]  ;;  %v909_v47 = vld [vmem:[%s1410_s1 + $0x5c] sm:$0xf]  ;;  %v692_v49 = vor.u32 %v912_v41, %v691_v40 }
  0x36   :  { %512 = vmatpush.bf16.msrb.mxu2 %v764_v27  ;;  %v701_v48 = vld [vmem:[%s1410_s1 + $0x78] sm:$0xf0]  ;;  %v696_v51 = vor.u32 %v908_v42, %v693_v44  ;;  %v700_v52 = vor.u32 %v913_v46, %v699_v45  ;;  %v659_v53 = vld [vmem:[%s1410_s1 + $0x10] sm:$0xf]  ;;  %v900_v55 = vld [vmem:[%s1410_s1 + $0x14] sm:$0xf] }
  0x37   :  { %526 = vmatpush.bf16.msrb.mxu3 %v768_v31  ;;  %v904_v54 = vld [vmem:[%s1410_s1 + $0x2c] sm:$0xf0]  ;;  %v704_v56 = vor.u32 %v909_v47, %v701_v48  ;;  %v661_v57 = vld [vmem:[%s1410_s1 + $0x30] sm:$0xf0]  ;;  %v667_v58 = vld [vmem:[%s1410_s1 + $0x18] sm:$0xf] }
  0x38   :  { %v905_v59 = vld [vmem:[%s1410_s1 + $0x34] sm:$0xf0]  ;;  %v901_v60 = vld [vmem:[%s1410_s1 + $0x1c] sm:$0xf]  ;;  %v660_v62 = vor.u32 %v904_v54, %v659_v53  ;;  %v664_v63 = vor.u32 %v900_v55, %v661_v57  ;;  %s625_s14 = sshll.u32 %s1411_s2, 4  ;;  %s992_s15 = smov 1024   ;;  %s626_s14 = int_to_ptr.hbm [resolvable:$true] %s625_s14 }
  0x39   :  { %485 = vmatpush.bf16.msrb.mxu0 %v724_v37  ;;  %499 = vmatpush.bf16.msrb.mxu1 %v728_v38  ;;  %v669_v61 = vld [vmem:[%s1410_s1 + $0x38] sm:$0xf0]  ;;  %v668_v0 = vor.u32 %v905_v59, %v667_v58  ;;  %s991_s1 = smov [#allocation3]   ;;  %s993_s16 = smov 64  }
  0x3a   :  { %513 = vmatpush.bf16.msrb.mxu2 %v732_v39  ;;  %v672_v1 = vor.u32 %v901_v60, %v669_v61  ;;  %s623_s11 = sshll.u32 %s991_s1, 4  ;;  %s624_s11 = int_to_ptr.vmem [resolvable:$true] %s623_s11 }
  0x3b   :  { %527 = vmatpush.bf16.msrb.mxu3 %v736_v43 }
  0x3d   :  { %486 = vmatpush.bf16.msrb.mxu0 %v692_v49  ;;  %500 = vmatpush.bf16.msrb.mxu1 %v696_v51 }
  0x3e   :  { %514 = vmatpush.bf16.msrb.mxu2 %v700_v52 }
  0x3f   :  { %528 = vmatpush.bf16.msrb.mxu3 %v704_v56 }
  0x41   :  { %487 = vmatpush.bf16.msrb.mxu0 %v660_v62  ;;  %501 = vmatpush.bf16.msrb.mxu1 %v664_v63 }
  0x42   :  { %515 = vmatpush.bf16.msrb.mxu2 %v668_v0 }
  0x43   :  { %529 = vmatpush.bf16.msrb.mxu3 %v672_v1 }
  0x44   :  { %488 = vmatmul.bf16.vlgmr.msrb.gmra.mxu0 %v1246_v50  ;;  %502 = vmatmul.bf16.vlgmr.msrb.gmra.mxu1 %v1246_v50 }
  0x45   :  { %516 = vmatmul.bf16.vlgmr.msrb.gmra.mxu2 %v1246_v50 }
  0x46   :  { %530 = vmatmul.bf16.vlgmr.msrb.gmra.mxu3 %v1246_v50 }
  0xa1   :  { %v433_v2 = vpop.f32.mrf.mxu0  ;;  %v447_v3 = vpop.f32.mrf.mxu1 }
  0xa2   :  { %603 = vst [vmem:[#allocation3] sm:$0xff] %v433_v2 }
  0xa3   :  { %604 = vst [vmem:[#allocation3 + $0x8] sm:$0xff] %v447_v3 }
  0xa9   :  { %v475_v5 = vpop.f32.mrf.mxu3  ;;  %v435_v6 = vpop.f32.mrf.mxu0 }
  0xaa   :  { %v461_v4 = vpop.f32.mrf.mxu2  ;;  %606 = vst [vmem:[#allocation3 + $0x18] sm:$0xff] %v475_v5  ;;  %v449_v7 = vpop.f32.mrf.mxu1 }
  0xab   :  { %605 = vst [vmem:[#allocation3 + $0x10] sm:$0xff] %v461_v4 }
  0xac   :  { %611 = vst [vmem:[#allocation3 + $0x40] sm:$0xff] %v435_v6 }
  0xad   :  { %612 = vst [vmem:[#allocation3 + $0x48] sm:$0xff] %v449_v7 }
  0xb1   :  { %v477_v9 = vpop.f32.mrf.mxu3 }
  0xb2   :  { %v463_v8 = vpop.f32.mrf.mxu2  ;;  %614 = vst [vmem:[#allocation3 + $0x58] sm:$0xff] %v477_v9 }
  0xb3   :  { %613 = vst [vmem:[#allocation3 + $0x50] sm:$0xff] %v463_v8 }
  0xc1   :  { %v489_v10 = vpop.f32.mrf.mxu0  ;;  %v503_v11 = vpop.f32.mrf.mxu1 }
  0xc2   :  { %607 = vst [vmem:[#allocation3 + $0x20] sm:$0xff] %v489_v10 }
  0xc3   :  { %608 = vst [vmem:[#allocation3 + $0x28] sm:$0xff] %v503_v11 }
  0xc8   :  { %v517_v50 = vpop.f32.mrf.mxu2 }
  0xc9   :  { %609 = vst [vmem:[#allocation3 + $0x30] sm:$0xff] %v517_v50  ;;  %v531_v12 = vpop.f32.mrf.mxu3  ;;  %v491_v13 = vpop.f32.mrf.mxu0 }
  0xca   :  { %610 = vst [vmem:[#allocation3 + $0x38] sm:$0xff] %v531_v12  ;;  %v505_v14 = vpop.f32.mrf.mxu1 }
  0xcb   :  { %615 = vst [vmem:[#allocation3 + $0x60] sm:$0xff] %v491_v13 }
  0xcc   :  { %616 = vst [vmem:[#allocation3 + $0x68] sm:$0xff] %v505_v14 }
  0xd0   :  { %v519_v15 = vpop.f32.mrf.mxu2 }
  0xd1   :  { %617 = vst [vmem:[#allocation3 + $0x70] sm:$0xff] %v519_v15  ;;  %v533_v16 = vpop.f32.mrf.mxu3 }
  0xd2   :  { %618 = vst [vmem:[#allocation3 + $0x78] sm:$0xff] %v533_v16 }
  0xd3   :  { %631 = dma.vmem_to_hbm [thread:$0]  %s624_s11, 2048, %s626_s14, [#allocation4], %s992_s15, %s992_s15, %s993_s16  }
  0xd4   :  { %989 = dma.done.wait [#allocation4], 2048  }
  0xd5   :  { %990 = vsyncadd [#allocation4], 4294965248 }
  0xd6   :  { %636 = vsyncpa [#allocation4], 1 }

</bundles_post_ra>
